<compile_context>
chip_gen: v7x
topology: tpu7x:2x2x1
jax: 0.10.0
libtpu: 0.0.40
codegen_flags: <defaults>
</compile_context>

<pallas_src>
import jax
import jax.numpy as jnp
from jax.experimental import pallas as pl
from jax.experimental.pallas import tpu as pltpu


def _head_kernel(feat_ref, w1_ref, b1_ref, w2_ref, b2_ref, out_ref, pool_ref):
    s = pl.program_id(1)

    # Running max over spatial tiles == adaptive_max_pool2d(., 1) + flatten.
    @pl.when(s == 0)
    def _():
        pool_ref[...] = jnp.full_like(pool_ref, -jnp.inf)

    # Compare in f32 (v5e has no bf16 VALU); features arrive as bf16 so the
    # upcast is exact and the running max stays bf16-representable.
    tile_max = jnp.max(feat_ref[...].astype(jnp.float32), axis=1)
    pool_ref[...] = jnp.maximum(pool_ref[...], tile_max)

    @pl.when(s == pl.num_programs(1) - 1)
    def _():
        pooled = pool_ref[...].astype(w1_ref.dtype)              # (Bt, C) bf16, exact
        # BatchNorm1d(eval) is folded into w1/b1 at model-load time.
        h = jnp.dot(pooled, w1_ref[...],
                    preferred_element_type=jnp.float32) + b1_ref[...]
        h = jnp.maximum(h, 0.0)                                   # ReLU
        # Dropout(p=0.2) is identity at inference time.
        logits = jnp.dot(h, w2_ref[...],
                         preferred_element_type=jnp.float32) + b2_ref[...]
        # Numerically stable LogSoftmax(dim=1).
        m = jnp.max(logits, axis=1, keepdims=True)
        z = logits - m
        lse = jnp.log(jnp.sum(jnp.exp(z), axis=1, keepdims=True))
        out_ref[...] = (z - lse).astype(out_ref.dtype)


def prepare_head_params(gamma, beta, running_mean, running_var,
                        w1, b1, w2, b2, *, eps=1e-5):
    """One-time (model-load) prep: fold BatchNorm1d(eval) into Linear1 and cast
    the large weight to bf16.  Cache the results; do NOT redo this per call."""
    a = gamma * jax.lax.rsqrt(running_var + eps)                  # (1, C)
    w1_eff = a.reshape(-1, 1) * w1                                # (C, H1)
    b1_eff = (beta - running_mean * a) @ w1 + b1                  # (1, H1)
    return (w1_eff.astype(jnp.bfloat16),
            b1_eff.astype(jnp.float32),
            w2.astype(jnp.float32),
            b2.astype(jnp.float32))


def cardiomegaly_head(features, w1_bf16, b1_eff, w2, b2, *,
                      s_tile=64, b_tile=None):
    """features: (B, S, C) backbone feature map (S = H*W), ideally bf16.
    w1_bf16 / b1_eff / w2 / b2: outputs of prepare_head_params (precomputed).
    Returns (B, num_classes) float32 log-probabilities."""
    B, S, C = features.shape
    H1 = w1_bf16.shape[1]
    NC = w2.shape[1]

    if b_tile is None:
        # Give the v7x megacore a "parallel" axis of extent 2 once each half
        # still keeps a reasonable MXU M-dim; otherwise a single batch block.
        b_tile = B // 2 if (B % 2 == 0 and B // 2 >= 8) else B
    s_tile = min(s_tile, S)
    assert B % b_tile == 0, "batch must be divisible by b_tile"
    assert S % s_tile == 0, "spatial size must be divisible by s_tile"
    grid = (B // b_tile, S // s_tile)

    const2 = lambda shape: pl.BlockSpec(shape, lambda b, s: (0, 0))

    feat_bytes = features.size * features.dtype.itemsize
    param_bytes = (w1_bf16.size * 2
                   + (b1_eff.size + w2.size + b2.size) * 4)
    cost = pl.CostEstimate(
        flops=2 * B * C * H1 + 2 * B * H1 * NC + B * S * C,
        transcendentals=2 * B * NC,
        bytes_accessed=feat_bytes + param_bytes + B * NC * 4)

    return pl.pallas_call(
        _head_kernel,
        out_shape=jax.ShapeDtypeStruct((B, NC), jnp.float32),
        grid=grid,
        in_specs=[
            pl.BlockSpec((b_tile, s_tile, C), lambda b, s: (b, s, 0)),  # features
            const2((C, H1)),     # folded linear1 weight (bf16), VMEM-resident
            const2((1, H1)),     # folded linear1 bias   (f32)
            const2((H1, NC)),    # linear2 weight        (f32)
            const2((1, NC)),     # linear2 bias          (f32)
        ],
        out_specs=pl.BlockSpec((b_tile, NC), lambda b, s: (b, 0)),
        scratch_shapes=[pltpu.VMEM((b_tile, C), jnp.float32)],   # running max
        compiler_params=pltpu.CompilerParams(
            dimension_semantics=("parallel", "arbitrary")),
        cost_estimate=cost,
    )(features, w1_bf16, b1_eff, w2, b2)


if __name__ == "__main__":
    key = jax.random.PRNGKey(0)
    ks = jax.random.split(key, 10)

    # EfficientNet-b3: _fc.in_features = 1536.  Small 8x8 spatial map.
    # B=16 keeps the demo small but exercises batching (M=8 per block) and the
    # v7x megacore split (parallel batch axis of extent 2).
    B, H, W, C = 16, 8, 8, 1536
    HIDDEN, NUM_CLASSES = 256, 2
    S = H * W

    # Synthetic backbone feature map (stands in for extract_features output) in
    # (B, S, C) layout.  On TPU the backbone would emit bf16 directly; the cast
    # here happens once at construction, outside the per-call head path.
    features_f32 = jax.random.normal(ks[0], (B, S, C), dtype=jnp.float32)
    features = features_f32.astype(jnp.bfloat16)

    # Deterministic synthetic parameters (not a checkpoint).
    gamma = 1.0 + 0.01 * jax.random.normal(ks[1], (1, C), dtype=jnp.float32)
    beta = 0.01 * jax.random.normal(ks[2], (1, C), dtype=jnp.float32)
    running_mean = 0.1 * jax.random.normal(ks[3], (1, C), dtype=jnp.float32)
    running_var = jax.random.uniform(ks[4], (1, C), dtype=jnp.float32,
                                     minval=0.5, maxval=1.5)
    w1 = 0.02 * jax.random.normal(ks[5], (C, HIDDEN), dtype=jnp.float32)
    b1 = 0.01 * jax.random.normal(ks[6], (1, HIDDEN), dtype=jnp.float32)
    w2 = 0.02 * jax.random.normal(ks[7], (HIDDEN, NUM_CLASSES), dtype=jnp.float32)
    b2 = 0.01 * jax.random.normal(ks[8], (1, NUM_CLASSES), dtype=jnp.float32)

    eps = 1e-5
    # One-time model-load prep (hoisted out of the per-call hot path).
    w1_bf16, b1_eff, w2_p, b2_p = prepare_head_params(
        gamma, beta, running_mean, running_var, w1, b1, w2, b2, eps=eps)
    w1_bf16, b1_eff, w2_p, b2_p = jax.block_until_ready(
        (w1_bf16, b1_eff, w2_p, b2_p))

    out = cardiomegaly_head(features, w1_bf16, b1_eff, w2_p, b2_p, s_tile=64)
    out = jax.block_until_ready(out)
    assert out.shape == (B, NUM_CLASSES)

    # Reference 1: pure-JAX with the same folded params + bf16 features (tight tol).
    pooled_bf = jnp.max(features, axis=1)
    h_ref = jnp.maximum(
        jnp.dot(pooled_bf, w1_bf16, preferred_element_type=jnp.float32) + b1_eff,
        0.0)
    ref_bf16 = jax.nn.log_softmax(h_ref @ w2_p + b2_p, axis=1)
    assert jnp.allclose(out, ref_bf16, atol=2e-3, rtol=2e-3), \
        float(jnp.max(jnp.abs(out - ref_bf16)))

    # Reference 2: full-f32 PyTorch-semantics head (loose tol for the bf16 path;
    # pooling over bf16-rounded features is the documented semantic deviation).
    pooled = jnp.max(features_f32, axis=1)
    bn = (pooled - running_mean) * jax.lax.rsqrt(running_var + eps) * gamma + beta
    h32 = jnp.maximum(bn @ w1 + b1, 0.0)
    ref_f32 = jax.nn.log_softmax(h32 @ w2 + b2, axis=1)
    assert jnp.allclose(out, ref_f32, atol=5e-2, rtol=5e-2), \
        float(jnp.max(jnp.abs(out - ref_f32)))

    print("KERNEL_OK")
</pallas_src>

<mosaic_0001>
module attributes {stable_mosaic.version = 11 : i64} {
  func.func @_head_kernel(%arg0: i32, %arg1: i32, %arg2: memref<8x64x1536xbf16, #tpu.memory_space<vmem>>, %arg3: memref<1536x256xbf16, #tpu.memory_space<vmem>>, %arg4: memref<1x256xf32, #tpu.memory_space<vmem>>, %arg5: memref<256x2xf32, #tpu.memory_space<vmem>>, %arg6: memref<1x2xf32, #tpu.memory_space<vmem>>, %arg7: memref<8x2xf32, #tpu.memory_space<vmem>>, %arg8: memref<8x1536xf32, #tpu.memory_space<vmem>>) attributes {dimension_semantics = [#tpu.dimension_semantics<parallel>, #tpu.dimension_semantics<arbitrary>], iteration_bounds = array<i64: 2, 1>, scalar_prefetch = 0 : i64, scratch_operands = 1 : i64, tpu.core_type = #tpu.core_type<tc>, window_params = [{transform_indices = @transform_0, window_bounds = array<i64: 8, 64, 1536>}, {pipeline_mode = #tpu.pipeline_mode<synchronous>, transform_indices = @transform_1, window_bounds = array<i64: 1536, 256>}, {pipeline_mode = #tpu.pipeline_mode<synchronous>, transform_indices = @transform_2, window_bounds = array<i64: 1, 256>}, {pipeline_mode = #tpu.pipeline_mode<synchronous>, transform_indices = @transform_3, window_bounds = array<i64: 256, 2>}, {pipeline_mode = #tpu.pipeline_mode<synchronous>, transform_indices = @transform_4, window_bounds = array<i64: 1, 2>}, {transform_indices = @transform_5, window_bounds = array<i64: 8, 2>}]} {
    %c0_i32 = arith.constant 0 : i32
    %0 = arith.cmpi eq, %arg1, %c0_i32 : i32
    %1 = arith.extui %0 : i1 to i32
    %c0_i32_0 = arith.constant 0 : i32
    %2 = arith.cmpi ne, %1, %c0_i32_0 : i32
    scf.if %2 {
      %cst_9 = arith.constant 0xFF800000 : f32
      %12 = vector.broadcast %cst_9 : f32 to vector<8x1536xf32>
      %c0_10 = arith.constant 0 : index
      %c0_11 = arith.constant 0 : index
      %13 = vector.load %arg8[%c0_10, %c0_11] : memref<8x1536xf32, #tpu.memory_space<vmem>>, vector<8x1536xf32>
      tpu.vector_store %arg8[%c0_10, %c0_11], %12 {strides = array<i32>} : memref<8x1536xf32, #tpu.memory_space<vmem>>, vector<8x1536xf32>,
    } else {
    }
    %c0 = arith.constant 0 : index
    %c0_1 = arith.constant 0 : index
    %c0_2 = arith.constant 0 : index
    %3 = vector.load %arg2[%c0, %c0_1, %c0_2] : memref<8x64x1536xbf16, #tpu.memory_space<vmem>>, vector<8x64x1536xbf16>
    %4 = arith.extf %3 : vector<8x64x1536xbf16> to vector<8x64x1536xf32>
    %cst = arith.constant dense<0xFF800000> : vector<8x1536xf32>
    %5 = vector.multi_reduction <maximumf>, %4, %cst [1] : vector<8x64x1536xf32> to vector<8x1536xf32>
    %c0_3 = arith.constant 0 : index
    %c0_4 = arith.constant 0 : index
    %6 = vector.load %arg8[%c0_3, %c0_4] : memref<8x1536xf32, #tpu.memory_space<vmem>>, vector<8x1536xf32>
    %7 = arith.maximumf %6, %5 : vector<8x1536xf32>
    %c0_5 = arith.constant 0 : index
    %c0_6 = arith.constant 0 : index
    %8 = vector.load %arg8[%c0_5, %c0_6] : memref<8x1536xf32, #tpu.memory_space<vmem>>, vector<8x1536xf32>
    tpu.vector_store %arg8[%c0_5, %c0_6], %7 {strides = array<i32>} : memref<8x1536xf32, #tpu.memory_space<vmem>>, vector<8x1536xf32>,
    %c0_i32_7 = arith.constant 0 : i32
    %9 = arith.cmpi eq, %arg1, %c0_i32_7 : i32
    %10 = arith.extui %9 : i1 to i32
    %c0_i32_8 = arith.constant 0 : i32
    %11 = arith.cmpi ne, %10, %c0_i32_8 : i32
    scf.if %11 {
      %c0_9 = arith.constant 0 : index
      %c0_10 = arith.constant 0 : index
      %12 = vector.load %arg8[%c0_9, %c0_10] : memref<8x1536xf32, #tpu.memory_space<vmem>>, vector<8x1536xf32>
      %13 = arith.truncf %12 : vector<8x1536xf32> to vector<8x1536xbf16>
      %c0_11 = arith.constant 0 : index
      %c0_12 = arith.constant 0 : index
      %14 = vector.load %arg3[%c0_11, %c0_12] : memref<1536x256xbf16, #tpu.memory_space<vmem>>, vector<1536x256xbf16>
      %cst_13 = arith.constant dense<0.000000e+00> : vector<8x256xf32>
      %15 = tpu.matmul %13, %14, %cst_13 {dimension_numbers = #tpu.dot_dimension_numbers<[1], [0], [0], [1], [0, 0, 1, 1], [], []>} : vector<8x1536xbf16>, vector<1536x256xbf16>, vector<8x256xf32> -> vector<8x256xf32>
      %c0_14 = arith.constant 0 : index
      %c0_15 = arith.constant 0 : index
      %16 = vector.load %arg4[%c0_14, %c0_15] : memref<1x256xf32, #tpu.memory_space<vmem>>, vector<1x256xf32>
      %17 = vector.broadcast %16 : vector<1x256xf32> to vector<8x256xf32>
      %18 = arith.addf %15, %17 : vector<8x256xf32>
      %cst_16 = arith.constant 0.000000e+00 : f32
      %19 = vector.broadcast %cst_16 : f32 to vector<8x256xf32>
      %20 = arith.maximumf %18, %19 : vector<8x256xf32>
      %c0_17 = arith.constant 0 : index
      %c0_18 = arith.constant 0 : index
      %21 = vector.load %arg5[%c0_17, %c0_18] : memref<256x2xf32, #tpu.memory_space<vmem>>, vector<256x2xf32>
      %cst_19 = arith.constant dense<0.000000e+00> : vector<8x2xf32>
      %22 = tpu.matmul %20, %21, %cst_19 {dimension_numbers = #tpu.dot_dimension_numbers<[1], [0], [0], [1], [0, 0, 1, 1], [], []>} : vector<8x256xf32>, vector<256x2xf32>, vector<8x2xf32> -> vector<8x2xf32>
      %c0_20 = arith.constant 0 : index
      %c0_21 = arith.constant 0 : index
      %23 = vector.load %arg6[%c0_20, %c0_21] : memref<1x2xf32, #tpu.memory_space<vmem>>, vector<1x2xf32>
      %24 = vector.broadcast %23 : vector<1x2xf32> to vector<8x2xf32>
      %25 = arith.addf %22, %24 : vector<8x2xf32>
      %cst_22 = arith.constant dense<0xFF800000> : vector<8xf32>
      %26 = vector.multi_reduction <maximumf>, %25, %cst_22 [1] : vector<8x2xf32> to vector<8xf32>
      %27 = vector.shape_cast %26 : vector<8xf32> to vector<8x1xf32>
      %28 = vector.broadcast %27 : vector<8x1xf32> to vector<8x2xf32>
      %29 = arith.subf %25, %28 : vector<8x2xf32>
      %30 = math.exp %29 : vector<8x2xf32>
      %cst_23 = arith.constant dense<0.000000e+00> : vector<8xf32>
      %31 = vector.multi_reduction <add>, %30, %cst_23 [1] : vector<8x2xf32> to vector<8xf32>
      %32 = vector.shape_cast %31 : vector<8xf32> to vector<8x1xf32>
      %33 = math.log %32 : vector<8x1xf32>
      %34 = vector.broadcast %33 : vector<8x1xf32> to vector<8x2xf32>
      %35 = arith.subf %29, %34 : vector<8x2xf32>
      %c0_24 = arith.constant 0 : index
      %c0_25 = arith.constant 0 : index
      %36 = vector.load %arg7[%c0_24, %c0_25] : memref<8x2xf32, #tpu.memory_space<vmem>>, vector<8x2xf32>
      tpu.vector_store %arg7[%c0_24, %c0_25], %35 {strides = array<i32>} : memref<8x2xf32, #tpu.memory_space<vmem>>, vector<8x2xf32>,
    } else {
    }
    return
  }
  func.func @transform_0(%arg0: i32, %arg1: i32) -> (i32, i32, i32) {
    %c0_i32 = arith.constant 0 : i32
    %c0_i32_0 = arith.constant 0 : i32
    return %arg0, %arg1, %c0_i32 : i32, i32, i32
  }
  func.func @transform_1(%arg0: i32, %arg1: i32) -> (i32, i32) {
    %c0_i32 = arith.constant 0 : i32
    %c0_i32_0 = arith.constant 0 : i32
    %c0_i32_1 = arith.constant 0 : i32
    return %c0_i32, %c0_i32_0 : i32, i32
  }
  func.func @transform_2(%arg0: i32, %arg1: i32) -> (i32, i32) {
    %c0_i32 = arith.constant 0 : i32
    %c0_i32_0 = arith.constant 0 : i32
    %c0_i32_1 = arith.constant 0 : i32
    return %c0_i32, %c0_i32_0 : i32, i32
  }
  func.func @transform_3(%arg0: i32, %arg1: i32) -> (i32, i32) {
    %c0_i32 = arith.constant 0 : i32
    %c0_i32_0 = arith.constant 0 : i32
    %c0_i32_1 = arith.constant 0 : i32
    return %c0_i32, %c0_i32_0 : i32, i32
  }
  func.func @transform_4(%arg0: i32, %arg1: i32) -> (i32, i32) {
    %c0_i32 = arith.constant 0 : i32
    %c0_i32_0 = arith.constant 0 : i32
    %c0_i32_1 = arith.constant 0 : i32
    return %c0_i32, %c0_i32_0 : i32, i32
  }
  func.func @transform_5(%arg0: i32, %arg1: i32) -> (i32, i32) {
    %c0_i32 = arith.constant 0 : i32
    %c0_i32_0 = arith.constant 0 : i32
    return %arg0, %c0_i32 : i32, i32
  }
}

</mosaic_0001>

<bundles_post_ra>
// kernel: tpu_custom_call.1
= control target key start
LH: loop header
LB: loop body
LE: loop exit
PB: predicated region body
PF: predicated region fallthrough
CT: control target
= control target key end

     0   :  { %10 = vsyncpa [#allocation4], 0  ;;  %s9267_s0 = inlined_call_operand.hbm [shape: bf16[16,64,1536], index: 0, kind: input, shape index: {}]   ;;  %s9268_s1 = inlined_call_operand.hbm [shape: bf16[1536,256], index: 1, kind: input, shape index: {}]   ;;  %s9269_s2 = inlined_call_operand.hbm [shape: f32[1,256], index: 2, kind: input, shape index: {}]   ;;  %s9270_s3 = inlined_call_operand.vmem [shape: f32[256,2], index: 3, kind: input, shape index: {}]   ;;  %s9271_s4 = inlined_call_operand.hbm [shape: f32[1,2], index: 4, kind: input, shape index: {}]   ;;  %s9272_s5 = inlined_call_operand.vmem [shape: f32[16,2], index: 5, kind: output, shape index: {}]  }
   0x1   :  { %12 = vsyncpa [#allocation4 + $0x1], 0 }
   0x2   :  { %13 = vsyncpa [#allocation6], 0 }
   0x3   :  { %14 = vsyncpa [#allocation9], 0  ;;  %s5515_s18 = smov 0   ;;  %s5517_s19 = smov 0  }
   0x4   :  { %s5519_s20 = smov 0   ;;  %s5521_s21 = smov 0  }
   0x5   :  { %s5523_s22 = smov 0   ;;  %s5525_s23 = smov 0  }
   0x6 LB: > { %s4621_s24 = sadd.s32 4294967295, %s5475_s23   ;;  %p54_p0 = scmp.ne.s32.totalorder %s5459_s19, %s5455_s18  ;;  %s5475_s23 = sphi %s5525_s23, %s20_s23   ;;  %s5471_s22 = sphi %s5523_s22, %s11072_s22   ;;  %s5467_s21 = sphi %s5521_s21, %s11071_s21   ;;  %s5463_s20 = sphi %s5519_s20, %s11070_s20   ;;  %s5459_s19 = sphi %s5517_s19, %s11069_s19   ;;  %s5455_s18 = sphi %s5515_s18, %s11068_s18  }
   0x7   : > { %p5545_p1 = scmp.eq.s32.totalorder %s4621_s24, 0  ;;  %p4623_p2 = scmp.ge.s32.totalorder %s5475_s23, 1 }
   0x8   : > { %p175_p3 = scmp.lt.s32.totalorder %s5475_s23, 3  ;;  %s5477_s28 = smov [#allocation5]  }
   0x9   : > { %s9665_s25 = scalar_select %p5545_p1, 1, 0 }
   0xa   : > { %p5553_p4 = por %p5545_p1, %p54_p0  ;;  %p5557_p5 = pnand %p4623_p2, %p175_p3 }
   0xb   : > { %s187_s29 = sshll.u32 %s5477_s28, 4  ;;  %s5478_s6 = smov [#allocation7]   ;;  %s5561_s29 = int_to_ptr.vmem [resolvable:$true] %s187_s29 }
   0xc   : > { %s9666_s26 = scalar_select %p5553_p4, 1, 0 }
   0xd   : > { %s9667_s27 = scalar_select %p5557_p5, 1, 0 }
   0xe   : > { %p4935_p6 = pneg %p5557_p5  ;;  %s201_s7 = sshll.u32 %s5478_s6, 4  ;;  %s5571_s7 = int_to_ptr.vmem [resolvable:$true] %s201_s7 }
   0xf   : > { %s5479_s8 = smov [#allocation8]   ;;  %s5303_s12 = scalar_lea.hbm %s9268_s1, 24576 }
  0x10   : > { %p5567_p7 = pnand %p4935_p6, %p5545_p1  ;;  %s5573_s9 = sshll.u32 %s5479_s8, 4  ;;  %s216_s9 = int_to_ptr.vmem [resolvable:$true] %s5573_s9 }
  0x11   : > { %p5304_p8 = scmp.ne.s32.totalorder %s9268_s1, %s5303_s12  ;;  %p5310_p12 = scmp.lt.u32.totalorder %s5303_s12, %s9268_s1 }
  0x12   : > { %p5583_p9 = pneg %p5567_p7 }
  0x14   : > { %p5306_p10 = pnand %p5583_p9, %p5304_p8 }
  0x16   : > { %p5307_p11 = pneg %p5306_p10 }
  0x18   : > { %p5312_p13 = pnand %p5310_p12, %p5307_p11 }
  0x1a   : > { %5315 = shalt.err (!%p5312_p13)
}
  0x1b   : > { %s5316_s18 = scalar_lea.vmem %s5561_s29, 24576  ;;  %p5324_p6 = scmp.lt.s32.totalorder %s5561_s29, %s5561_s29 }
  0x1c   : > { %p5317_p0 = scmp.ne.s32.totalorder %s5561_s29, %s5316_s18  ;;  %p5325_p1 = scmp.lt.s32.totalorder %s5316_s18, %s5316_s18 }
  0x1e   : > { %p5319_p2 = pnand %p5317_p0, %p5583_p9  ;;  %p5326_p8 = por %p5325_p1, %p5324_p6 }
  0x20   : > { %p5320_p3 = pneg %p5319_p2 }
  0x22   : > { %p5327_p10 = pnand %p5326_p8, %p5320_p3 }
  0x24   : > { %5330 = shalt.err (!%p5327_p10)
}
  0x25   : > { %s5480_s24 = smov 128   ;;  %s5481_s28 = smov 8  }
  0x26   : > { %4938 = dma.hbm_to_vmem [thread:$0]  (!%p5567_p7), %s9268_s1, 24576, %s5561_s29, [#allocation6], %s5480_s24, %s5480_s24, %s5481_s28  }
  0x27   : > { %s5331_s12 = scalar_lea.hbm %s9269_s2, 32 }
  0x28   : > { %p5332_p1 = scmp.ne.s32.totalorder %s9269_s2, %s5331_s12  ;;  %p5338_p13 = scmp.lt.u32.totalorder %s5331_s12, %s9269_s2 }
  0x2a   : > { %p5334_p11 = pnand %p5332_p1, %p5583_p9 }
  0x2c   : > { %p5335_p12 = pneg %p5334_p11 }
  0x2e   : > { %p5340_p0 = pnand %p5338_p13, %p5335_p12 }
  0x30   : > { %5343 = shalt.err (!%p5340_p0)
}
  0x31   : > { %s5344_s29 = scalar_lea.vmem %s5571_s7, 32  ;;  %p5352_p8 = scmp.lt.s32.totalorder %s5571_s7, %s5571_s7 }
  0x32   : > { %p5345_p2 = scmp.ne.s32.totalorder %s5571_s7, %s5344_s29  ;;  %p5353_p10 = scmp.lt.s32.totalorder %s5344_s29, %s5344_s29 }
  0x34   : > { %p5347_p3 = pnand %p5345_p2, %p5583_p9  ;;  %p5354_p1 = por %p5353_p10, %p5352_p8 }
  0x36   : > { %p5348_p6 = pneg %p5347_p3 }
  0x38   : > { %p5355_p11 = pnand %p5354_p1, %p5348_p6 }
  0x3a   : > { %5358 = shalt.err (!%p5355_p11)
}
  0x3b   : > { %4941 = dma.hbm_to_vmem [thread:$0]  (!%p5567_p7), %s9269_s2, 32, %s5571_s7, [#allocation6]  }
  0x3c   : > { %s5359_s8 = scalar_lea.hbm %s9271_s4, 16 }
  0x3d   : > { %p5360_p12 = scmp.ne.s32.totalorder %s9271_s4, %s5359_s8  ;;  %p5366_p2 = scmp.lt.u32.totalorder %s5359_s8, %s9271_s4 }
  0x3f   : > { %p5362_p13 = pnand %p5360_p12, %p5583_p9 }
  0x41   : > { %p5363_p0 = pneg %p5362_p13 }
  0x43   : > { %p5368_p3 = pnand %p5366_p2, %p5363_p0 }
  0x45   : > { %5371 = shalt.err (!%p5368_p3)
}
  0x46   : > { %s5372_s14 = scalar_lea.vmem %s216_s9, 16  ;;  %s5379_s7 = scalar_lea.vmem %s216_s9, 32 }
  0x47   : > { %p5373_p6 = scmp.ne.s32.totalorder %s216_s9, %s5372_s14  ;;  %p5380_p1 = scmp.lt.s32.totalorder %s216_s9, %s216_s9 }
  0x48   : > { %p5381_p11 = scmp.lt.s32.totalorder %s5379_s7, %s5372_s14 }
  0x49   : > { %p5375_p8 = pnand %p5373_p6, %p5583_p9 }
  0x4a   : > { %p5382_p4 = por %p5381_p11, %p5380_p1 }
  0x4b   : > { %p5376_p10 = pneg %p5375_p8 }
  0x4d   : > { %p5383_p5 = pnand %p5382_p4, %p5376_p10 }
  0x4f   : > { %5386 = shalt.err (!%p5383_p5)
}
  0x50   : > { %4944 = dma.hbm_to_vmem [thread:$0]  (!%p5567_p7), %s9271_s4, 16, %s216_s9, [#allocation9]  }
  0x51   : > { %s41_s15 = sadd.s32 1, %s5463_s20  ;;  %s32_s29 = sadd.s32 1, %s5471_s22 }
  0x52   : > { %p48_p4 = scmp.ne.s32.totalorder %s5463_s20, %s5459_s19  ;;  %p34_p5 = scmp.ge.s32.totalorder %s32_s29, 2 }
  0x53   : > { %p49_p9 = scmp.eq.s32.totalorder %s5475_s23, 0  ;;  %p4952_p12 = scmp.lt.s32.totalorder %s5475_s23, 2 }
  0x54   : > { %s226_s30 = sand.u32 1, %s5463_s20   ;;  %s11074_s29 = smov (%p34_p5, %s32_s29), 0 }
  0x55   : > { %p50_p13 = por %p49_p9, %p48_p4  ;;  %s36_s18 = ssub.s32 %s5471_s22, %s11074_s29 }
  0x56   : > { %s4918_s24 = smul.u32 3072, %s226_s30  ;;  %p39_p0 = scmp.eq.s32.totalorder %s36_s18, 0 }
  0x57   : > { %s4919_s28 = smul.u32 49152, %s5471_s22  ;;  %p5658_p2 = pnand %p4952_p12, %p50_p13 }
  0x58   : > { %s5663_s9 = scalar_select %p39_p0, %s5463_s20, %s41_s15  }
  0x59   : > { %s5668_s11 = scalar_lea.hbm %s9267_s0, %s4919_s28  ;;  %s230_s12 = scalar_lea.vmem [#allocation3], %s4918_s24 }
  0x5a   : > { %s241_s13 = sshll.u32 %s230_s12, 4  ;;  %s5672_s14 = scalar_lea.sflag [#allocation4], %s226_s30  ;;  %s5670_s13 = int_to_ptr.vmem [resolvable:$true] %s241_s13 }
  0x5b   : > { %s5387_s7 = scalar_lea.hbm %s5668_s11, 49152  ;;  %p5389_p3 = pneg %p5658_p2 }
  0x5c   : > { %p5388_p7 = scmp.ne.s32.totalorder %s5668_s11, %s5387_s7  ;;  %s5392_s15 = scalar_lea.hbm %s9267_s0, 98304 }
  0x5d   : > { %p5393_p10 = scmp.lt.u32.totalorder %s5668_s11, %s9267_s0  ;;  %p5394_p1 = scmp.lt.u32.totalorder %s5392_s15, %s5387_s7 }
  0x5e   : > { %p5390_p6 = pnand %p5389_p3, %p5388_p7  ;;  %p5396_p4 = scmp.lt.u32.totalorder %s5387_s7, %s5668_s11 }
  0x5f   : > { %p5395_p11 = por %p5394_p1, %p5393_p10 }
  0x60   : > { %p5391_p8 = pneg %p5390_p6 }
  0x61   : > { %p5397_p5 = por %p5396_p4, %p5395_p11 }
  0x63   : > { %p5398_p9 = pnand %p5397_p5, %p5391_p8 }
  0x65   : > { %5401 = shalt.err (!%p5398_p9)
}
  0x66   : > { %s5402_s30 = scalar_lea.vmem %s5670_s13, 49152  ;;  %s5482_s24 = smov [#allocation3]  }
  0x67   : > { %p5403_p12 = scmp.ne.s32.totalorder %s5670_s13, %s5402_s30  ;;  %s5407_s8 = sshll.u32 %s5482_s24, 4  ;;  %s5408_s8 = int_to_ptr.vmem [resolvable:$false] %s5407_s8 }
  0x68   : > { %s5409_s10 = scalar_lea.vmem %s5408_s8, 98304  ;;  %p5410_p7 = scmp.lt.s32.totalorder %s5670_s13, %s5408_s8 }
  0x69   : > { %p5405_p13 = pnand %p5403_p12, %p5389_p3  ;;  %p5411_p6 = scmp.lt.s32.totalorder %s5409_s10, %s5402_s30 }
  0x6b   : > { %p5406_p0 = pneg %p5405_p13  ;;  %p5412_p10 = por %p5411_p6, %p5410_p7 }
  0x6d   : > { %p5413_p1 = pnand %p5412_p10, %p5406_p0 }
  0x6f   : > { %5416 = shalt.err (!%p5413_p1)
}
  0x70   : > { %s5483_s12 = smov 768   ;;  %s5484_s7 = smov 48  }
  0x71   : > { %4948 = dma.hbm_to_vmem [thread:$0]  (!%p5658_p2), %s5668_s11, 49152, %s5670_s13, %s5672_s14, %s5483_s12, %s5483_s12, %s5484_s7  }
  0x72   : > { %p9671_p3 = scmp.ne.s32.totalorder %s9667_s27, 0 }
  0x74   : > { %253 = sbr.rel (%p9671_p3) target bundleno = 1541 (0x605), region = 40 }
  0x7b   : > { %s255_s16 = sand.u32 1, %s5459_s19   ;;  %p9672_p8 = scmp.ne.s32.totalorder %s9666_s26, 0 }
  0x7c   : > { %s4920_s17 = smul.u32 3072, %s255_s16  ;;  %s256_s15 = scalar_lea.sflag [#allocation4], %s255_s16 }
  0x7e   : > { %s5703_s18 = scalar_lea.vmem [#allocation3], %s4920_s17 }
  0x7f   : > { %5442 = dma.done.wait (%p9672_p8), %s256_s15, 49152  }
  0x80   : > { %5444 = vsyncadd (%p9672_p8), %s256_s15, 4294918144  ;;  %p9673_p11 = scmp.ne.s32.totalorder %s9665_s25, 0 }
  0x82   : > { %5446 = dma.done.wait (%p9673_p11), [#allocation6], 24608  }
  0x83   : > { %5448 = vsyncadd (%p9673_p11), [#allocation6], 4294942688 }
  0x84   : > { %5450 = dma.done.wait (%p9673_p11), [#allocation9], 16  }
  0x85   : > { %5452 = vsyncadd (%p9673_p11), [#allocation9], 4294967280  ;;  %v5011_v0 = vld [vmem:[#allocation5 + $0x4] ss:$8 sps:$4 sm:$0xff]   ;;  %v5015_v2 = vld [vmem:[#allocation5] ss:$8 sps:$4 sm:$0xff]  }
  0x86   : > { %v5013_v1 = vld [vmem:[#allocation5 + $0x304] ss:$8 sps:$4 sm:$0xff]   ;;  %4145 = vmatprep.subr.bf16.mxu1 %v5011_v0  ;;  %v5016_v3 = vld [vmem:[#allocation5 + $0x300] ss:$8 sps:$4 sm:$0xff]   ;;  %v5017_v4 = vld [vmem:[#allocation5 + $0x14] ss:$8 sps:$4 sm:$0xff]  }
  0x87   : > { %4268 = vmatprep.subr.bf16.mxu0 %v5013_v1  ;;  %4146 = vmatpush1.bf16.msra.mxu1 %v5015_v2  ;;  %v5019_v5 = vld [vmem:[#allocation5 + $0x314] ss:$8 sps:$4 sm:$0xff]   ;;  %v5021_v6 = vld [vmem:[#allocation5 + $0x10] ss:$8 sps:$4 sm:$0xff]   ;;  %v5023_v8 = vld [vmem:[#allocation5 + $0x24] ss:$8 sps:$4 sm:$0xff]  }
  0x88   : > { %4269 = vmatpush1.bf16.msra.mxu0 %v5016_v3  ;;  %4147 = vmatprep.subr.bf16.mxu1 %v5017_v4  ;;  %v5022_v7 = vld [vmem:[#allocation5 + $0x310] ss:$8 sps:$4 sm:$0xff]   ;;  %v5025_v9 = vld [vmem:[#allocation5 + $0x324] ss:$8 sps:$4 sm:$0xff]   ;;  %v5027_v10 = vld [vmem:[#allocation5 + $0x20] ss:$8 sps:$4 sm:$0xff]  }
  0x89   : > { %4270 = vmatprep.subr.bf16.mxu0 %v5019_v5  ;;  %v5028_v11 = vld [vmem:[#allocation5 + $0x320] ss:$8 sps:$4 sm:$0xff]   ;;  %v5029_v12 = vld [vmem:[#allocation5 + $0x34] ss:$8 sps:$4 sm:$0xff]   ;;  %v5033_v14 = vld [vmem:[#allocation5 + $0x30] ss:$8 sps:$4 sm:$0xff]  }
  0x8a   : > { %v5031_v13 = vld [vmem:[#allocation5 + $0x334] ss:$8 sps:$4 sm:$0xff]   ;;  %v5034_v15 = vld [vmem:[#allocation5 + $0x330] ss:$8 sps:$4 sm:$0xff]   ;;  %v5035_v16 = vld [vmem:[#allocation5 + $0x44] ss:$8 sps:$4 sm:$0xff]  }
  0x8b   : > { %4148 = vmatpush1.bf16.msra.mxu1 %v5021_v6  ;;  %v5037_v17 = vld [vmem:[#allocation5 + $0x344] ss:$8 sps:$4 sm:$0xff]   ;;  %v5039_v18 = vld [vmem:[#allocation5 + $0x40] ss:$8 sps:$4 sm:$0xff]   ;;  %v5041_v20 = vld [vmem:[#allocation5 + $0x54] ss:$8 sps:$4 sm:$0xff]  }
  0x8c   : > { %4271 = vmatpush1.bf16.msra.mxu0 %v5022_v7  ;;  %4149 = vmatprep.subr.bf16.mxu1 %v5023_v8  ;;  %v5040_v19 = vld [vmem:[#allocation5 + $0x340] ss:$8 sps:$4 sm:$0xff]   ;;  %v5043_v21 = vld [vmem:[#allocation5 + $0x354] ss:$8 sps:$4 sm:$0xff]   ;;  %v5045_v22 = vld [vmem:[#allocation5 + $0x50] ss:$8 sps:$4 sm:$0xff]  }
  0x8d   : > { %4272 = vmatprep.subr.bf16.mxu0 %v5025_v9  ;;  %v5046_v23 = vld [vmem:[#allocation5 + $0x350] ss:$8 sps:$4 sm:$0xff]   ;;  %v5047_v24 = vld [vmem:[#allocation5 + $0x64] ss:$8 sps:$4 sm:$0xff]   ;;  %v5051_v26 = vld [vmem:[#allocation5 + $0x60] ss:$8 sps:$4 sm:$0xff]  }
  0x8e   : > { %v5049_v25 = vld [vmem:[#allocation5 + $0x364] ss:$8 sps:$4 sm:$0xff]   ;;  %v5052_v27 = vld [vmem:[#allocation5 + $0x360] ss:$8 sps:$4 sm:$0xff]   ;;  %v5053_v28 = vld [vmem:[#allocation5 + $0x74] ss:$8 sps:$4 sm:$0xff]  }
  0x8f   : > { %4150 = vmatpush1.bf16.msra.mxu1 %v5027_v10  ;;  %v5055_v29 = vld [vmem:[#allocation5 + $0x374] ss:$8 sps:$4 sm:$0xff]   ;;  %v5057_v30 = vld [vmem:[#allocation5 + $0x70] ss:$8 sps:$4 sm:$0xff]   ;;  %v5059_v32 = vld [vmem:[#allocation5 + $0x84] ss:$8 sps:$4 sm:$0xff]  }
  0x90   : > { %4273 = vmatpush1.bf16.msra.mxu0 %v5028_v11  ;;  %4151 = vmatprep.subr.bf16.mxu1 %v5029_v12  ;;  %v5058_v31 = vld [vmem:[#allocation5 + $0x370] ss:$8 sps:$4 sm:$0xff]   ;;  %v5061_v33 = vld [vmem:[#allocation5 + $0x384] ss:$8 sps:$4 sm:$0xff]   ;;  %v5063_v34 = vld [vmem:[#allocation5 + $0x80] ss:$8 sps:$4 sm:$0xff]  }
  0x91   : > { %4274 = vmatprep.subr.bf16.mxu0 %v5031_v13  ;;  %v5064_v35 = vld [vmem:[#allocation5 + $0x380] ss:$8 sps:$4 sm:$0xff]   ;;  %v5065_v36 = vld [vmem:[#allocation5 + $0x94] ss:$8 sps:$4 sm:$0xff]   ;;  %v5069_v38 = vld [vmem:[#allocation5 + $0x90] ss:$8 sps:$4 sm:$0xff]  }
  0x92   : > { %v5067_v37 = vld [vmem:[#allocation5 + $0x394] ss:$8 sps:$4 sm:$0xff]   ;;  %v5070_v39 = vld [vmem:[#allocation5 + $0x390] ss:$8 sps:$4 sm:$0xff]   ;;  %v5071_v40 = vld [vmem:[#allocation5 + $0xa4] ss:$8 sps:$4 sm:$0xff]  }
  0x93   : > { %4152 = vmatpush1.bf16.msra.mxu1 %v5033_v14  ;;  %v5073_v41 = vld [vmem:[#allocation5 + $0x3a4] ss:$8 sps:$4 sm:$0xff]   ;;  %v5075_v42 = vld [vmem:[#allocation5 + $0xa0] ss:$8 sps:$4 sm:$0xff]   ;;  %v5077_v44 = vld [vmem:[#allocation5 + $0xb4] ss:$8 sps:$4 sm:$0xff]  }
  0x94   : > { %4275 = vmatpush1.bf16.msra.mxu0 %v5034_v15  ;;  %4153 = vmatprep.subr.bf16.mxu1 %v5035_v16  ;;  %v5076_v43 = vld [vmem:[#allocation5 + $0x3a0] ss:$8 sps:$4 sm:$0xff]   ;;  %v5079_v45 = vld [vmem:[#allocation5 + $0x3b4] ss:$8 sps:$4 sm:$0xff]   ;;  %v5081_v46 = vld [vmem:[#allocation5 + $0xb0] ss:$8 sps:$4 sm:$0xff]  }
  0x95   : > { %4276 = vmatprep.subr.bf16.mxu0 %v5037_v17  ;;  %v5082_v47 = vld [vmem:[#allocation5 + $0x3b0] ss:$8 sps:$4 sm:$0xff]   ;;  %v5718_v48 = vld [vmem:[%s5703_s18] sm:$0xff]  ;;  %v5101_v12 = vld [vmem:[#allocation5 + $0xf4] ss:$8 sps:$4 sm:$0xff]   ;;  %vm2827_vm0 = vcmask 1041409  }
  0x96   : > { %9674 = vst [vmem:[#allocation13_spill] sm:$0xff] %v5718_v48  ;;  %v5083_v49 = vld [vmem:[#allocation5 + $0xc4] ss:$8 sps:$4 sm:$0xff]   ;;  %v5721_v51 = vld [vmem:[%s5703_s18 + $0x30] sm:$0xff]  ;;  %v5087_v6 = vld [vmem:[#allocation5 + $0xc0] ss:$8 sps:$4 sm:$0xff]  }
  0x97   : > { %4154 = vmatpush1.bf16.msra.mxu1 %v5039_v18  ;;  %v5085_v50 = vld [vmem:[#allocation5 + $0x3c4] ss:$8 sps:$4 sm:$0xff]   ;;  %9675 = vst [vmem:[#allocation14_spill] sm:$0xff] %v5721_v51  ;;  %v5727_v53 = vld [vmem:[%s5703_s18 + $0x90] sm:$0xff]  ;;  %v5088_v14 = vld [vmem:[#allocation5 + $0x3c0] ss:$8 sps:$4 sm:$0xff]  }
  0x98   : > { %4277 = vmatpush1.bf16.msra.mxu0 %v5040_v19  ;;  %4155 = vmatprep.subr.bf16.mxu1 %v5041_v20  ;;  %v5724_v52 = vld [vmem:[%s5703_s18 + $0x60] sm:$0xff]  ;;  %9677 = vst [vmem:[#allocation16_spill] sm:$0xff] %v5727_v53  ;;  %v5735_v57 = vld [vmem:[%s5703_s18 + $0xf0] sm:$0xff]  ;;  %vm2829_vm1 = vcmask 1042434   ;;  %vm2831_vm2 = vcmask 1043459   ;;  %vm2833_vm3 = vcmask 1044484  }
  0x99   : > { %4278 = vmatprep.subr.bf16.mxu0 %v5043_v21  ;;  %9676 = vst [vmem:[#allocation15_spill] sm:$0xff] %v5724_v52  ;;  %v5732_v56 = vld [vmem:[%s5703_s18 + $0xc0] sm:$0xff]  ;;  %9679 = vst [vmem:[#allocation18_spill] sm:$0xff] %v5735_v57  ;;  %v5745_v63 = vld [vmem:[%s5703_s18 + $0x150] sm:$0xff]  ;;  %vm2835_vm4 = vcmask 1045509   ;;  %vm2837_vm5 = vcmask 1046534  }
  0x9a   : > { %9678 = vst [vmem:[#allocation17_spill] sm:$0xff] %v5732_v56  ;;  %v5738_v58 = vld [vmem:[%s5703_s18 + $0x120] sm:$0xff]  ;;  %9681 = vst [vmem:[#allocation20_spill] sm:$0xff] %v5745_v63  ;;  %v5751_v1 = vld [vmem:[%s5703_s18 + $0x1b0] sm:$0xff]  ;;  %vm2839_vm6 = vcmask 1047559   ;;  %vm4502_vm7 = vcmask 15360  }
  0x9b   : > { %4156 = vmatpush1.bf16.msra.mxu1 %v5045_v22  ;;  %9680 = vst [vmem:[#allocation19_spill] sm:$0xff] %v5738_v58  ;;  %v5748_v0 = vld [vmem:[%s5703_s18 + $0x180] sm:$0xff]  ;;  %9683 = vst [vmem:[#allocation22_spill] sm:$0xff] %v5751_v1  ;;  %v5761_v8 = vld [vmem:[%s5703_s18 + $0x210] sm:$0xff]  ;;  %p299_p2 = scmp.lt.s32.totalorder %s5467_s21, 1 }
  0x9c   : > { %4279 = vmatpush1.bf16.msra.mxu0 %v5046_v23  ;;  %4157 = vmatprep.subr.bf16.mxu1 %v5047_v24  ;;  %9682 = vst [vmem:[#allocation21_spill] sm:$0xff] %v5748_v0  ;;  %v5758_v7 = vld [vmem:[%s5703_s18 + $0x1e0] sm:$0xff]  ;;  %9685 = vst [vmem:[#allocation24_spill] sm:$0xff] %v5761_v8  ;;  %v5771_v15 = vld [vmem:[%s5703_s18 + $0x270] sm:$0xff] }
  0x9d   : > { %4280 = vmatprep.subr.bf16.mxu0 %v5049_v25  ;;  %9684 = vst [vmem:[#allocation23_spill] sm:$0xff] %v5758_v7  ;;  %v5764_v9 = vld [vmem:[%s5703_s18 + $0x240] sm:$0xff]  ;;  %9687 = vst [vmem:[#allocation26_spill] sm:$0xff] %v5771_v15  ;;  %v5089_v21 = vld [vmem:[#allocation5 + $0xd4] ss:$8 sps:$4 sm:$0xff]   ;;  %s11076_s21 = smov (!%p299_p2, %s5467_s21), 1 }
  0x9e   : > { %9686 = vst [vmem:[#allocation25_spill] sm:$0xff] %v5764_v9  ;;  %v5774_v16 = vld [vmem:[%s5703_s18 + $0x2a0] sm:$0xff]  ;;  %v5781_v22 = vld [vmem:[%s5703_s18 + $0x2d0] sm:$0xff]  ;;  %s4635_s8 = sshll.u32 %s11076_s21, 3 }
  0x9f   : > { %4158 = vmatpush1.bf16.msra.mxu1 %v5051_v26  ;;  %9688 = vst [vmem:[#allocation27_spill] sm:$0xff] %v5774_v16  ;;  %9689 = vst [vmem:[#allocation28_spill] sm:$0xff] %v5781_v22  ;;  %v5784_v23 = vld [vmem:[%s5703_s18 + $0x300] sm:$0xff]  ;;  %v5821_v17 = vld [vmem:[%s5703_s18 + $0x450] sm:$0xff]  ;;  %s302_s7 = scalar_lea.vmem %s9272_s5, %s4635_s8 }
  0xa0   : > { %4281 = vmatpush1.bf16.msra.mxu0 %v5052_v27  ;;  %4159 = vmatprep.subr.bf16.mxu1 %v5053_v28  ;;  %9690 = vst [vmem:[#allocation29_spill] sm:$0xff] %v5784_v23  ;;  %v5091_v28 = vld [vmem:[#allocation5 + $0x3d4] ss:$8 sps:$4 sm:$0xff]   ;;  %9697 = vst [vmem:[#allocation36_spill] sm:$0xff] %v5821_v17  ;;  %v5100_v19 = vld [vmem:[#allocation5 + $0x3e0] ss:$8 sps:$4 sm:$0xff]  }
  0xa1   : > { %4282 = vmatprep.subr.bf16.mxu0 %v5055_v29  ;;  %v5791_v29 = vld [vmem:[%s5703_s18 + $0x330] sm:$0xff]  ;;  %v5854_v2 = vld [vmem:[%s5703_s18 + $0x5a0] sm:$0xff] }
  0xa2   : > { %9691 = vst [vmem:[#allocation30_spill] sm:$0xff] %v5791_v29  ;;  %v5841_v61 = vld [vmem:[%s5703_s18 + $0x510] sm:$0xff]  ;;  %9704 = vst [vmem:[#allocation43_spill] sm:$0xff] %v5854_v2  ;;  %v5864_v4 = vld [vmem:[%s5703_s18 + $0x600] sm:$0xff] }
  0xa3   : > { %4160 = vmatpush1.bf16.msra.mxu1 %v5057_v30  ;;  %v5794_v30 = vld [vmem:[%s5703_s18 + $0x360] sm:$0xff]  ;;  %9701 = vst [vmem:[#allocation40_spill] sm:$0xff] %v5841_v61  ;;  %v5851_v24 = vld [vmem:[%s5703_s18 + $0x570] sm:$0xff]  ;;  %9706 = vst [vmem:[#allocation45_spill] sm:$0xff] %v5864_v4 }
  0xa4   : > { %4283 = vmatpush1.bf16.msra.mxu0 %v5058_v31  ;;  %4161 = vmatprep.subr.bf16.mxu1 %v5059_v32  ;;  %9692 = vst [vmem:[#allocation31_spill] sm:$0xff] %v5794_v30  ;;  %9703 = vst [vmem:[#allocation42_spill] sm:$0xff] %v5851_v24  ;;  %v5861_v18 = vld [vmem:[%s5703_s18 + $0x5d0] sm:$0xff]  ;;  %v5904_v26 = vld [vmem:[%s5703_s18 + $0x780] sm:$0xff]  ;;  %v9743_v31 = vunpack.c.h.bf16 %v5784_v23 }
  0xa5   : > { %4284 = vmatprep.subr.bf16.mxu0 %v5061_v33  ;;  %v5834_v33 = vld [vmem:[%s5703_s18 + $0x4e0] sm:$0xff]  ;;  %9705 = vst [vmem:[#allocation44_spill] sm:$0xff] %v5861_v18  ;;  %v5881_v59 = vld [vmem:[%s5703_s18 + $0x690] sm:$0xff]  ;;  %9714 = vst [vmem:[#allocation53_spill] sm:$0xff] %v5904_v26 }
  0xa6   : > { %9700 = vst [vmem:[#allocation39_spill] sm:$0xff] %v5834_v33  ;;  %9709 = vst [vmem:[#allocation48_spill] sm:$0xff] %v5881_v59  ;;  %v5105_v5 = vld [vmem:[#allocation5 + $0xf0] ss:$8 sps:$4 sm:$0xff]   ;;  %v5924_v32 = vld [vmem:[%s5703_s18 + $0x840] sm:$0xff] }
  0xa7   : > { %4162 = vmatpush1.bf16.msra.mxu1 %v5063_v34  ;;  %v5106_v34 = vld [vmem:[#allocation5 + $0x3f0] ss:$8 sps:$4 sm:$0xff]   ;;  %9718 = vst [vmem:[#allocation57_spill] sm:$0xff] %v5924_v32  ;;  %v5934_v3 = vld [vmem:[%s5703_s18 + $0x8a0] sm:$0xff] }
  0xa8   : > { %4285 = vmatpush1.bf16.msra.mxu0 %v5064_v35  ;;  %4163 = vmatprep.subr.bf16.mxu1 %v5065_v36  ;;  %v5093_v35 = vld [vmem:[#allocation5 + $0xd0] ss:$8 sps:$4 sm:$0xff]   ;;  %9720 = vst [vmem:[#allocation59_spill] sm:$0xff] %v5934_v3  ;;  %v5944_v62 = vld [vmem:[%s5703_s18 + $0x900] sm:$0xff] }
  0xa9   : > { %4286 = vmatprep.subr.bf16.mxu0 %v5067_v37  ;;  %v5801_v36 = vld [vmem:[%s5703_s18 + $0x390] sm:$0xff]  ;;  %v5804_v37 = vld [vmem:[%s5703_s18 + $0x3c0] sm:$0xff]  ;;  %9722 = vst [vmem:[#allocation61_spill] sm:$0xff] %v5944_v62 }
  0xaa   : > { %9693 = vst [vmem:[#allocation32_spill] sm:$0xff] %v5801_v36  ;;  %9694 = vst [vmem:[#allocation33_spill] sm:$0xff] %v5804_v37  ;;  %v5921_v13 = vld [vmem:[%s5703_s18 + $0x810] sm:$0xff]  ;;  %v5964_v54 = vld [vmem:[%s5703_s18 + $0x9c0] sm:$0xff] }
  0xab   : > { %4164 = vmatpush1.bf16.msra.mxu1 %v5069_v38  ;;  %v5099_v38 = vld [vmem:[#allocation5 + $0xe0] ss:$8 sps:$4 sm:$0xff]   ;;  %9717 = vst [vmem:[#allocation56_spill] sm:$0xff] %v5921_v13  ;;  %v5931_v10 = vld [vmem:[%s5703_s18 + $0x870] sm:$0xff]  ;;  %9726 = vst [vmem:[#allocation65_spill] sm:$0xff] %v5964_v54 }
  0xac   : > { %4287 = vmatpush1.bf16.msra.mxu0 %v5070_v39  ;;  %4165 = vmatprep.subr.bf16.mxu1 %v5071_v40  ;;  %v5824_v40 = vld [vmem:[%s5703_s18 + $0x480] sm:$0xff]  ;;  %v5891_v39 = vld [vmem:[%s5703_s18 + $0x6f0] sm:$0xff]  ;;  %9719 = vst [vmem:[#allocation58_spill] sm:$0xff] %v5931_v10 }
  0xad   : > { %4288 = vmatprep.subr.bf16.mxu0 %v5073_v41  ;;  %9698 = vst [vmem:[#allocation37_spill] sm:$0xff] %v5824_v40  ;;  %9711 = vst [vmem:[#allocation50_spill] sm:$0xff] %v5891_v39  ;;  %v5894_v41 = vld [vmem:[%s5703_s18 + $0x720] sm:$0xff]  ;;  %v5937_v27 = vld [vmem:[%s5703_s18 + $0x8d0] sm:$0xff]  ;;  %v9745_v22 = vunpack.c.h.bf16 %v5824_v40 }
  0xae   : > { %9712 = vst [vmem:[#allocation51_spill] sm:$0xff] %v5894_v41  ;;  %9721 = vst [vmem:[#allocation60_spill] sm:$0xff] %v5937_v27  ;;  %v5951_v11 = vld [vmem:[%s5703_s18 + $0x930] sm:$0xff]  ;;  %v5974_v20 = vld [vmem:[%s5703_s18 + $0xa20] sm:$0xff] }
  0xaf   : > { %4166 = vmatpush1.bf16.msra.mxu1 %v5075_v42  ;;  %v5094_v42 = vld [vmem:[#allocation5 + $0x3d0] ss:$8 sps:$4 sm:$0xff]   ;;  %9723 = vst [vmem:[#allocation62_spill] sm:$0xff] %v5951_v11  ;;  %9728 = vst [vmem:[#allocation67_spill] sm:$0xff] %v5974_v20  ;;  %v1292_v60 = vunpack.c.h.bf16 %v5951_v11  ;;  %v5994_v55 = vld [vmem:[%s5703_s18 + $0xae0] sm:$0xff]  ;;  %v9738_v20 = vunpack.c.h.bf16 %v5721_v51 }
  0xb0   : > { %4289 = vmatpush1.bf16.msra.mxu0 %v5076_v43  ;;  %4167 = vmatprep.subr.bf16.mxu1 %v5077_v44  ;;  %v5811_v43 = vld [vmem:[%s5703_s18 + $0x3f0] sm:$0xff]  ;;  %v5814_v44 = vld [vmem:[%s5703_s18 + $0x420] sm:$0xff]  ;;  %9732 = vst [vmem:[#allocation71_spill] sm:$0xff] %v5994_v55  ;;  %v6413_v40 = vld [vmem:[%s5703_s18 + $0xa98] sm:$0xff] }
  0xb1   : > { %4290 = vmatprep.subr.bf16.mxu0 %v5079_v45  ;;  %9695 = vst [vmem:[#allocation34_spill] sm:$0xff] %v5811_v43  ;;  %9696 = vst [vmem:[#allocation35_spill] sm:$0xff] %v5814_v44  ;;  %v5981_v45 = vld [vmem:[%s5703_s18 + $0xa50] sm:$0xff]  ;;  %v6004_v11 = vld [vmem:[%s5703_s18 + $0xb40] sm:$0xff] }
  0xb2   : > { %9729 = vst [vmem:[#allocation68_spill] sm:$0xff] %v5981_v45  ;;  %v5991_v27 = vld [vmem:[%s5703_s18 + $0xab0] sm:$0xff]  ;;  %9734 = vst [vmem:[#allocation73_spill] sm:$0xff] %v6004_v11  ;;  %v6014_v63 = vld [vmem:[%s5703_s18 + $0xba0] sm:$0xff] }
  0xb3   : > { %4168 = vmatpush1.bf16.msra.mxu1 %v5081_v46  ;;  %v5874_v46 = vld [vmem:[%s5703_s18 + $0x660] sm:$0xff]  ;;  %9731 = vst [vmem:[#allocation70_spill] sm:$0xff] %v5991_v27  ;;  %v6001_v18 = vld [vmem:[%s5703_s18 + $0xb10] sm:$0xff]  ;;  %9736 = vst [vmem:[#allocation75_spill] sm:$0xff] %v6014_v63  ;;  %v1388_v17 = vunpack.c.h.bf16 %v5991_v27  ;;  %v1448_v27 = vunpack.c.h.bf16 %v6014_v63 }
  0xb4   : > { %4291 = vmatpush1.bf16.msra.mxu0 %v5082_v47  ;;  %4169 = vmatprep.subr.bf16.mxu1 %v5083_v49  ;;  %9708 = vst [vmem:[#allocation47_spill] sm:$0xff] %v5874_v46  ;;  %v5901_v47 = vld [vmem:[%s5703_s18 + $0x750] sm:$0xff]  ;;  %9733 = vst [vmem:[#allocation72_spill] sm:$0xff] %v6001_v18 }
  0xb5   : > { %4292 = vmatprep.subr.bf16.mxu0 %v5085_v50  ;;  %v5095_v50 = vld [vmem:[#allocation5 + $0xe4] ss:$8 sps:$4 sm:$0xff]   ;;  %9713 = vst [vmem:[#allocation52_spill] sm:$0xff] %v5901_v47  ;;  %v5961_v49 = vld [vmem:[%s5703_s18 + $0x990] sm:$0xff]  ;;  %v1412_v47 = vunpack.c.h.bf16 %v6001_v18  ;;  %v9739_v18 = vunpack.c.h.bf16 %v5718_v48  ;;  %v9747_v48 = vunpack.c.h.bf16 %v5864_v4  ;;  %9831 = vst [vmem:[#allocation107_spill] sm:$0xff] %v6413_v40 }
  0xb6   : > { %9725 = vst [vmem:[#allocation64_spill] sm:$0xff] %v5961_v49  ;;  %v6021_v41 = vld [vmem:[%s5703_s18 + $0xbd0] sm:$0xff] }
  0xb7   : > { %4170 = vmatpush1.bf16.msra.mxu1 %v5087_v6  ;;  %v5097_v6 = vld [vmem:[#allocation5 + $0x3e4] ss:$8 sps:$4 sm:$0xff]   ;;  %9737 = vst [vmem:[#allocation76_spill] sm:$0xff] %v6021_v41  ;;  %v1484_v2 = vmax.f32 %v9739_v18, %v9738_v20 }
  0xb8   : > { %4293 = vmatpush1.bf16.msra.mxu0 %v5088_v14  ;;  %4171 = vmatprep.subr.bf16.mxu1 %v5089_v21  ;;  %v5831_v14 = vld [vmem:[%s5703_s18 + $0x4b0] sm:$0xff]  ;;  %v5844_v21 = vld [vmem:[%s5703_s18 + $0x540] sm:$0xff] }
  0xb9   : > { %4294 = vmatprep.subr.bf16.mxu0 %v5091_v28  ;;  %9699 = vst [vmem:[#allocation38_spill] sm:$0xff] %v5831_v14  ;;  %9702 = vst [vmem:[#allocation41_spill] sm:$0xff] %v5844_v21  ;;  %v5109_v28 = vld [vmem:[#allocation5 + $0x104] ss:$8 sps:$4 sm:$0xff]   ;;  %v9744_v63 = vunpack.c.h.bf16 %v5831_v14 }
  0xbb   : > { %4172 = vmatpush1.bf16.msra.mxu1 %v5093_v35  ;;  %v5103_v35 = vld [vmem:[#allocation5 + $0x3f4] ss:$8 sps:$4 sm:$0xff]  }
  0xbc   : > { %4295 = vmatpush1.bf16.msra.mxu0 %v5094_v42  ;;  %4173 = vmatprep.subr.bf16.mxu1 %v5095_v50  ;;  %v5871_v42 = vld [vmem:[%s5703_s18 + $0x630] sm:$0xff]  ;;  %v5884_v50 = vld [vmem:[%s5703_s18 + $0x6c0] sm:$0xff] }
  0xbd   : > { %4296 = vmatprep.subr.bf16.mxu0 %v5097_v6  ;;  %9707 = vst [vmem:[#allocation46_spill] sm:$0xff] %v5871_v42  ;;  %9710 = vst [vmem:[#allocation49_spill] sm:$0xff] %v5884_v50  ;;  %v1280_v6 = vunpack.c.h.bf16 %v5944_v62  ;;  %v1316_v62 = vunpack.c.h.bf16 %v5961_v49  ;;  %v1424_v49 = vunpack.c.h.bf16 %v6004_v11  ;;  %v9741_v11 = vunpack.c.h.bf16 %v5748_v0 }
  0xbe   : > { %v9746_v51 = vunpack.c.h.bf16 %v5871_v42  ;;  %v9749_v0 = vunpack.c.h.bf16 %v5904_v26  ;;  %v9753_v42 = vunpack.c.h.bf16 %v5834_v33 }
  0xbf   : > { %4174 = vmatpush1.bf16.msra.mxu1 %v5099_v38  ;;  %v5914_v38 = vld [vmem:[%s5703_s18 + $0x7e0] sm:$0xff]  ;;  %v2420_v14 = vmax.f32 %v1280_v6, %v1292_v60  ;;  %v9759_v6 = vunpack.c.h.bf16 %v5841_v61  ;;  %v6393_v61 = vld [vmem:[%s5703_s18 + $0x9d8] sm:$0xff] }
  0xc0   : > { %4297 = vmatpush1.bf16.msra.mxu0 %v5100_v19  ;;  %4175 = vmatprep.subr.bf16.mxu1 %v5101_v12  ;;  %v5911_v19 = vld [vmem:[%s5703_s18 + $0x7b0] sm:$0xff]  ;;  %9716 = vst [vmem:[#allocation55_spill] sm:$0xff] %v5914_v38  ;;  %v5954_v12 = vld [vmem:[%s5703_s18 + $0x960] sm:$0xff]  ;;  %v2108_v18 = vmax.f32 %v9747_v48, %v9746_v51  ;;  %v9754_v48 = vunpack.c.h.bf16 %v5874_v46  ;;  %v9755_v26 = vunpack.c.h.bf16 %v5914_v38  ;;  %9827 = vst [vmem:[#allocation103_spill] sm:$0xff] %v6393_v61 }
  0xc1   : > { %4298 = vmatprep.subr.bf16.mxu0 %v5103_v35  ;;  %9715 = vst [vmem:[#allocation54_spill] sm:$0xff] %v5911_v19  ;;  %9724 = vst [vmem:[#allocation63_spill] sm:$0xff] %v5954_v12  ;;  %v5984_v35 = vld [vmem:[%s5703_s18 + $0xa80] sm:$0xff]  ;;  %v1304_v25 = vunpack.c.h.bf16 %v5954_v12  ;;  %v1400_v12 = vunpack.c.h.bf16 %v5994_v55  ;;  %v1460_v55 = vunpack.c.h.bf16 %v6021_v41  ;;  %v1952_v41 = vmax.f32 %v9745_v22, %v9744_v63  ;;  %v6410_v38 = vld [vmem:[%s5703_s18 + $0xa68] sm:$0xff] }
  0xc2   : > { %9730 = vst [vmem:[#allocation69_spill] sm:$0xff] %v5984_v35  ;;  %v1376_v3 = vunpack.c.h.bf16 %v5984_v35  ;;  %v9748_v20 = vunpack.c.h.bf16 %v5911_v19  ;;  %v9752_v63 = vunpack.c.h.bf16 %v5794_v30  ;;  %v2109_v51 = vmax.f32 %v2108_v18, %v9754_v48  ;;  %v6383_v30 = vld [vmem:[%s5703_s18 + $0x978] sm:$0xff]  ;;  %9830 = vst [vmem:[#allocation106_spill] sm:$0xff] %v6410_v38  ;;  %v6440_v46 = vld [vmem:[%s5703_s18 + $0xb88] sm:$0xff] }
  0xc3   : > { %4176 = vmatpush1.bf16.msra.mxu1 %v5105_v5  ;;  %v1328_v5 = vunpack.c.h.bf16 %v5964_v54  ;;  %v9740_v54 = vunpack.c.h.bf16 %v5751_v1  ;;  %v1953_v4 = vmax.f32 %v1952_v41, %v9753_v42  ;;  %v2421_v60 = vmax.f32 %v2420_v14, %v1304_v25  ;;  %9825 = vst [vmem:[#allocation101_spill] sm:$0xff] %v6383_v30  ;;  %v6403_v19 = vld [vmem:[%s5703_s18 + $0xa38] sm:$0xff]  ;;  %9836 = vst [vmem:[#allocation112_spill] sm:$0xff] %v6440_v46 }
  0xc4   : > { %4299 = vmatpush1.bf16.msra.mxu0 %v5106_v34  ;;  %v5971_v34 = vld [vmem:[%s5703_s18 + $0x9f0] sm:$0xff]  ;;  %4186 = vmatprep.subr.bf16.mxu1 %v5109_v28  ;;  %v2576_v23 = vmax.f32 %v1376_v3, %v1388_v17  ;;  %v9758_v17 = vunpack.c.h.bf16 %v5801_v36  ;;  %v9760_v42 = vunpack.c.h.bf16 %v5881_v59  ;;  %v9764_v14 = vunpack.c.h.bf16 %v5804_v37  ;;  %v6342_v37 = vld [vmem:[%s5703_s18 + $0x828] sm:$0xff]  ;;  %v6349_v36 = vld [vmem:[%s5703_s18 + $0x858] sm:$0xff]  ;;  %9829 = vst [vmem:[#allocation105_spill] sm:$0xff] %v6403_v19 }
  0xc5   : > { %9727 = vst [vmem:[#allocation66_spill] sm:$0xff] %v5971_v34  ;;  %v6011_v28 = vld [vmem:[%s5703_s18 + $0xb70] sm:$0xff]  ;;  %v1640_v35 = vmax.f32 %v9741_v11, %v9740_v54  ;;  %v2264_v54 = vmax.f32 %v9749_v0, %v9748_v20  ;;  %v9750_v11 = vunpack.c.h.bf16 %v5724_v52  ;;  %v9756_v20 = vunpack.c.h.bf16 %v5727_v53  ;;  %9819 = vst [vmem:[#allocation95_spill] sm:$0xff] %v6349_v36  ;;  %v6390_v53 = vld [vmem:[%s5703_s18 + $0x9a8] sm:$0xff] }
  0xc6   : > { %9735 = vst [vmem:[#allocation74_spill] sm:$0xff] %v6011_v28  ;;  %v1436_v45 = vunpack.c.h.bf16 %v6011_v28  ;;  %v9742_v28 = vunpack.c.h.bf16 %v5791_v29  ;;  %v2577_v3 = vmax.f32 %v2576_v23, %v1400_v12  ;;  %v1954_v41 = vmax.f32 %v1953_v4, %v9759_v6  ;;  %9826 = vst [vmem:[#allocation102_spill] sm:$0xff] %v6390_v53  ;;  %v6420_v59 = vld [vmem:[%s5703_s18 + $0xac8] sm:$0xff] }
  0xc7   : > { %v1485_v29 = vmax.f32 %v1484_v2, %v9750_v11  ;;  %v2265_v0 = vmax.f32 %v2264_v54, %v9755_v26  ;;  %v9757_v11 = vunpack.c.h.bf16 %v5761_v8  ;;  %v2110_v18 = vmax.f32 %v2109_v51, %v9760_v42  ;;  %9832 = vst [vmem:[#allocation108_spill] sm:$0xff] %v6420_v59 }
  0xc8   : > { %v1796_v44 = vmax.f32 %v9743_v31, %v9742_v28  ;;  %v9751_v31 = vunpack.c.h.bf16 %v5758_v7  ;;  %v9762_v54 = vunpack.c.h.bf16 %v5732_v56  ;;  %v2422_v25 = vmax.f32 %v2421_v60, %v1316_v62  ;;  %v6365_v56 = vld [vmem:[%s5703_s18 + $0x918] sm:$0xff] }
  0xc9   : > { %v1486_v2 = vmax.f32 %v1485_v29, %v9756_v20  ;;  %v2578_v23 = vmax.f32 %v2577_v3, %v1412_v47  ;;  %v9766_v48 = vunpack.c.h.bf16 %v5884_v50  ;;  %v9767_v20 = vunpack.c.h.bf16 %v5924_v32  ;;  %v6309_v50 = vld [vmem:[%s5703_s18 + $0x6d8] sm:$0xff]  ;;  %9823 = vst [vmem:[#allocation99_spill] sm:$0xff] %v6365_v56 }
  0xca   : > { %v1641_v28 = vmax.f32 %v1640_v35, %v9751_v31  ;;  %v1797_v22 = vmax.f32 %v1796_v44, %v9752_v63  ;;  %v9761_v31 = vunpack.c.h.bf16 %v5921_v13  ;;  %v9763_v63 = vunpack.c.h.bf16 %v5764_v9  ;;  %v6325_v32 = vld [vmem:[%s5703_s18 + $0x798] sm:$0xff]  ;;  %v6362_v9 = vld [vmem:[%s5703_s18 + $0x8e8] sm:$0xff] }
  0xcb   : > { %v1487_v29 = vmax.f32 %v1486_v2, %v9762_v54  ;;  %v2111_v51 = vmax.f32 %v2110_v18, %v9766_v48  ;;  %v2423_v62 = vmax.f32 %v2422_v25, %v1328_v5  ;;  %v2579_v47 = vmax.f32 %v2578_v23, %v1424_v49  ;;  %v9777_v25 = vld [vmem:[#allocation35_spill] sm:$0xff]  ;;  %9818 = vst [vmem:[#allocation94_spill] sm:$0xff] %v6325_v32 }
  0xcc   : > { %v1642_v35 = vmax.f32 %v1641_v28, %v9757_v11  ;;  %v1798_v44 = vmax.f32 %v1797_v22, %v9758_v17  ;;  %v2266_v26 = vmax.f32 %v2265_v0, %v9761_v31  ;;  %v9765_v22 = vunpack.c.h.bf16 %v5844_v21  ;;  %v9781_v48 = vld [vmem:[#allocation51_spill] sm:$0xff]  ;;  %v6322_v21 = vld [vmem:[%s5703_s18 + $0x768] sm:$0xff]  ;;  %9822 = vst [vmem:[#allocation98_spill] sm:$0xff] %v6362_v9 }
  0xcd   : > { %v9768_v11 = vunpack.c.h.bf16 %v5735_v57  ;;  %v9769_v17 = vunpack.c.h.bf16 %v5771_v15  ;;  %v9770_v60 = vunpack.c.h.bf16 %v5811_v43  ;;  %v9773_v18 = vunpack.c.h.bf16 %v5931_v10  ;;  %v6275_v10 = vld [vmem:[%s5703_s18 + $0x5b8] sm:$0xff]  ;;  %v6312_v43 = vld [vmem:[%s5703_s18 + $0x708] sm:$0xff]  ;;  %9817 = vst [vmem:[#allocation93_spill] sm:$0xff] %v6322_v21 }
  0xce   : > { %v1643_v28 = vmax.f32 %v1642_v35, %v9763_v63  ;;  %v1799_v12 = vmax.f32 %v1798_v44, %v9764_v14  ;;  %v1955_v4 = vmax.f32 %v1954_v41, %v9765_v22  ;;  %v2267_v0 = vmax.f32 %v2266_v26, %v9767_v20  ;;  %9811 = vst [vmem:[#allocation87_spill] sm:$0xff] %v6275_v10  ;;  %v6315_v57 = vld [vmem:[%s5703_s18 + $0x738] sm:$0xff]  ;;  %v6332_v15 = vld [vmem:[%s5703_s18 + $0x7c8] sm:$0xff] }
  0xcf   : > { %v1488_v2 = vmax.f32 %v1487_v29, %v9768_v11  ;;  %v9771_v44 = vunpack.c.h.bf16 %v5851_v24  ;;  %v9772_v41 = vunpack.c.h.bf16 %v5891_v39  ;;  %v9774_v26 = vunpack.c.h.bf16 %v5738_v58  ;;  %v6282_v39 = vld [vmem:[%s5703_s18 + $0x5e8] sm:$0xff]  ;;  %9815 = vst [vmem:[#allocation91_spill] sm:$0xff] %v6312_v43  ;;  %9816 = vst [vmem:[#allocation92_spill] sm:$0xff] %v6315_v57  ;;  %v6355_v13 = vld [vmem:[%s5703_s18 + $0x8b8] sm:$0xff] }
  0xd0   : > { %v1644_v35 = vmax.f32 %v1643_v28, %v9769_v17  ;;  %v1800_v3 = vmax.f32 %v1799_v12, %v9770_v60  ;;  %v2268_v31 = vmax.f32 %v2267_v0, %v9773_v18  ;;  %v9775_v29 = vunpack.c.h.bf16 %v5774_v16  ;;  %v9779_v12 = vld [vmem:[#allocation43_spill] sm:$0xff]  ;;  %9812 = vst [vmem:[#allocation88_spill] sm:$0xff] %v6282_v39  ;;  %v6302_v58 = vld [vmem:[%s5703_s18 + $0x6a8] sm:$0xff]  ;;  %9821 = vst [vmem:[#allocation97_spill] sm:$0xff] %v6355_v13 }
  0xd1   : > { %v1956_v6 = vmax.f32 %v1955_v4, %v9771_v44  ;;  %v2112_v42 = vmax.f32 %v2111_v51, %v9772_v41  ;;  %v1489_v54 = vmax.f32 %v1488_v2, %v9774_v26  ;;  %v9776_v49 = vunpack.c.h.bf16 %v5971_v34  ;;  %v9783_v0 = vld [vmem:[#allocation59_spill] sm:$0xff]  ;;  %v9785_v2 = vld [vmem:[#allocation20_spill] sm:$0xff]  ;;  %v6352_v24 = vld [vmem:[%s5703_s18 + $0x888] sm:$0xff] }
  0xd2   : > { %v1645_v63 = vmax.f32 %v1644_v35, %v9775_v29  ;;  %v2580_v28 = vmax.f32 %v2579_v47, %v1436_v45  ;;  %v9778_v23 = vunpack.c.h.bf16 %v9777_v25  ;;  %v9780_v22 = vunpack.c.h.bf16 %v9779_v12  ;;  %v9787_v35 = vld [vmem:[#allocation28_spill] sm:$0xff]  ;;  %v6292_v12 = vld [vmem:[%s5703_s18 + $0x648] sm:$0xff]  ;;  %9820 = vst [vmem:[#allocation96_spill] sm:$0xff] %v6352_v24 }
  0xd3   : > { %v2424_v5 = vmax.f32 %v2423_v62, %v9776_v49  ;;  %v9782_v51 = vunpack.c.h.bf16 %v9781_v48  ;;  %v9784_v11 = vunpack.c.h.bf16 %v9783_v0  ;;  %v9786_v60 = vunpack.c.h.bf16 %v9785_v2  ;;  %v9789_v62 = vld [vmem:[#allocation67_spill] sm:$0xff]  ;;  %v9791_v29 = vld [vmem:[#allocation36_spill] sm:$0xff]  ;;  %v6252_v2 = vld [vmem:[%s5703_s18 + $0x4c8] sm:$0xff]  ;;  %9814 = vst [vmem:[#allocation90_spill] sm:$0xff] %v6292_v12 }
  0xd4   : > { %v1801_v14 = vmax.f32 %v1800_v3, %v9778_v23  ;;  %v1957_v4 = vmax.f32 %v1956_v6, %v9780_v22  ;;  %v9788_v41 = vunpack.c.h.bf16 %v9787_v35  ;;  %v9790_v45 = vunpack.c.h.bf16 %v9789_v62  ;;  %v5112_v3 = vld [vmem:[#allocation5 + $0x404] ss:$8 sps:$4 sm:$0xff]   ;;  %v9793_v23 = vld [vmem:[#allocation44_spill] sm:$0xff]  ;;  %9810 = vst [vmem:[#allocation86_spill] sm:$0xff] %v6252_v2 }
  0xd5   : > { %v2113_v20 = vmax.f32 %v2112_v42, %v9782_v51  ;;  %v2269_v17 = vmax.f32 %v2268_v31, %v9784_v11  ;;  %v1490_v44 = vmax.f32 %v1489_v54, %v9786_v60  ;;  %v2581_v26 = vmax.f32 %v2580_v28, %v1448_v27  ;;  %v9795_v51 = vld [vmem:[#allocation52_spill] sm:$0xff]  ;;  %4309 = vmatprep.subr.bf16.mxu0 %v5112_v3  ;;  %v6262_v48 = vld [vmem:[%s5703_s18 + $0x528] sm:$0xff] }
  0xd6   : > { %v1646_v18 = vmax.f32 %v1645_v63, %v9788_v41  ;;  %v2425_v47 = vmax.f32 %v2424_v5, %v9790_v45  ;;  %v9792_v49 = vunpack.c.h.bf16 %v9791_v29  ;;  %v9794_v22 = vunpack.c.h.bf16 %v9793_v23  ;;  %v9797_v11 = vld [vmem:[#allocation60_spill] sm:$0xff]  ;;  %v6156_v29 = vld [vmem:[%s5703_s18 + $0x108] sm:$0xff] }
  0xd7   : > { %v9796_v34 = vunpack.c.h.bf16 %v9795_v51  ;;  %v9798_v0 = vunpack.c.h.bf16 %v9797_v11  ;;  %v1491_v60 = vrot.slane %v1490_v44, 4  ;;  %v9799_v63 = vld [vmem:[#allocation68_spill] sm:$0xff]  ;;  %v2582_v5 = vmax.f32 %v2581_v26, %v1460_v55  ;;  %v6430_v39 = vld [vmem:[%s5703_s18 + $0xb28] sm:$0xff] }
  0xd8   : > { %v1802_v6 = vmax.f32 %v1801_v14, %v9792_v49  ;;  %v1958_v42 = vmax.f32 %v1957_v4, %v9794_v22  ;;  %v1647_v35 = vrot.slane %v1646_v18, 4  ;;  %v9800_v41 = vunpack.c.h.bf16 %v9799_v63  ;;  %v6269_v16 = vld [vmem:[%s5703_s18 + $0x558] sm:$0xff]  ;;  %9834 = vst [vmem:[#allocation110_spill] sm:$0xff] %v6430_v39  ;;  %v6450_v57 = vld [vmem:[%s5703_s18 + $0xbe8] sm:$0xff] }
  0xd9   : > { %v2114_v31 = vmax.f32 %v2113_v20, %v9796_v34  ;;  %v2270_v54 = vmax.f32 %v2269_v17, %v9798_v0  ;;  %v1492_v49 = vmax.f32 %v1490_v44, %v1491_v60  ;;  %v2583_v51 = vrot.slane %v2582_v5, 4  ;;  %v6285_v25 = vld [vmem:[%s5703_s18 + $0x618] sm:$0xff]  ;;  %9838 = vst [vmem:[#allocation114_spill] sm:$0xff] %v6450_v57 }
  0xda   : > { %v2426_v62 = vmax.f32 %v2425_v47, %v9800_v41  ;;  %v1803_v27 = vrot.slane %v1802_v6, 4  ;;  %v1959_v28 = vrot.slane %v1958_v42, 4  ;;  %v1648_v4 = vmax.f32 %v1646_v18, %v1647_v35  ;;  %9813 = vst [vmem:[#allocation89_spill] sm:$0xff] %v6285_v25  ;;  %v6423_v9 = vld [vmem:[%s5703_s18 + $0xaf8] sm:$0xff] }
  0xdb   : > { %v2115_v45 = vrot.slane %v2114_v31, 4  ;;  %v2271_v14 = vrot.slane %v2270_v54, 4  ;;  %v1493_v11 = vrot.slane %v1492_v49, 2  ;;  %v2584_v55 = vmax.f32 %v2582_v5, %v2583_v51  ;;  %v6140_v51 = vld [vmem:[%s5703_s18 + $0x18] sm:$0xff]  ;;  %9833 = vst [vmem:[#allocation109_spill] sm:$0xff] %v6423_v9 }
  0xdc   : > { %v2427_v22 = vrot.slane %v2426_v62, 4  ;;  %v1804_v34 = vmax.f32 %v1802_v6, %v1803_v27  ;;  %v1960_v20 = vmax.f32 %v1958_v42, %v1959_v28  ;;  %v1649_v63 = vrot.slane %v1648_v4, 2  ;;  %9801 = vst [vmem:[#allocation77_spill] sm:$0xff] %v6140_v51 }
  0xdd   : > { %v2116_v0 = vmax.f32 %v2114_v31, %v2115_v45  ;;  %v2272_v17 = vmax.f32 %v2270_v54, %v2271_v14  ;;  %v1494_v44 = vmax.f32 %v1492_v49, %v1493_v11  ;;  %v2585_v6 = vrot.slane %v2584_v55, 2  ;;  %v6143_v45 = vld [vmem:[%s5703_s18 + $0x48] sm:$0xff] }
  0xde   : > { %v2428_v47 = vmax.f32 %v2426_v62, %v2427_v22  ;;  %v1805_v26 = vrot.slane %v1804_v34, 2  ;;  %v1961_v3 = vrot.slane %v1960_v20, 2  ;;  %v1650_v35 = vmax.f32 %v1648_v4, %v1649_v63  ;;  %9802 = vst [vmem:[#allocation78_spill] sm:$0xff] %v6143_v45  ;;  %v6146_v4 = vld [vmem:[%s5703_s18 + $0x78] sm:$0xff] }
  0xdf   : > { %v2117_v41 = vrot.slane %v2116_v0, 2  ;;  %v2273_v23 = vrot.slane %v2272_v17, 2  ;;  %v1495_v60 = vrot.slane %v1494_v44, 1  ;;  %v2586_v28 = vmax.f32 %v2584_v55, %v2585_v6 }
  0xe0   : > { %v2429_v18 = vrot.slane %v2428_v47, 2  ;;  %v1806_v42 = vmax.f32 %v1804_v34, %v1805_v26  ;;  %v1962_v31 = vmax.f32 %v1960_v20, %v1961_v3  ;;  %v1651_v5 = vrot.slane %v1650_v35, 1 }
  0xe1   : > { %v2118_v54 = vmax.f32 %v2116_v0, %v2117_v41  ;;  %v2274_v62 = vmax.f32 %v2272_v17, %v2273_v23  ;;  %v6149_v23 = vld [vmem:[%s5703_s18 + $0xa8] sm:$0xff]  ;;  %v1496_v22 = vmax.f32 %v1494_v44, %v1495_v60  ;;  %v2587_v0 = vrot.slane %v2586_v28, 1  ;;  %v6152_v17 = vld [vmem:[%s5703_s18 + $0xd8] sm:$0xff] }
  0xe2   : > { %v2430_v27 = vmax.f32 %v2428_v47, %v2429_v18  ;;  %v1807_v11 = vrot.slane %v1806_v42, 1  ;;  %v1963_v63 = vrot.slane %v1962_v31, 1  ;;  %v1652_v34 = vmax.f32 %v1650_v35, %v1651_v5  ;;  %v6159_v44 = vld [vmem:[%s5703_s18 + $0x138] sm:$0xff]  ;;  %v6162_v35 = vld [vmem:[%s5703_s18 + $0x168] sm:$0xff] }
  0xe3   : > { %v2119_v14 = vrot.slane %v2118_v54, 1  ;;  %v2275_v49 = vrot.slane %v2274_v62, 1  ;;  %v2588_v18 = vmax.f32 %v2586_v28, %v2587_v0  ;;  %9803 = vst [vmem:[#allocation79_spill] sm:$0xff] %v6162_v35  ;;  %v6204_v60 = vld [vmem:[%s5703_s18 + $0x2e8] sm:$0xff]  ;;  %v1286_v52 = vunpack.c.h.bf16 %v6365_v56  ;;  %v6443_v35 = vld [vmem:[%s5703_s18 + $0xbb8] sm:$0xff] }
  0xe4   : > { %v2431_v20 = vrot.slane %v2430_v27, 1  ;;  %v1808_v47 = vmax.f32 %v1806_v42, %v1807_v11  ;;  %v1964_v55 = vmax.f32 %v1962_v31, %v1963_v63  ;;  %v2841_v6 = vsel %vm2827_vm0, %v1652_v34, %v1496_v22  ;;  %v6167_v42 = vld [vmem:[%s5703_s18 + $0x198] sm:$0xff]  ;;  %v6170_v31 = vld [vmem:[%s5703_s18 + $0x1c8] sm:$0xff]  ;;  %9805 = vst [vmem:[#allocation81_spill] sm:$0xff] %v6204_v60  ;;  %9837 = vst [vmem:[#allocation113_spill] sm:$0xff] %v6443_v35 }
  0xe5   : > { %v2120_v26 = vmax.f32 %v2118_v54, %v2119_v14  ;;  %v2276_v3 = vmax.f32 %v2274_v62, %v2275_v49  ;;  %9804 = vst [vmem:[#allocation80_spill] sm:$0xff] %v6167_v42  ;;  %v6177_v11 = vld [vmem:[%s5703_s18 + $0x1f8] sm:$0xff]  ;;  %v6184_v34 = vld [vmem:[%s5703_s18 + $0x228] sm:$0xff]  ;;  %v1310_v1 = vunpack.c.h.bf16 %v6383_v30  ;;  %v1322_v56 = vunpack.c.h.bf16 %v6390_v53 }
  0xe6   : > { %v2432_v41 = vmax.f32 %v2430_v27, %v2431_v20  ;;  %v2842_v5 = vsel %vm2829_vm1, %v1808_v47, %v2841_v6  ;;  %v6191_v6 = vld [vmem:[%s5703_s18 + $0x258] sm:$0xff]  ;;  %v6223_v14 = vld [vmem:[%s5703_s18 + $0x3a8] sm:$0xff]  ;;  %v1334_v8 = vunpack.c.h.bf16 %v6393_v61  ;;  %v1382_v13 = vunpack.c.h.bf16 %v6413_v40 }
  0xe7   : > { %v2843_v28 = vsel %vm2831_vm2, %v1964_v55, %v2842_v5  ;;  %v6194_v5 = vld [vmem:[%s5703_s18 + $0x288] sm:$0xff]  ;;  %v6197_v63 = vld [vmem:[%s5703_s18 + $0x2b8] sm:$0xff]  ;;  %v1406_v30 = vunpack.c.h.bf16 %v6423_v9  ;;  %v1418_v21 = vunpack.c.h.bf16 %v6430_v39  ;;  %v1442_v38 = vunpack.c.h.bf16 %v6440_v46 }
  0xe8   : > { %v2844_v22 = vsel %vm2833_vm3, %v2120_v26, %v2843_v28  ;;  %v6207_v62 = vld [vmem:[%s5703_s18 + $0x318] sm:$0xff]  ;;  %v6214_v28 = vld [vmem:[%s5703_s18 + $0x348] sm:$0xff]  ;;  %v1466_v9 = vunpack.c.h.bf16 %v6450_v57  ;;  %v9839_v19 = vunpack.c.h.bf16 %v6143_v45  ;;  %v9840_v39 = vunpack.c.h.bf16 %v6140_v51 }
  0xe9   : > { %v2845_v55 = vsel %vm2835_vm4, %v2276_v3, %v2844_v22  ;;  %9806 = vst [vmem:[#allocation82_spill] sm:$0xff] %v6207_v62  ;;  %9807 = vst [vmem:[#allocation83_spill] sm:$0xff] %v6214_v28  ;;  %v6217_v49 = vld [vmem:[%s5703_s18 + $0x378] sm:$0xff]  ;;  %v6242_v26 = vld [vmem:[%s5703_s18 + $0x468] sm:$0xff]  ;;  %v9841_v61 = vunpack.c.h.bf16 %v6170_v31  ;;  %v9843_v46 = vunpack.c.h.bf16 %v6214_v28  ;;  %v9844_v33 = vunpack.c.h.bf16 %v6207_v62 }
  0xea   : > { %v2846_v0 = vsel %vm2837_vm5, %v2432_v41, %v2845_v55  ;;  %v6232_v41 = vld [vmem:[%s5703_s18 + $0x408] sm:$0xff]  ;;  %v6235_v54 = vld [vmem:[%s5703_s18 + $0x438] sm:$0xff]  ;;  %9809 = vst [vmem:[#allocation85_spill] sm:$0xff] %v6242_v26  ;;  %v1394_v26 = vunpack.c.h.bf16 %v6420_v59  ;;  %v1454_v59 = vunpack.c.h.bf16 %v6443_v35  ;;  %v1562_v10 = vmax.f32 %v9840_v39, %v9839_v19 }
  0xeb   : > { %v2847_v47 = vsel %vm2839_vm6, %v2588_v18, %v2846_v0  ;;  %v6229_v0 = vld [vmem:[%s5703_s18 + $0x3d8] sm:$0xff]  ;;  %9808 = vst [vmem:[#allocation84_spill] sm:$0xff] %v6235_v54  ;;  %v6272_v22 = vld [vmem:[%s5703_s18 + $0x588] sm:$0xff]  ;;  %v1874_v54 = vmax.f32 %v9844_v33, %v9843_v46  ;;  %v9845_v35 = vunpack.c.h.bf16 %v6252_v2  ;;  %v9847_v45 = vunpack.c.h.bf16 %v6292_v12 }
  0xec   : > { %v2970_v3 = vpack.c.bf16 %v2847_v47, %v2847_v47  ;;  %v6245_v18 = vld [vmem:[%s5703_s18 + $0x498] sm:$0xff]  ;;  %v6380_v47 = vld [vmem:[%s5703_s18 + $0x948] sm:$0xff]  ;;  %v9848_v51 = vunpack.c.h.bf16 %v6285_v25  ;;  %v9849_v19 = vunpack.c.h.bf16 %v6332_v15  ;;  %v9852_v33 = vunpack.c.h.bf16 %v6177_v11 }
  0xed   : > { %v6255_v20 = vld [vmem:[%s5703_s18 + $0x4f8] sm:$0xff]  ;;  %9824 = vst [vmem:[#allocation100_spill] sm:$0xff] %v6380_v47  ;;  %v1298_v7 = vunpack.c.h.bf16 %v6380_v47  ;;  %v9846_v60 = vunpack.c.h.bf16 %v6245_v18  ;;  %v2654_v62 = vmax.f32 %v1382_v13, %v1394_v26  ;;  %v9859_v13 = vunpack.c.h.bf16 %v6223_v14 }
  0xee   : > { %4177 = vmatprep.mubr.bf16.mxu1 %v2970_v3  ;;  %v6295_v55 = vld [vmem:[%s5703_s18 + $0x678] sm:$0xff]  ;;  %v6400_v3 = vld [vmem:[%s5703_s18 + $0xa08] sm:$0xff]  ;;  %v2186_v39 = vmax.f32 %v9848_v51, %v9847_v45  ;;  %v9854_v12 = vunpack.c.h.bf16 %v6255_v20  ;;  %v9860_v26 = vunpack.c.h.bf16 %v6262_v48 }
  0xef   : > { %v6335_v27 = vld [vmem:[%s5703_s18 + $0x7f8] sm:$0xff]  ;;  %9828 = vst [vmem:[#allocation104_spill] sm:$0xff] %v6400_v3  ;;  %v2030_v57 = vmax.f32 %v9846_v60, %v9845_v35  ;;  %v2498_v2 = vmax.f32 %v1286_v52, %v1298_v7  ;;  %v9853_v35 = vunpack.c.h.bf16 %v6217_v49  ;;  %v9855_v51 = vunpack.c.h.bf16 %v6295_v55 }
  0xf0   : > { %v6433_v47 = vld [vmem:[%s5703_s18 + $0xb58] sm:$0xff]  ;;  %v2655_v7 = vmax.f32 %v2654_v62, %v1406_v30 }
  0xf1   : > { %9835 = vst [vmem:[#allocation111_spill] sm:$0xff] %v6433_v47  ;;  %v1430_v53 = vunpack.c.h.bf16 %v6433_v47  ;;  %v9842_v47 = vunpack.c.h.bf16 %v6167_v42  ;;  %v9850_v42 = vunpack.c.h.bf16 %v6325_v32  ;;  %v1875_v60 = vmax.f32 %v1874_v54, %v9853_v35 }
  0xf2   : > { %v2031_v25 = vmax.f32 %v2030_v57, %v9854_v12  ;;  %v2187_v45 = vmax.f32 %v2186_v39, %v9855_v51  ;;  %v9856_v32 = vunpack.c.h.bf16 %v6335_v27  ;;  %v2499_v52 = vmax.f32 %v2498_v2, %v1310_v1 }
  0xf3   : > { %v1718_v40 = vmax.f32 %v9842_v47, %v9841_v61  ;;  %v2342_v61 = vmax.f32 %v9850_v42, %v9849_v19  ;;  %v9851_v47 = vunpack.c.h.bf16 %v6146_v4  ;;  %v9857_v19 = vunpack.c.h.bf16 %v6149_v23 }
  0xf4   : > { %v1876_v54 = vmax.f32 %v1875_v60, %v9859_v13  ;;  %v2032_v57 = vmax.f32 %v2031_v25, %v9860_v26  ;;  %v9861_v12 = vunpack.c.h.bf16 %v6302_v58  ;;  %v9864_v35 = vunpack.c.h.bf16 %v6191_v6 }
  0xf5   : > { %v1563_v28 = vmax.f32 %v1562_v10, %v9851_v47  ;;  %v1719_v46 = vmax.f32 %v1718_v40, %v9852_v33  ;;  %v2343_v42 = vmax.f32 %v2342_v61, %v9856_v32  ;;  %v9858_v47 = vunpack.c.h.bf16 %v6184_v34 }
  0xf6   : > { %v2188_v39 = vmax.f32 %v2187_v45, %v9861_v12  ;;  %v9862_v33 = vunpack.c.h.bf16 %v6342_v37  ;;  %v9863_v61 = vunpack.c.h.bf16 %v6152_v17  ;;  %v2500_v1 = vmax.f32 %v2499_v52, %v1322_v56 }
  0xf7   : > { %v1564_v10 = vmax.f32 %v1563_v28, %v9857_v19  ;;  %v1720_v40 = vmax.f32 %v1719_v46, %v9858_v47  ;;  %v2656_v30 = vmax.f32 %v2655_v7, %v1418_v21  ;;  %v9865_v2 = vunpack.c.h.bf16 %v6229_v0 }
  0xf8   : > { %v2344_v32 = vmax.f32 %v2343_v42, %v9862_v33  ;;  %v9866_v60 = vunpack.c.h.bf16 %v6269_v16  ;;  %v9867_v51 = vunpack.c.h.bf16 %v6309_v50  ;;  %v9868_v19 = vunpack.c.h.bf16 %v6349_v36 }
  0xf9   : > { %v1565_v28 = vmax.f32 %v1564_v10, %v9863_v61  ;;  %v1721_v46 = vmax.f32 %v1720_v40, %v9864_v35  ;;  %v1877_v62 = vmax.f32 %v1876_v54, %v9865_v2  ;;  %v9869_v47 = vunpack.c.h.bf16 %v6156_v29 }
  0xfa   : > { %v2033_v25 = vmax.f32 %v2032_v57, %v9866_v60  ;;  %v2189_v45 = vmax.f32 %v2188_v39, %v9867_v51  ;;  %v2345_v42 = vmax.f32 %v2344_v32, %v9868_v19  ;;  %v9870_v13 = vunpack.c.h.bf16 %v6194_v5  ;;  %v9882_v51 = vld [vmem:[#allocation92_spill] sm:$0xff] }
  0xfb   : > { %v1566_v10 = vmax.f32 %v1565_v28, %v9869_v47  ;;  %v2501_v56 = vmax.f32 %v2500_v1, %v1334_v8  ;;  %v2657_v21 = vmax.f32 %v2656_v30, %v1430_v53  ;;  %v9871_v52 = vunpack.c.h.bf16 %v6232_v41  ;;  %v9878_v1 = vld [vmem:[#allocation84_spill] sm:$0xff] }
  0xfc   : > { %v1722_v40 = vmax.f32 %v1721_v46, %v9870_v13  ;;  %v9872_v54 = vunpack.c.h.bf16 %v6272_v22  ;;  %v9873_v57 = vunpack.c.h.bf16 %v6312_v43  ;;  %v9874_v39 = vunpack.c.h.bf16 %v6352_v24 }
  0xfd   : > { %v1878_v7 = vmax.f32 %v1877_v62, %v9871_v52  ;;  %v9875_v32 = vunpack.c.h.bf16 %v6159_v44  ;;  %v9876_v28 = vunpack.c.h.bf16 %v6197_v63  ;;  %v9877_v53 = vunpack.c.h.bf16 %v6400_v3  ;;  %v9880_v62 = vld [vmem:[#allocation87_spill] sm:$0xff] }
  0xfe   : > { %v2034_v26 = vmax.f32 %v2033_v25, %v9872_v54  ;;  %v2190_v12 = vmax.f32 %v2189_v45, %v9873_v57  ;;  %v2346_v33 = vmax.f32 %v2345_v42, %v9874_v39  ;;  %v2658_v46 = vmax.f32 %v2657_v21, %v1442_v38  ;;  %v9884_v42 = vld [vmem:[#allocation97_spill] sm:$0xff] }
  0xff   : > { %v1567_v61 = vmax.f32 %v1566_v10, %v9875_v32  ;;  %v1723_v35 = vmax.f32 %v1722_v40, %v9876_v28  ;;  %v2502_v8 = vmax.f32 %v2501_v56, %v9877_v53  ;;  %v9879_v30 = vunpack.c.h.bf16 %v9878_v1  ;;  %v9886_v10 = vld [vmem:[#allocation79_spill] sm:$0xff]  ;;  %v9888_v40 = vld [vmem:[#allocation81_spill] sm:$0xff] }
 0x100   : > { %v9881_v60 = vunpack.c.h.bf16 %v9880_v62  ;;  %v9883_v45 = vunpack.c.h.bf16 %v9882_v51  ;;  %v9885_v47 = vunpack.c.h.bf16 %v9884_v42  ;;  %v9887_v52 = vunpack.c.h.bf16 %v9886_v10  ;;  %v9890_v56 = vld [vmem:[#allocation105_spill] sm:$0xff]  ;;  %v9900_v51 = vld [vmem:[#allocation106_spill] sm:$0xff] }
 0x101   : > { %v1879_v2 = vmax.f32 %v1878_v7, %v9879_v30  ;;  %v9889_v57 = vunpack.c.h.bf16 %v9888_v40  ;;  %v9891_v38 = vunpack.c.h.bf16 %v9890_v56  ;;  %v2659_v32 = vmax.f32 %v2658_v46, %v1454_v59  ;;  %v9892_v7 = vld [vmem:[#allocation85_spill] sm:$0xff] }
 0x102   : > { %v2035_v25 = vmax.f32 %v2034_v26, %v9881_v60  ;;  %v2191_v19 = vmax.f32 %v2190_v12, %v9883_v45  ;;  %v2347_v13 = vmax.f32 %v2346_v33, %v9885_v47  ;;  %v1568_v54 = vmax.f32 %v1567_v61, %v9887_v52  ;;  %v9894_v26 = vld [vmem:[#allocation88_spill] sm:$0xff]  ;;  %v9896_v12 = vld [vmem:[#allocation93_spill] sm:$0xff]  ;;  %v9898_v33 = vld [vmem:[#allocation98_spill] sm:$0xff] }
 0x103   : > { %v1724_v39 = vmax.f32 %v1723_v35, %v9889_v57  ;;  %v2503_v21 = vmax.f32 %v2502_v8, %v9891_v38  ;;  %v9893_v28 = vunpack.c.h.bf16 %v9892_v7  ;;  %v9895_v30 = vunpack.c.h.bf16 %v9894_v26 }
 0x104   : > { %v9897_v45 = vunpack.c.h.bf16 %v9896_v12  ;;  %v9899_v47 = vunpack.c.h.bf16 %v9898_v33  ;;  %v1569_v61 = vrot.slane %v1568_v54, 4  ;;  %v9901_v35 = vunpack.c.h.bf16 %v9900_v51 }
 0x105   : > { %v1880_v53 = vmax.f32 %v1879_v2, %v9893_v28  ;;  %v2036_v60 = vmax.f32 %v2035_v25, %v9895_v30  ;;  %v1725_v52 = vrot.slane %v1724_v39, 4  ;;  %v2660_v56 = vmax.f32 %v2659_v32, %v1466_v9 }
 0x106   : > { %v2192_v3 = vmax.f32 %v2191_v19, %v9897_v45  ;;  %v2348_v42 = vmax.f32 %v2347_v13, %v9899_v47  ;;  %v2504_v57 = vmax.f32 %v2503_v21, %v9901_v35  ;;  %v1570_v2 = vmax.f32 %v1568_v54, %v1569_v61 }
 0x107   : > { %v1881_v8 = vrot.slane %v1880_v53, 4  ;;  %v2037_v59 = vrot.slane %v2036_v60, 4  ;;  %v1726_v28 = vmax.f32 %v1724_v39, %v1725_v52  ;;  %v2661_v25 = vrot.slane %v2660_v56, 4 }
 0x108   : > { %v2193_v46 = vrot.slane %v2192_v3, 4  ;;  %v2349_v38 = vrot.slane %v2348_v42, 4  ;;  %v2505_v24 = vrot.slane %v2504_v57, 4  ;;  %v1571_v33 = vrot.slane %v1570_v2, 2 }
 0x109   : > { %v1882_v30 = vmax.f32 %v1880_v53, %v1881_v8  ;;  %v2038_v12 = vmax.f32 %v2036_v60, %v2037_v59  ;;  %v1727_v13 = vrot.slane %v1726_v28, 2  ;;  %v2662_v43 = vmax.f32 %v2660_v56, %v2661_v25 }
 0x10a   : > { %v2194_v19 = vmax.f32 %v2192_v3, %v2193_v46  ;;  %v2350_v45 = vmax.f32 %v2348_v42, %v2349_v38  ;;  %v2506_v47 = vmax.f32 %v2504_v57, %v2505_v24  ;;  %v1572_v32 = vmax.f32 %v1570_v2, %v1571_v33 }
 0x10b   : > { %v1883_v26 = vrot.slane %v1882_v30, 2  ;;  %v2039_v51 = vrot.slane %v2038_v12, 2  ;;  %v1728_v35 = vmax.f32 %v1726_v28, %v1727_v13  ;;  %v2663_v7 = vrot.slane %v2662_v43, 2 }
 0x10c   : > { %v2195_v21 = vrot.slane %v2194_v19, 2  ;;  %v2351_v9 = vrot.slane %v2350_v45, 2  ;;  %v2507_v36 = vrot.slane %v2506_v47, 2  ;;  %v1573_v53 = vrot.slane %v1572_v32, 1 }
 0x10d   : > { %v1884_v54 = vmax.f32 %v1882_v30, %v1883_v26  ;;  %v2040_v39 = vmax.f32 %v2038_v12, %v2039_v51  ;;  %v1729_v60 = vrot.slane %v1728_v35, 1  ;;  %v2664_v42 = vmax.f32 %v2662_v43, %v2663_v7  ;;  %v9902_v30 = vld [vmem:[#allocation14_spill] sm:$0xff] }
 0x10e   : > { %v2196_v61 = vmax.f32 %v2194_v19, %v2195_v21  ;;  %v2352_v52 = vmax.f32 %v2350_v45, %v2351_v9  ;;  %v2508_v3 = vmax.f32 %v2506_v47, %v2507_v36  ;;  %v1574_v57 = vmax.f32 %v1572_v32, %v1573_v53  ;;  %v9904_v36 = vld [vmem:[#allocation13_spill] sm:$0xff]  ;;  %v9906_v47 = vld [vmem:[#allocation22_spill] sm:$0xff] }
 0x10f   : > { %v1885_v8 = vrot.slane %v1884_v54, 1  ;;  %v2041_v59 = vrot.slane %v2040_v39, 1  ;;  %v1730_v46 = vmax.f32 %v1728_v35, %v1729_v60  ;;  %v2665_v25 = vrot.slane %v2664_v42, 1  ;;  %v9908_v9 = vld [vmem:[#allocation21_spill] sm:$0xff]  ;;  %v9914_v60 = vld [vmem:[#allocation38_spill] sm:$0xff] }
 0x110   : > { %v2197_v24 = vrot.slane %v2196_v61, 1  ;;  %v2353_v56 = vrot.slane %v2352_v52, 1  ;;  %v2509_v38 = vrot.slane %v2508_v3, 1  ;;  %v9903_v19 = vunpack.c.l.bf16 %v9902_v30 }
 0x111   : > { %v1886_v33 = vmax.f32 %v1884_v54, %v1885_v8  ;;  %v2042_v2 = vmax.f32 %v2040_v39, %v2041_v59  ;;  %v2666_v51 = vmax.f32 %v2664_v42, %v2665_v25  ;;  %v2883_v12 = vsel %vm2827_vm0, %v1730_v46, %v1574_v57  ;;  %v9910_v54 = vld [vmem:[#allocation30_spill] sm:$0xff]  ;;  %v9916_v42 = vld [vmem:[#allocation37_spill] sm:$0xff] }
 0x112   : > { %v2198_v28 = vmax.f32 %v2196_v61, %v2197_v24  ;;  %v2354_v13 = vmax.f32 %v2352_v52, %v2353_v56  ;;  %v2510_v26 = vmax.f32 %v2508_v3, %v2509_v38  ;;  %v9905_v43 = vunpack.c.l.bf16 %v9904_v36  ;;  %v9912_v61 = vld [vmem:[#allocation29_spill] sm:$0xff]  ;;  %v9918_v56 = vld [vmem:[#allocation15_spill] sm:$0xff]  ;;  %v9920_v38 = vld [vmem:[#allocation46_spill] sm:$0xff] }
 0x113   : > { %v2884_v45 = vsel %vm2829_vm1, %v1886_v33, %v2883_v12  ;;  %v9907_v21 = vunpack.c.l.bf16 %v9906_v47  ;;  %v9909_v32 = vunpack.c.l.bf16 %v9908_v9  ;;  %v9911_v39 = vunpack.c.l.bf16 %v9910_v54  ;;  %v9922_v33 = vld [vmem:[#allocation45_spill] sm:$0xff] }
 0x114   : > { %v1471_v7 = vmax.f32 %v9905_v43, %v9903_v19  ;;  %v9913_v52 = vunpack.c.l.bf16 %v9912_v61  ;;  %v9915_v3 = vunpack.c.l.bf16 %v9914_v60  ;;  %v9917_v8 = vunpack.c.l.bf16 %v9916_v42  ;;  %v9924_v19 = vld [vmem:[#allocation54_spill] sm:$0xff]  ;;  %v9926_v43 = vld [vmem:[#allocation53_spill] sm:$0xff]  ;;  %v9930_v61 = vld [vmem:[#allocation31_spill] sm:$0xff] }
 0x115   : > { %v1627_v35 = vmax.f32 %v9909_v32, %v9907_v21  ;;  %v2885_v24 = vsel %vm2831_vm2, %v2042_v2, %v2884_v45  ;;  %v9919_v57 = vunpack.c.l.bf16 %v9918_v56  ;;  %v9921_v25 = vunpack.c.l.bf16 %v9920_v38  ;;  %v9928_v32 = vld [vmem:[#allocation23_spill] sm:$0xff]  ;;  %v9934_v42 = vld [vmem:[#allocation16_spill] sm:$0xff] }
 0x116   : > { %v1783_v53 = vmax.f32 %v9913_v52, %v9911_v39  ;;  %v1939_v59 = vmax.f32 %v9917_v8, %v9915_v3  ;;  %v9923_v12 = vunpack.c.l.bf16 %v9922_v33  ;;  %v9925_v36 = vunpack.c.l.bf16 %v9924_v19  ;;  %v9932_v52 = vld [vmem:[#allocation39_spill] sm:$0xff] }
 0x117   : > { %v1472_v46 = vmax.f32 %v1471_v7, %v9919_v57  ;;  %v9927_v47 = vunpack.c.l.bf16 %v9926_v43  ;;  %v2886_v9 = vsel %vm2833_vm3, %v2198_v28, %v2885_v24  ;;  %v9929_v54 = vunpack.c.l.bf16 %v9928_v32  ;;  %v9936_v57 = vld [vmem:[#allocation47_spill] sm:$0xff] }
 0x118   : > { %v2095_v30 = vmax.f32 %v9923_v12, %v9921_v25  ;;  %v9931_v2 = vunpack.c.l.bf16 %v9930_v61  ;;  %v9933_v7 = vunpack.c.l.bf16 %v9932_v52  ;;  %v2887_v3 = vsel %vm2835_vm4, %v2354_v13, %v2886_v9  ;;  %v9938_v33 = vld [vmem:[#allocation55_spill] sm:$0xff] }
 0x119   : > { %v2251_v21 = vmax.f32 %v9927_v47, %v9925_v36  ;;  %v1628_v39 = vmax.f32 %v1627_v35, %v9929_v54  ;;  %v9935_v8 = vunpack.c.l.bf16 %v9934_v42  ;;  %v9937_v38 = vunpack.c.l.bf16 %v9936_v57  ;;  %v9940_v35 = vld [vmem:[#allocation24_spill] sm:$0xff]  ;;  %v9952_v42 = vld [vmem:[#allocation25_spill] sm:$0xff] }
 0x11a   : > { %v1784_v45 = vmax.f32 %v1783_v53, %v9931_v2  ;;  %v1940_v60 = vmax.f32 %v1939_v59, %v9933_v7  ;;  %v9939_v12 = vunpack.c.l.bf16 %v9938_v33  ;;  %v2888_v24 = vsel %vm2837_vm5, %v2510_v26, %v2887_v3  ;;  %v9942_v53 = vld [vmem:[#allocation32_spill] sm:$0xff]  ;;  %v9954_v57 = vld [vmem:[#allocation33_spill] sm:$0xff] }
 0x11b   : > { %v1473_v56 = vmax.f32 %v1472_v46, %v9935_v8  ;;  %v2096_v25 = vmax.f32 %v2095_v30, %v9937_v38  ;;  %v9941_v19 = vunpack.c.l.bf16 %v9940_v35  ;;  %v9943_v43 = vunpack.c.l.bf16 %v9942_v53  ;;  %v9944_v59 = vld [vmem:[#allocation40_spill] sm:$0xff]  ;;  %v9946_v46 = vld [vmem:[#allocation17_spill] sm:$0xff] }
 0x11c   : > { %v2252_v28 = vmax.f32 %v2251_v21, %v9939_v12  ;;  %v9945_v32 = vunpack.c.l.bf16 %v9944_v59  ;;  %v2889_v9 = vsel %vm2839_vm6, %v2666_v51, %v2888_v24  ;;  %v9947_v54 = vunpack.c.l.bf16 %v9946_v46  ;;  %v9948_v30 = vld [vmem:[#allocation48_spill] sm:$0xff]  ;;  %v9956_v33 = vld [vmem:[#allocation41_spill] sm:$0xff]  ;;  %v9958_v51 = vld [vmem:[#allocation18_spill] sm:$0xff] }
 0x11d   : > { %v1629_v36 = vmax.f32 %v1628_v39, %v9941_v19  ;;  %v1785_v47 = vmax.f32 %v1784_v45, %v9943_v43  ;;  %v9949_v2 = vunpack.c.l.bf16 %v9948_v30  ;;  %v9950_v21 = vld [vmem:[#allocation56_spill] sm:$0xff]  ;;  %v2976_v3 = vpack.c.bf16 %v2889_v9, %v2889_v9  ;;  %v9966_v9 = vld [vmem:[#allocation61_spill] sm:$0xff] }
 0x11e   : > { %v1941_v13 = vmax.f32 %v1940_v60, %v9945_v32  ;;  %v1474_v61 = vmax.f32 %v1473_v56, %v9947_v54  ;;  %v9951_v7 = vunpack.c.l.bf16 %v9950_v21  ;;  %v9953_v39 = vunpack.c.l.bf16 %v9952_v42  ;;  %v9960_v56 = vld [vmem:[#allocation49_spill] sm:$0xff]  ;;  %v9968_v54 = vld [vmem:[#allocation26_spill] sm:$0xff] }
 0x11f   : > { %v2097_v52 = vmax.f32 %v2096_v25, %v9949_v2  ;;  %v9955_v45 = vunpack.c.l.bf16 %v9954_v57  ;;  %v9957_v60 = vunpack.c.l.bf16 %v9956_v33  ;;  %v9959_v24 = vunpack.c.l.bf16 %v9958_v51  ;;  %v9962_v25 = vld [vmem:[#allocation57_spill] sm:$0xff]  ;;  %4300 = vmatprep.mubr.bf16.mxu0 %v2976_v3  ;;  %v9970_v2 = vld [vmem:[#allocation34_spill] sm:$0xff]  ;;  %v9978_v33 = vld [vmem:[#allocation19_spill] sm:$0xff] }
 0x120   : > { %v2253_v26 = vmax.f32 %v2252_v28, %v9951_v7  ;;  %v1630_v8 = vmax.f32 %v1629_v36, %v9953_v39  ;;  %v9961_v19 = vunpack.c.l.bf16 %v9960_v56  ;;  %v9963_v43 = vunpack.c.l.bf16 %v9962_v25  ;;  %v9964_v28 = vld [vmem:[#allocation62_spill] sm:$0xff]  ;;  %v9976_v57 = vld [vmem:[#allocation69_spill] sm:$0xff] }
 0x121   : > { %v1786_v38 = vmax.f32 %v1785_v47, %v9955_v45  ;;  %v1942_v12 = vmax.f32 %v1941_v13, %v9957_v60  ;;  %v1475_v35 = vmax.f32 %v1474_v61, %v9959_v24  ;;  %v9965_v32 = vunpack.c.l.bf16 %v9964_v28  ;;  %v9972_v7 = vld [vmem:[#allocation42_spill] sm:$0xff] }
 0x122   : > { %v2098_v53 = vmax.f32 %v2097_v52, %v9961_v19  ;;  %v2254_v59 = vmax.f32 %v2253_v26, %v9963_v43  ;;  %v9967_v46 = vunpack.c.l.bf16 %v9966_v9  ;;  %v9969_v47 = vunpack.c.l.bf16 %v9968_v54  ;;  %v9974_v39 = vld [vmem:[#allocation70_spill] sm:$0xff]  ;;  %v9984_v43 = vld [vmem:[#allocation63_spill] sm:$0xff] }
 0x123   : > { %v9971_v13 = vunpack.c.l.bf16 %v9970_v2  ;;  %v9973_v61 = vunpack.c.l.bf16 %v9972_v7  ;;  %v9975_v52 = vunpack.c.l.bf16 %v9974_v39  ;;  %v9977_v45 = vunpack.c.l.bf16 %v9976_v57  ;;  %v9980_v24 = vld [vmem:[#allocation50_spill] sm:$0xff]  ;;  %v9990_v2 = vld [vmem:[#allocation43_spill] sm:$0xff] }
 0x124   : > { %v2407_v36 = vmax.f32 %v9967_v46, %v9965_v32  ;;  %v1631_v30 = vmax.f32 %v1630_v8, %v9969_v47  ;;  %v9979_v60 = vunpack.c.l.bf16 %v9978_v33  ;;  %v9981_v56 = vunpack.c.l.bf16 %v9980_v24  ;;  %v9982_v19 = vld [vmem:[#allocation58_spill] sm:$0xff]  ;;  %v9986_v32 = vld [vmem:[#allocation27_spill] sm:$0xff] }
 0x125   : > { %v1787_v21 = vmax.f32 %v1786_v38, %v9971_v13  ;;  %v1943_v42 = vmax.f32 %v1942_v12, %v9973_v61  ;;  %v2563_v26 = vmax.f32 %v9977_v45, %v9975_v52  ;;  %v9983_v25 = vunpack.c.l.bf16 %v9982_v19  ;;  %v9988_v46 = vld [vmem:[#allocation35_spill] sm:$0xff]  ;;  %v9994_v52 = vld [vmem:[#allocation20_spill] sm:$0xff] }
 0x126   : > { %v1476_v51 = vmax.f32 %v1475_v35, %v9979_v60  ;;  %v2099_v3 = vmax.f32 %v2098_v53, %v9981_v56  ;;  %v9985_v28 = vunpack.c.l.bf16 %v9984_v43  ;;  %v9987_v9 = vunpack.c.l.bf16 %v9986_v32  ;;  %v9992_v61 = vld [vmem:[#allocation71_spill] sm:$0xff]  ;;  %v10000_v56 = vld [vmem:[#allocation64_spill] sm:$0xff] }
 0x127   : > { %v2255_v8 = vmax.f32 %v2254_v59, %v9983_v25  ;;  %v9989_v54 = vunpack.c.l.bf16 %v9988_v46  ;;  %v9991_v13 = vunpack.c.l.bf16 %v9990_v2  ;;  %v9993_v35 = vunpack.c.l.bf16 %v9992_v61  ;;  %v9996_v45 = vld [vmem:[#allocation51_spill] sm:$0xff]  ;;  %v10002_v25 = vld [vmem:[#allocation28_spill] sm:$0xff] }
 0x128   : > { %v2408_v38 = vmax.f32 %v2407_v36, %v9985_v28  ;;  %v1632_v12 = vmax.f32 %v1631_v30, %v9987_v9  ;;  %v9995_v53 = vunpack.c.l.bf16 %v9994_v52  ;;  %v9997_v59 = vunpack.c.l.bf16 %v9996_v45  ;;  %v9998_v60 = vld [vmem:[#allocation59_spill] sm:$0xff]  ;;  %v10004_v28 = vld [vmem:[#allocation36_spill] sm:$0xff] }
 0x129   : > { %v1788_v47 = vmax.f32 %v1787_v21, %v9989_v54  ;;  %v1944_v7 = vmax.f32 %v1943_v42, %v9991_v13  ;;  %v2564_v39 = vmax.f32 %v2563_v26, %v9993_v35  ;;  %v9999_v36 = vunpack.c.l.bf16 %v9998_v60  ;;  %v10006_v9 = vld [vmem:[#allocation44_spill] sm:$0xff] }
 0x12a   : > { %v1477_v57 = vmax.f32 %v1476_v51, %v9995_v53  ;;  %v2100_v33 = vmax.f32 %v2099_v3, %v9997_v59  ;;  %v10001_v30 = vunpack.c.l.bf16 %v10000_v56  ;;  %v10003_v21 = vunpack.c.l.bf16 %v10002_v25  ;;  %v10008_v54 = vld [vmem:[#allocation72_spill] sm:$0xff] }
 0x12b   : > { %v2256_v24 = vmax.f32 %v2255_v8, %v9999_v36  ;;  %v10005_v42 = vunpack.c.l.bf16 %v10004_v28  ;;  %v10007_v26 = vunpack.c.l.bf16 %v10006_v9  ;;  %v10009_v51 = vunpack.c.l.bf16 %v10008_v54  ;;  %v10010_v3 = vld [vmem:[#allocation52_spill] sm:$0xff]  ;;  %v10020_v54 = vld [vmem:[#allocation74_spill] sm:$0xff] }
 0x12c   : > { %v2409_v19 = vmax.f32 %v2408_v38, %v10001_v30  ;;  %v1633_v43 = vmax.f32 %v1632_v12, %v10003_v21  ;;  %v1478_v13 = vrot.slane %v1477_v57, 4  ;;  %v10011_v61 = vunpack.c.l.bf16 %v10010_v3  ;;  %v10012_v8 = vld [vmem:[#allocation60_spill] sm:$0xff]  ;;  %v10014_v38 = vld [vmem:[#allocation65_spill] sm:$0xff] }
 0x12d   : > { %v1789_v32 = vmax.f32 %v1788_v47, %v10005_v42  ;;  %v1945_v46 = vmax.f32 %v1944_v7, %v10007_v26  ;;  %v2565_v2 = vmax.f32 %v2564_v39, %v10009_v51  ;;  %v10013_v52 = vunpack.c.l.bf16 %v10012_v8  ;;  %v10016_v47 = vld [vmem:[#allocation73_spill] sm:$0xff]  ;;  %v10018_v39 = vld [vmem:[#allocation66_spill] sm:$0xff]  ;;  %v10022_v8 = vld [vmem:[#allocation67_spill] sm:$0xff] }
 0x12e   : > { %v2101_v35 = vmax.f32 %v2100_v33, %v10011_v61  ;;  %v10015_v45 = vunpack.c.l.bf16 %v10014_v38  ;;  %v1634_v12 = vrot.slane %v1633_v43, 4  ;;  %v10017_v56 = vunpack.c.l.bf16 %v10016_v47 }
 0x12f   : > { %v2257_v53 = vmax.f32 %v2256_v24, %v10013_v52  ;;  %v1790_v60 = vrot.slane %v1789_v32, 4  ;;  %v1946_v36 = vrot.slane %v1945_v46, 4  ;;  %v1479_v7 = vmax.f32 %v1477_v57, %v1478_v13  ;;  %v10024_v13 = vld [vmem:[#allocation75_spill] sm:$0xff] }
 0x130   : > { %v2410_v59 = vmax.f32 %v2409_v19, %v10015_v45  ;;  %v2566_v30 = vmax.f32 %v2565_v2, %v10017_v56  ;;  %v2102_v25 = vrot.slane %v2101_v35, 4  ;;  %v10019_v28 = vunpack.c.l.bf16 %v10018_v39 }
 0x131   : > { %v2258_v21 = vrot.slane %v2257_v53, 4  ;;  %v1635_v9 = vmax.f32 %v1633_v43, %v1634_v12  ;;  %v1791_v33 = vmax.f32 %v1789_v32, %v1790_v60  ;;  %v1947_v26 = vmax.f32 %v1945_v46, %v1946_v36  ;;  %v10026_v32 = vld [vmem:[#allocation68_spill] sm:$0xff] }
 0x132   : > { %v2411_v42 = vmax.f32 %v2410_v59, %v10019_v28  ;;  %v10021_v24 = vunpack.c.l.bf16 %v10020_v54  ;;  %v1480_v3 = vrot.slane %v1479_v7, 2  ;;  %v2103_v19 = vmax.f32 %v2101_v35, %v2102_v25  ;;  %v10028_v35 = vld [vmem:[#allocation76_spill] sm:$0xff] }
 0x133   : > { %v2259_v61 = vmax.f32 %v2257_v53, %v2258_v21  ;;  %v10023_v52 = vunpack.c.l.bf16 %v10022_v8  ;;  %v1636_v45 = vrot.slane %v1635_v9, 2  ;;  %v1792_v2 = vrot.slane %v1791_v33, 2 }
 0x134   : > { %v2567_v51 = vmax.f32 %v2566_v30, %v10021_v24  ;;  %v1948_v57 = vrot.slane %v1947_v26, 2  ;;  %v10025_v47 = vunpack.c.l.bf16 %v10024_v13  ;;  %v1481_v39 = vmax.f32 %v1479_v7, %v1480_v3 }
 0x135   : > { %v2412_v38 = vmax.f32 %v2411_v42, %v10023_v52  ;;  %v2104_v59 = vrot.slane %v2103_v19, 2  ;;  %v2260_v43 = vrot.slane %v2259_v61, 2  ;;  %v10027_v46 = vunpack.c.l.bf16 %v10026_v32 }
 0x136   : > { %v2568_v56 = vmax.f32 %v2567_v51, %v10025_v47  ;;  %v1637_v60 = vmax.f32 %v1635_v9, %v1636_v45  ;;  %v1793_v36 = vmax.f32 %v1791_v33, %v1792_v2  ;;  %v1949_v30 = vmax.f32 %v1947_v26, %v1948_v57  ;;  %v10030_v57 = vld [vmem:[#allocation78_spill] sm:$0xff] }
 0x137   : > { %v2413_v12 = vmax.f32 %v2412_v38, %v10027_v46  ;;  %v10029_v53 = vunpack.c.l.bf16 %v10028_v35  ;;  %v1482_v21 = vrot.slane %v1481_v39, 1  ;;  %v2105_v28 = vmax.f32 %v2103_v19, %v2104_v59  ;;  %v10032_v19 = vld [vmem:[#allocation77_spill] sm:$0xff]  ;;  %v10035_v35 = vld [vmem:[#allocation80_spill] sm:$0xff] }
 0x138   : > { %v2261_v42 = vmax.f32 %v2259_v61, %v2260_v43  ;;  %v1638_v24 = vrot.slane %v1637_v60, 1  ;;  %v1794_v8 = vrot.slane %v1793_v36, 1  ;;  %v1950_v52 = vrot.slane %v1949_v30, 1 }
 0x139   : > { %v2569_v25 = vmax.f32 %v2568_v56, %v10029_v53  ;;  %v2414_v54 = vrot.slane %v2413_v12, 4  ;;  %v1483_v7 = vmax.f32 %v1481_v39, %v1482_v21  ;;  %v2106_v3 = vrot.slane %v2105_v28, 1 }
 0x13a   : > { %v2262_v13 = vrot.slane %v2261_v42, 1  ;;  %v1639_v32 = vmax.f32 %v1637_v60, %v1638_v24  ;;  %v1795_v38 = vmax.f32 %v1793_v36, %v1794_v8  ;;  %v1951_v9 = vmax.f32 %v1949_v30, %v1950_v52  ;;  %v10037_v60 = vld [vmem:[#allocation83_spill] sm:$0xff]  ;;  %v10039_v30 = vld [vmem:[#allocation82_spill] sm:$0xff] }
 0x13b   : > { %v2570_v51 = vrot.slane %v2569_v25, 4  ;;  %v2415_v47 = vmax.f32 %v2413_v12, %v2414_v54  ;;  %v2107_v26 = vmax.f32 %v2105_v28, %v2106_v3  ;;  %v10031_v56 = vunpack.c.l.bf16 %v10030_v57  ;;  %v10042_v8 = vld [vmem:[#allocation86_spill] sm:$0xff] }
 0x13c   : > { %v2263_v45 = vmax.f32 %v2261_v42, %v2262_v13  ;;  %v10033_v61 = vunpack.c.l.bf16 %v10032_v19  ;;  %v2828_v46 = vsel %vm2827_vm0, %v1639_v32, %v1483_v7  ;;  %v10034_v39 = vunpack.c.l.bf16 %v6170_v31 }
 0x13d   : > { %v2571_v33 = vmax.f32 %v2569_v25, %v2570_v51  ;;  %v2416_v2 = vrot.slane %v2415_v47, 2  ;;  %v10036_v53 = vunpack.c.l.bf16 %v10035_v35  ;;  %v10038_v36 = vunpack.c.l.bf16 %v10037_v60  ;;  %v10053_v35 = vld [vmem:[#allocation90_spill] sm:$0xff] }
 0x13e   : > { %v1549_v59 = vmax.f32 %v10033_v61, %v10031_v56  ;;  %v10040_v25 = vunpack.c.l.bf16 %v10039_v30  ;;  %v2830_v42 = vsel %vm2829_vm1, %v1795_v38, %v2828_v46  ;;  %v10041_v54 = vunpack.c.l.bf16 %v6146_v4 }
 0x13f   : > { %v2572_v43 = vrot.slane %v2571_v33, 2  ;;  %v1705_v12 = vmax.f32 %v10036_v53, %v10034_v39  ;;  %v2417_v28 = vmax.f32 %v2415_v47, %v2416_v2  ;;  %v10043_v52 = vunpack.c.l.bf16 %v10042_v8 }
 0x140   : > { %v1861_v21 = vmax.f32 %v10040_v25, %v10038_v36  ;;  %v1550_v24 = vmax.f32 %v1549_v59, %v10041_v54  ;;  %v10044_v51 = vunpack.c.l.bf16 %v6245_v18  ;;  %v2832_v3 = vsel %vm2831_vm2, %v1951_v9, %v2830_v42  ;;  %v5107_v36 = vld [vmem:[#allocation5 + $0x100] ss:$8 sps:$4 sm:$0xff]  }
 0x141   : > { %v2573_v31 = vmax.f32 %v2571_v33, %v2572_v43  ;;  %v10045_v13 = vunpack.c.l.bf16 %v6177_v11  ;;  %v10046_v57 = vunpack.c.l.bf16 %v6217_v49  ;;  %v2418_v47 = vrot.slane %v2417_v28, 1 }
 0x142   : > { %v2017_v7 = vmax.f32 %v10044_v51, %v10043_v52  ;;  %v2834_v38 = vsel %vm2833_vm3, %v2107_v26, %v2832_v3  ;;  %v10047_v4 = vunpack.c.l.bf16 %v6149_v23  ;;  %v10048_v19 = vunpack.c.l.bf16 %v6255_v20  ;;  %v10055_v20 = vld [vmem:[#allocation89_spill] sm:$0xff] }
 0x143   : > { %v1706_v32 = vmax.f32 %v1705_v12, %v10045_v13  ;;  %v1862_v56 = vmax.f32 %v1861_v21, %v10046_v57  ;;  %v2574_v18 = vrot.slane %v2573_v31, 1  ;;  %v2836_v33 = vsel %vm2835_vm4, %v2263_v45, %v2834_v38 }
 0x144   : > { %v1551_v2 = vmax.f32 %v1550_v24, %v10047_v4  ;;  %v2018_v61 = vmax.f32 %v2017_v7, %v10048_v19  ;;  %v10049_v9 = vunpack.c.l.bf16 %v6184_v34  ;;  %v10050_v11 = vunpack.c.l.bf16 %v6223_v14  ;;  %v5115_v4 = vld [vmem:[#allocation5 + $0x114] ss:$8 sps:$4 sm:$0xff]  }
 0x145   : > { %v2419_v49 = vmax.f32 %v2417_v28, %v2418_v47  ;;  %v10051_v46 = vunpack.c.l.bf16 %v6152_v17  ;;  %v10052_v26 = vunpack.c.l.bf16 %v6262_v48  ;;  %v10054_v53 = vunpack.c.l.bf16 %v10053_v35  ;;  %v10060_v17 = vld [vmem:[#allocation94_spill] sm:$0xff] }
 0x146   : > { %v1707_v59 = vmax.f32 %v1706_v32, %v10049_v9  ;;  %v1863_v43 = vmax.f32 %v1862_v56, %v10050_v11  ;;  %v10056_v12 = vunpack.c.l.bf16 %v10055_v20  ;;  %v2575_v45 = vmax.f32 %v2573_v31, %v2574_v18  ;;  %v10074_v18 = vld [vmem:[#allocation100_spill] sm:$0xff] }
 0x147   : > { %v1552_v39 = vmax.f32 %v1551_v2, %v10051_v46  ;;  %v2019_v23 = vmax.f32 %v2018_v61, %v10052_v26  ;;  %v10057_v34 = vunpack.c.l.bf16 %v6191_v6  ;;  %v10058_v14 = vunpack.c.l.bf16 %v6229_v0 }
 0x148   : > { %v2173_v60 = vmax.f32 %v10056_v12, %v10054_v53  ;;  %v10059_v21 = vunpack.c.l.bf16 %v6332_v15  ;;  %v10061_v28 = vunpack.c.l.bf16 %v10060_v17  ;;  %v2838_v48 = vsel %vm2837_vm5, %v2419_v49, %v2836_v33  ;;  %v10086_v53 = vld [vmem:[#allocation85_spill] sm:$0xff] }
 0x149   : > { %v1708_v30 = vmax.f32 %v1707_v59, %v10057_v34  ;;  %v1864_v25 = vmax.f32 %v1863_v43, %v10058_v14  ;;  %v10062_v54 = vunpack.c.l.bf16 %v6156_v29  ;;  %v10063_v8 = vunpack.c.l.bf16 %v6269_v16 }
 0x14a   : > { %v2329_v42 = vmax.f32 %v10061_v28, %v10059_v21  ;;  %v10064_v51 = vunpack.c.l.bf16 %v6295_v55  ;;  %v2840_v7 = vsel %vm2839_vm6, %v2575_v45, %v2838_v48  ;;  %v10065_v0 = vunpack.c.l.bf16 %v6194_v5  ;;  %v10094_v28 = vld [vmem:[#allocation91_spill] sm:$0xff]  ;;  %v10096_v48 = vld [vmem:[#allocation109_spill] sm:$0xff] }
 0x14b   : > { %v1553_v24 = vmax.f32 %v1552_v39, %v10062_v54  ;;  %v2020_v52 = vmax.f32 %v2019_v23, %v10063_v8  ;;  %v10066_v15 = vunpack.c.l.bf16 %v6232_v41  ;;  %v10067_v13 = vunpack.c.l.bf16 %v6335_v27  ;;  %v10083_v39 = vld [vmem:[#allocation107_spill] sm:$0xff] }
 0x14c   : > { %v2174_v6 = vmax.f32 %v2173_v60, %v10064_v51  ;;  %v1709_v31 = vmax.f32 %v1708_v30, %v10065_v0  ;;  %v2969_v57 = vpack.c.bf16 %v2840_v7, %v2840_v7  ;;  %v10068_v29 = vunpack.c.l.bf16 %v6159_v44  ;;  %v10076_v44 = vld [vmem:[#allocation99_spill] sm:$0xff]  ;;  %v10098_v51 = vld [vmem:[#allocation96_spill] sm:$0xff]  ;;  %v10100_v0 = vld [vmem:[#allocation102_spill] sm:$0xff] }
 0x14d   : > { %v1865_v3 = vmax.f32 %v1864_v25, %v10066_v15  ;;  %v2330_v32 = vmax.f32 %v2329_v42, %v10067_v13  ;;  %v10069_v16 = vunpack.c.l.bf16 %v6272_v22  ;;  %v10070_v55 = vunpack.c.l.bf16 %v6302_v58  ;;  %v10092_v25 = vld [vmem:[#allocation88_spill] sm:$0xff] }
 0x14e   : > { %v1554_v56 = vmax.f32 %v1553_v24, %v10068_v29  ;;  %v10071_v5 = vunpack.c.l.bf16 %v6197_v63  ;;  %v10072_v41 = vunpack.c.l.bf16 %v9878_v1  ;;  %v10073_v27 = vunpack.c.l.bf16 %v6342_v37  ;;  %4178 = vmatmul.mubr.bf16.vlgmr.msra.gmra.mrb[0].mxu1 %v2969_v57  ;;  %v10081_v1 = vld [vmem:[#allocation108_spill] sm:$0xff]  ;;  %v5121_v24 = vld [vmem:[#allocation5 + $0x124] ss:$8 sps:$4 sm:$0xff]  }
 0x14f   : > { %v2021_v47 = vmax.f32 %v2020_v52, %v10069_v16  ;;  %v2175_v38 = vmax.f32 %v2174_v6, %v10070_v55  ;;  %v10075_v33 = vunpack.c.l.bf16 %v10074_v18  ;;  %v10077_v9 = vunpack.c.l.bf16 %v10076_v44  ;;  %4187 = vmatpush1.bf16.msra.mxu1 %v5107_v36  ;;  %v10110_v44 = vld [vmem:[#allocation93_spill] sm:$0xff] }
 0x150   : > { %v1710_v2 = vmax.f32 %v1709_v31, %v10071_v5  ;;  %v1866_v19 = vmax.f32 %v1865_v3, %v10072_v41  ;;  %v2331_v61 = vmax.f32 %v2330_v32, %v10073_v27  ;;  %v10078_v22 = vunpack.c.l.bf16 %v9886_v10  ;;  %v10088_v10 = vld [vmem:[#allocation95_spill] sm:$0xff]  ;;  %4188 = vmatprep.subr.bf16.mxu1 %v5115_v4  ;;  %v10102_v32 = vld [vmem:[#allocation92_spill] sm:$0xff]  ;;  %v10106_v4 = vld [vmem:[#allocation97_spill] sm:$0xff] }
 0x151   : > { %v2485_v59 = vmax.f32 %v10077_v9, %v10075_v33  ;;  %v10079_v11 = vunpack.c.l.bf16 %v9880_v62  ;;  %v10080_v63 = vunpack.c.l.bf16 %v6309_v50  ;;  %v10082_v46 = vunpack.c.l.bf16 %v10081_v1  ;;  %v10090_v62 = vld [vmem:[#allocation101_spill] sm:$0xff]  ;;  %v5113_v50 = vld [vmem:[#allocation5 + $0x110] ss:$8 sps:$4 sm:$0xff]  }
 0x152   : > { %v1555_v58 = vmax.f32 %v1554_v56, %v10078_v22  ;;  %v10084_v37 = vunpack.c.l.bf16 %v10083_v39  ;;  %v10085_v23 = vunpack.c.l.bf16 %v9888_v40  ;;  %v10087_v20 = vunpack.c.l.bf16 %v10086_v53  ;;  %v10104_v56 = vld [vmem:[#allocation110_spill] sm:$0xff]  ;;  %v10108_v41 = vld [vmem:[#allocation103_spill] sm:$0xff] }
 0x153   : > { %v2022_v43 = vmax.f32 %v2021_v47, %v10079_v11  ;;  %v2176_v49 = vmax.f32 %v2175_v38, %v10080_v63  ;;  %v10089_v60 = vunpack.c.l.bf16 %v10088_v10  ;;  %v10091_v34 = vunpack.c.l.bf16 %v10090_v62  ;;  %4189 = vmatpush1.bf16.msra.mxu1 %v5113_v50  ;;  %v10112_v22 = vld [vmem:[#allocation111_spill] sm:$0xff]  ;;  %v10114_v1 = vld [vmem:[#allocation98_spill] sm:$0xff] }
 0x154   : > { %v2641_v26 = vmax.f32 %v10084_v37, %v10082_v46  ;;  %v1711_v35 = vmax.f32 %v1710_v2, %v10085_v23  ;;  %v1867_v12 = vmax.f32 %v1866_v19, %v10087_v20  ;;  %v1556_v14 = vrot.slane %v1555_v58, 4  ;;  %4190 = vmatprep.subr.bf16.mxu1 %v5121_v24  ;;  %v10116_v37 = vld [vmem:[#allocation104_spill] sm:$0xff] }
 0x155   : > { %v2332_v45 = vmax.f32 %v2331_v61, %v10089_v60  ;;  %v2486_v30 = vmax.f32 %v2485_v59, %v10091_v34  ;;  %v10093_v21 = vunpack.c.l.bf16 %v10092_v25  ;;  %v10095_v42 = vunpack.c.l.bf16 %v10094_v28  ;;  %v5119_v61 = vld [vmem:[#allocation5 + $0x120] ss:$8 sps:$4 sm:$0xff]   ;;  %v5125_v25 = vld [vmem:[#allocation5 + $0x130] ss:$8 sps:$4 sm:$0xff]  }
 0x156   : > { %v10097_v40 = vunpack.c.l.bf16 %v10096_v48  ;;  %v1712_v8 = vrot.slane %v1711_v35, 4  ;;  %v1868_v52 = vrot.slane %v1867_v12, 4  ;;  %v10099_v6 = vunpack.c.l.bf16 %v10098_v51 }
 0x157   : > { %v2023_v17 = vmax.f32 %v2022_v43, %v10093_v21  ;;  %v2177_v36 = vmax.f32 %v2176_v49, %v10095_v42  ;;  %v10101_v31 = vunpack.c.l.bf16 %v10100_v0  ;;  %v1557_v3 = vmax.f32 %v1555_v58, %v1556_v14  ;;  %v5127_v43 = vld [vmem:[#allocation5 + $0x134] ss:$8 sps:$4 sm:$0xff]   ;;  %4191 = vmatpush1.bf16.msra.mxu1 %v5119_v61  ;;  %v10122_v42 = vld [vmem:[#allocation113_spill] sm:$0xff] }
 0x158   : > { %v2642_v54 = vmax.f32 %v2641_v26, %v10097_v40  ;;  %v2333_v7 = vmax.f32 %v2332_v45, %v10099_v6  ;;  %v10103_v57 = vunpack.c.l.bf16 %v10102_v32  ;;  %v10105_v16 = vunpack.c.l.bf16 %v10104_v56  ;;  %4192 = vmatprep.subr.bf16.mxu1 %v5127_v43  ;;  %v5133_v40 = vld [vmem:[#allocation5 + $0x144] ss:$8 sps:$4 sm:$0xff]  }
 0x159   : > { %v2487_v15 = vmax.f32 %v2486_v30, %v10101_v31  ;;  %v2024_v13 = vrot.slane %v2023_v17, 4  ;;  %v1713_v55 = vmax.f32 %v1711_v35, %v1712_v8  ;;  %v1869_v38 = vmax.f32 %v1867_v12, %v1868_v52  ;;  %v10118_v12 = vld [vmem:[#allocation112_spill] sm:$0xff]  ;;  %v10120_v30 = vld [vmem:[#allocation105_spill] sm:$0xff]  ;;  %v10124_v52 = vld [vmem:[#allocation106_spill] sm:$0xff] }
 0x15a   : > { %v2178_v29 = vmax.f32 %v2177_v36, %v10103_v57  ;;  %v2643_v47 = vmax.f32 %v2642_v54, %v10105_v16  ;;  %v10107_v5 = vunpack.c.l.bf16 %v10106_v4  ;;  %v10109_v19 = vunpack.c.l.bf16 %v10108_v41  ;;  %v5173_v41 = vld [vmem:[#allocation5 + $0x1b0] ss:$8 sps:$4 sm:$0xff]  }
 0x15b   : > { %v1558_v18 = vrot.slane %v1557_v3, 2  ;;  %v2025_v33 = vmax.f32 %v2023_v17, %v2024_v13  ;;  %v10111_v9 = vunpack.c.l.bf16 %v10110_v44  ;;  %v10113_v58 = vunpack.c.l.bf16 %v10112_v22  ;;  %4193 = vmatpush1.bf16.msra.mxu1 %v5125_v25  ;;  %v6852_v22 = vld [vmem:[%s5703_s18 + $0x98] sm:$0xff]  ;;  %v7032_v25 = vld [vmem:[%s5703_s18 + $0x788] sm:$0xff] }
 0x15c   : > { %v2334_v2 = vmax.f32 %v2333_v7, %v10107_v5  ;;  %v2488_v27 = vmax.f32 %v2487_v15, %v10109_v19  ;;  %v1714_v63 = vrot.slane %v1713_v55, 2  ;;  %v1870_v49 = vrot.slane %v1869_v38, 2  ;;  %v6837_v7 = vld [vmem:[%s5703_s18 + $0x8] sm:$0xff]  ;;  %4194 = vmatprep.subr.bf16.mxu1 %v5133_v40  ;;  %10131 = vst [vmem:[#allocation81_spill] sm:$0xff] %v6852_v22  ;;  %10168 = vst [vmem:[#allocation70_spill] sm:$0xff] %v7032_v25 }
 0x15d   : > { %v2179_v59 = vmax.f32 %v2178_v29, %v10111_v9  ;;  %v2644_v11 = vmax.f32 %v2643_v47, %v10113_v58  ;;  %v10115_v46 = vunpack.c.l.bf16 %v10114_v1  ;;  %v10117_v26 = vunpack.c.l.bf16 %v10116_v37  ;;  %10126 = vst [vmem:[#allocation84_spill] sm:$0xff] %v6837_v7  ;;  %v5131_v47 = vld [vmem:[#allocation5 + $0x140] ss:$8 sps:$4 sm:$0xff]   ;;  %v5169_v58 = vld [vmem:[#allocation5 + $0x1a4] ss:$8 sps:$4 sm:$0xff]  }
 0x15e   : > { %v1559_v35 = vmax.f32 %v1557_v3, %v1558_v18  ;;  %v2026_v53 = vrot.slane %v2025_v33, 2  ;;  %v10119_v10 = vunpack.c.l.bf16 %v10118_v12  ;;  %v1715_v45 = vmax.f32 %v1713_v55, %v1714_v63  ;;  %v10127_v3 = vld [vmem:[#allocation114_spill] sm:$0xff]  ;;  %v6842_v55 = vld [vmem:[%s5703_s18 + $0x38] sm:$0xff] }
 0x15f   : > { %v2335_v39 = vmax.f32 %v2334_v2, %v10115_v46  ;;  %v2489_v23 = vmax.f32 %v2488_v27, %v10117_v26  ;;  %v2180_v20 = vrot.slane %v2179_v59, 4  ;;  %v1871_v62 = vmax.f32 %v1869_v38, %v1870_v49  ;;  %10129 = vst [vmem:[#allocation87_spill] sm:$0xff] %v6842_v55  ;;  %v5139_v2 = vld [vmem:[#allocation5 + $0x154] ss:$8 sps:$4 sm:$0xff]   ;;  %v6847_v18 = vld [vmem:[%s5703_s18 + $0x68] sm:$0xff]  ;;  %4195 = vmatpush1.bf16.msra.mxu1 %v5131_v47 }
 0x160   : > { %v2645_v60 = vmax.f32 %v2644_v11, %v10119_v10  ;;  %v10121_v50 = vunpack.c.l.bf16 %v10120_v30  ;;  %v1560_v21 = vrot.slane %v1559_v35, 1  ;;  %v2027_v17 = vmax.f32 %v2025_v33, %v2026_v53  ;;  %10130 = vst [vmem:[#allocation79_spill] sm:$0xff] %v6847_v18  ;;  %v5137_v49 = vld [vmem:[#allocation5 + $0x150] ss:$8 sps:$4 sm:$0xff]   ;;  %v6857_v1 = vld [vmem:[%s5703_s18 + $0xc8] sm:$0xff]  ;;  %4196 = vmatprep.subr.bf16.mxu1 %v5139_v2 }
 0x161   : > { %v2336_v34 = vrot.slane %v2335_v39, 4  ;;  %v2181_v28 = vmax.f32 %v2179_v59, %v2180_v20  ;;  %v10123_v36 = vunpack.c.l.bf16 %v10122_v42  ;;  %v1716_v54 = vrot.slane %v1715_v45, 1  ;;  %10132 = vst [vmem:[#allocation14_spill] sm:$0xff] %v6857_v1  ;;  %v5145_v26 = vld [vmem:[#allocation5 + $0x164] ss:$8 sps:$4 sm:$0xff]   ;;  %v6881_v42 = vld [vmem:[%s5703_s18 + $0x1b8] sm:$0xff] }
 0x162   : > { %v2490_v14 = vmax.f32 %v2489_v23, %v10121_v50  ;;  %v1872_v24 = vrot.slane %v1871_v62, 1  ;;  %v10125_v51 = vunpack.c.l.bf16 %v10124_v52  ;;  %v1561_v0 = vmax.f32 %v1559_v35, %v1560_v21  ;;  %v6861_v23 = vld [vmem:[%s5703_s18 + $0xf8] sm:$0xff]  ;;  %v6866_v10 = vld [vmem:[%s5703_s18 + $0x128] sm:$0xff]  ;;  %10137 = vst [vmem:[#allocation29_spill] sm:$0xff] %v6881_v42 }
 0x163   : > { %v2646_v48 = vmax.f32 %v2645_v60, %v10123_v36  ;;  %v2337_v8 = vmax.f32 %v2335_v39, %v2336_v34  ;;  %v2028_v31 = vrot.slane %v2027_v17, 1  ;;  %v2182_v15 = vrot.slane %v2181_v28, 2  ;;  %10133 = vst [vmem:[#allocation13_spill] sm:$0xff] %v6861_v23  ;;  %10134 = vst [vmem:[#allocation22_spill] sm:$0xff] %v6866_v10  ;;  %v6869_v60 = vld [vmem:[%s5703_s18 + $0x158] sm:$0xff]  ;;  %v6875_v50 = vld [vmem:[%s5703_s18 + $0x188] sm:$0xff]  ;;  %4197 = vmatpush1.bf16.msra.mxu1 %v5137_v49 }
 0x164   : > { %v2491_v6 = vmax.f32 %v2490_v14, %v10125_v51  ;;  %v10128_v13 = vunpack.c.l.bf16 %v10127_v3  ;;  %v1717_v57 = vmax.f32 %v1715_v45, %v1716_v54  ;;  %v1873_v29 = vmax.f32 %v1871_v62, %v1872_v24  ;;  %10135 = vst [vmem:[#allocation21_spill] sm:$0xff] %v6869_v60  ;;  %10136 = vst [vmem:[#allocation30_spill] sm:$0xff] %v6875_v50  ;;  %v6884_v36 = vld [vmem:[%s5703_s18 + $0x1e8] sm:$0xff]  ;;  %v5151_v24 = vld [vmem:[#allocation5 + $0x174] ss:$8 sps:$4 sm:$0xff]  }
 0x165   : > { %v2338_v56 = vrot.slane %v2337_v8, 2  ;;  %v2029_v38 = vmax.f32 %v2027_v17, %v2028_v31  ;;  %v2183_v4 = vmax.f32 %v2181_v28, %v2182_v15  ;;  %v5143_v28 = vld [vmem:[#allocation5 + $0x160] ss:$8 sps:$4 sm:$0xff]   ;;  %10138 = vst [vmem:[#allocation38_spill] sm:$0xff] %v6884_v36  ;;  %4198 = vmatprep.subr.bf16.mxu1 %v5145_v26  ;;  %v6898_v15 = vld [vmem:[%s5703_s18 + $0x278] sm:$0xff] }
 0x166   : > { %v2647_v32 = vmax.f32 %v2646_v48, %v10128_v13  ;;  %v2492_v16 = vrot.slane %v2491_v6, 4  ;;  %v2876_v61 = vsel %vm2827_vm0, %v1717_v57, %v1561_v0  ;;  %v6895_v31 = vld [vmem:[%s5703_s18 + $0x248] sm:$0xff]  ;;  %10141 = vst [vmem:[#allocation46_spill] sm:$0xff] %v6898_v15  ;;  %v6911_v2 = vld [vmem:[%s5703_s18 + $0x2d8] sm:$0xff] }
 0x167   : > { %v2339_v19 = vmax.f32 %v2337_v8, %v2338_v56  ;;  %v2184_v44 = vrot.slane %v2183_v4, 1  ;;  %v2877_v59 = vsel %vm2829_vm1, %v1873_v29, %v2876_v61  ;;  %v6889_v8 = vld [vmem:[%s5703_s18 + $0x218] sm:$0xff]  ;;  %10140 = vst [vmem:[#allocation15_spill] sm:$0xff] %v6895_v31  ;;  %v5110_v57 = vld [vmem:[#allocation5 + $0x400] ss:$8 sps:$4 sm:$0xff]   ;;  %4199 = vmatpush1.bf16.msra.mxu1 %v5143_v28  ;;  %10143 = vst [vmem:[#allocation54_spill] sm:$0xff] %v6911_v2 }
 0x168   : > { %v2648_v5 = vrot.slane %v2647_v32, 4  ;;  %v2493_v27 = vmax.f32 %v2491_v6, %v2492_v16  ;;  %v2878_v63 = vsel %vm2831_vm2, %v2029_v38, %v2877_v59  ;;  %10139 = vst [vmem:[#allocation37_spill] sm:$0xff] %v6889_v8  ;;  %v6904_v56 = vld [vmem:[%s5703_s18 + $0x2a8] sm:$0xff]  ;;  %4200 = vmatprep.subr.bf16.mxu1 %v5151_v24  ;;  %v5118_v26 = vld [vmem:[#allocation5 + $0x414] ss:$8 sps:$4 sm:$0xff]  }
 0x169   : > { %v2340_v11 = vrot.slane %v2339_v19, 1  ;;  %v2185_v39 = vmax.f32 %v2183_v4, %v2184_v44  ;;  %10142 = vst [vmem:[#allocation45_spill] sm:$0xff] %v6904_v56  ;;  %v5157_v59 = vld [vmem:[#allocation5 + $0x184] ss:$8 sps:$4 sm:$0xff]   ;;  %v6939_v28 = vld [vmem:[%s5703_s18 + $0x3f8] sm:$0xff] }
 0x16a   : > { %v2649_v9 = vmax.f32 %v2647_v32, %v2648_v5  ;;  %v2494_v43 = vrot.slane %v2493_v27, 2  ;;  %v5149_v5 = vld [vmem:[#allocation5 + $0x170] ss:$8 sps:$4 sm:$0xff]   ;;  %10149 = vst [vmem:[#allocation47_spill] sm:$0xff] %v6939_v28  ;;  %v5122_v13 = vld [vmem:[#allocation5 + $0x420] ss:$8 sps:$4 sm:$0xff]  }
 0x16b   : > { %v2341_v20 = vmax.f32 %v2339_v19, %v2340_v11  ;;  %v2879_v30 = vsel %vm2833_vm3, %v2185_v39, %v2878_v63  ;;  %v6914_v19 = vld [vmem:[%s5703_s18 + $0x308] sm:$0xff]  ;;  %v6921_v11 = vld [vmem:[%s5703_s18 + $0x338] sm:$0xff]  ;;  %4201 = vmatpush1.bf16.msra.mxu1 %v5149_v5 }
 0x16c   : > { %v2650_v37 = vrot.slane %v2649_v9, 2  ;;  %v2495_v12 = vmax.f32 %v2493_v27, %v2494_v43  ;;  %10144 = vst [vmem:[#allocation53_spill] sm:$0xff] %v6914_v19  ;;  %10145 = vst [vmem:[#allocation23_spill] sm:$0xff] %v6921_v11  ;;  %v6924_v43 = vld [vmem:[%s5703_s18 + $0x368] sm:$0xff]  ;;  %v6949_v6 = vld [vmem:[%s5703_s18 + $0x458] sm:$0xff]  ;;  %4202 = vmatprep.subr.bf16.mxu1 %v5157_v59 }
 0x16d   : > { %v2880_v17 = vsel %vm2835_vm4, %v2341_v20, %v2879_v30  ;;  %10146 = vst [vmem:[#allocation31_spill] sm:$0xff] %v6924_v43  ;;  %v6930_v20 = vld [vmem:[%s5703_s18 + $0x398] sm:$0xff]  ;;  %10151 = vst [vmem:[#allocation24_spill] sm:$0xff] %v6949_v6  ;;  %v6952_v30 = vld [vmem:[%s5703_s18 + $0x488] sm:$0xff] }
 0x16e   : > { %v2651_v34 = vmax.f32 %v2649_v9, %v2650_v37  ;;  %v2496_v21 = vrot.slane %v2495_v12, 1  ;;  %10147 = vst [vmem:[#allocation39_spill] sm:$0xff] %v6930_v20  ;;  %10152 = vst [vmem:[#allocation32_spill] sm:$0xff] %v6952_v30  ;;  %v5163_v63 = vld [vmem:[#allocation5 + $0x194] ss:$8 sps:$4 sm:$0xff]   ;;  %v6972_v59 = vld [vmem:[%s5703_s18 + $0x548] sm:$0xff] }
 0x16f   : > { %v6959_v5 = vld [vmem:[%s5703_s18 + $0x4b8] sm:$0xff]  ;;  %v5124_v39 = vld [vmem:[#allocation5 + $0x424] ss:$8 sps:$4 sm:$0xff]   ;;  %10156 = vst [vmem:[#allocation56_spill] sm:$0xff] %v6972_v59  ;;  %v5167_v49 = vld [vmem:[#allocation5 + $0x1a0] ss:$8 sps:$4 sm:$0xff]  }
 0x170   : > { %v2652_v54 = vrot.slane %v2651_v34, 1  ;;  %v2497_v0 = vmax.f32 %v2495_v12, %v2496_v21  ;;  %v6933_v12 = vld [vmem:[%s5703_s18 + $0x3c8] sm:$0xff]  ;;  %10153 = vst [vmem:[#allocation40_spill] sm:$0xff] %v6959_v5  ;;  %v6979_v45 = vld [vmem:[%s5703_s18 + $0x578] sm:$0xff] }
 0x171   : > { %10148 = vst [vmem:[#allocation16_spill] sm:$0xff] %v6933_v12  ;;  %10157 = vst [vmem:[#allocation25_spill] sm:$0xff] %v6979_v45  ;;  %v6982_v16 = vld [vmem:[%s5703_s18 + $0x5a8] sm:$0xff]  ;;  %v6989_v14 = vld [vmem:[%s5703_s18 + $0x5d8] sm:$0xff] }
 0x172   : > { %v2653_v29 = vmax.f32 %v2651_v34, %v2652_v54  ;;  %v2881_v4 = vsel %vm2837_vm5, %v2497_v0, %v2880_v17  ;;  %v5116_v17 = vld [vmem:[#allocation5 + $0x410] ss:$8 sps:$4 sm:$0xff]   ;;  %v6942_v54 = vld [vmem:[%s5703_s18 + $0x428] sm:$0xff]  ;;  %10158 = vst [vmem:[#allocation33_spill] sm:$0xff] %v6982_v16  ;;  %10159 = vst [vmem:[#allocation41_spill] sm:$0xff] %v6989_v14 }
 0x173   : > { %10150 = vst [vmem:[#allocation55_spill] sm:$0xff] %v6942_v54  ;;  %v5161_v0 = vld [vmem:[#allocation5 + $0x190] ss:$8 sps:$4 sm:$0xff]   ;;  %v6992_v3 = vld [vmem:[%s5703_s18 + $0x608] sm:$0xff]  ;;  %v5175_v44 = vld [vmem:[#allocation5 + $0x1b4] ss:$8 sps:$4 sm:$0xff]   ;;  %v10199_v54 = vunpack.c.h.bf16 %v6959_v5 }
 0x174   : > { %v2882_v9 = vsel %vm2839_vm6, %v2653_v29, %v2881_v4  ;;  %10160 = vst [vmem:[#allocation18_spill] sm:$0xff] %v6992_v3  ;;  %v7002_v51 = vld [vmem:[%s5703_s18 + $0x668] sm:$0xff]  ;;  %v5128_v52 = vld [vmem:[#allocation5 + $0x430] ss:$8 sps:$4 sm:$0xff]   ;;  %v5187_v6 = vld [vmem:[#allocation5 + $0x1d4] ss:$8 sps:$4 sm:$0xff]  }
 0x175   : > { %v2975_v37 = vpack.c.bf16 %v2882_v9, %v2882_v9  ;;  %v5155_v9 = vld [vmem:[#allocation5 + $0x180] ss:$8 sps:$4 sm:$0xff]   ;;  %10162 = vst [vmem:[#allocation57_spill] sm:$0xff] %v7002_v51  ;;  %v7019_v34 = vld [vmem:[%s5703_s18 + $0x6f8] sm:$0xff]  ;;  %v5181_v4 = vld [vmem:[#allocation5 + $0x1c4] ss:$8 sps:$4 sm:$0xff]  }
 0x176   : > { %4203 = vmatpush1.bf16.msra.mxu1 %v5155_v9  ;;  %v6999_v9 = vld [vmem:[%s5703_s18 + $0x638] sm:$0xff]  ;;  %10165 = vst [vmem:[#allocation26_spill] sm:$0xff] %v7019_v34  ;;  %v7022_v40 = vld [vmem:[%s5703_s18 + $0x728] sm:$0xff] }
 0x177   : > { %4301 = vmatmul.mubr.bf16.vlgmr.msra.gmra.mrb[0].mxu0 %v2975_v37  ;;  %v6962_v37 = vld [vmem:[%s5703_s18 + $0x4e8] sm:$0xff]  ;;  %4204 = vmatprep.subr.bf16.mxu1 %v5163_v63  ;;  %10161 = vst [vmem:[#allocation49_spill] sm:$0xff] %v6999_v9  ;;  %10166 = vst [vmem:[#allocation34_spill] sm:$0xff] %v7022_v40  ;;  %v7029_v29 = vld [vmem:[%s5703_s18 + $0x758] sm:$0xff] }
 0x178   : > { %4310 = vmatpush1.bf16.msra.mxu0 %v5110_v57  ;;  %10154 = vst [vmem:[#allocation17_spill] sm:$0xff] %v6962_v37  ;;  %v6969_v57 = vld [vmem:[%s5703_s18 + $0x518] sm:$0xff]  ;;  %v7012_v63 = vld [vmem:[%s5703_s18 + $0x6c8] sm:$0xff]  ;;  %10167 = vst [vmem:[#allocation42_spill] sm:$0xff] %v7029_v29 }
 0x179   : > { %4311 = vmatprep.subr.bf16.mxu0 %v5118_v26  ;;  %10155 = vst [vmem:[#allocation48_spill] sm:$0xff] %v6969_v57  ;;  %v5130_v26 = vld [vmem:[#allocation5 + $0x434] ss:$8 sps:$4 sm:$0xff]   ;;  %10164 = vst [vmem:[#allocation61_spill] sm:$0xff] %v7012_v63  ;;  %v7042_v48 = vld [vmem:[%s5703_s18 + $0x7e8] sm:$0xff] }
 0x17a   : > { %4205 = vmatpush1.bf16.msra.mxu1 %v5161_v0  ;;  %v7039_v0 = vld [vmem:[%s5703_s18 + $0x7b8] sm:$0xff]  ;;  %10170 = vst [vmem:[#allocation19_spill] sm:$0xff] %v7042_v48  ;;  %v5134_v35 = vld [vmem:[#allocation5 + $0x440] ss:$8 sps:$4 sm:$0xff]   ;;  %v5193_v60 = vld [vmem:[#allocation5 + $0x1e4] ss:$8 sps:$4 sm:$0xff]  }
 0x17b   : > { %4206 = vmatprep.subr.bf16.mxu1 %v5169_v58  ;;  %10169 = vst [vmem:[#allocation69_spill] sm:$0xff] %v7039_v0  ;;  %v7052_v58 = vld [vmem:[%s5703_s18 + $0x848] sm:$0xff]  ;;  %v7059_v53 = vld [vmem:[%s5703_s18 + $0x878] sm:$0xff] }
 0x17c   : > { %4312 = vmatpush1.bf16.msra.mxu0 %v5116_v17  ;;  %v7009_v17 = vld [vmem:[%s5703_s18 + $0x698] sm:$0xff]  ;;  %10172 = vst [vmem:[#allocation58_spill] sm:$0xff] %v7052_v58  ;;  %10173 = vst [vmem:[#allocation63_spill] sm:$0xff] %v7059_v53  ;;  %v7062_v38 = vld [vmem:[%s5703_s18 + $0x8a8] sm:$0xff] }
 0x17d   : > { %4313 = vmatprep.subr.bf16.mxu0 %v5124_v39  ;;  %10163 = vst [vmem:[#allocation62_spill] sm:$0xff] %v7009_v17  ;;  %v5136_v39 = vld [vmem:[#allocation5 + $0x444] ss:$8 sps:$4 sm:$0xff]   ;;  %10174 = vst [vmem:[#allocation27_spill] sm:$0xff] %v7062_v38  ;;  %v7069_v27 = vld [vmem:[%s5703_s18 + $0x8d8] sm:$0xff] }
 0x17e   : > { %4207 = vmatpush1.bf16.msra.mxu1 %v5167_v49  ;;  %10175 = vst [vmem:[#allocation35_spill] sm:$0xff] %v7069_v27  ;;  %v7072_v62 = vld [vmem:[%s5703_s18 + $0x908] sm:$0xff]  ;;  %v7079_v49 = vld [vmem:[%s5703_s18 + $0x938] sm:$0xff] }
 0x17f   : > { %10176 = vst [vmem:[#allocation43_spill] sm:$0xff] %v7072_v62  ;;  %4208 = vmatprep.subr.bf16.mxu1 %v5175_v44  ;;  %10177 = vst [vmem:[#allocation71_spill] sm:$0xff] %v7079_v49  ;;  %v7082_v61 = vld [vmem:[%s5703_s18 + $0x968] sm:$0xff]  ;;  %v5140_v29 = vld [vmem:[#allocation5 + $0x450] ss:$8 sps:$4 sm:$0xff]  }
 0x180   : > { %4314 = vmatpush1.bf16.msra.mxu0 %v5122_v13  ;;  %v7049_v13 = vld [vmem:[%s5703_s18 + $0x818] sm:$0xff]  ;;  %10178 = vst [vmem:[#allocation20_spill] sm:$0xff] %v7082_v61  ;;  %v7092_v44 = vld [vmem:[%s5703_s18 + $0x9c8] sm:$0xff] }
 0x181   : > { %4315 = vmatprep.subr.bf16.mxu0 %v5130_v26  ;;  %10171 = vst [vmem:[#allocation50_spill] sm:$0xff] %v7049_v13  ;;  %v5142_v26 = vld [vmem:[#allocation5 + $0x454] ss:$8 sps:$4 sm:$0xff]   ;;  %10180 = vst [vmem:[#allocation59_spill] sm:$0xff] %v7092_v44  ;;  %v7102_v32 = vld [vmem:[%s5703_s18 + $0xa28] sm:$0xff] }
 0x182   : > { %v7099_v33 = vld [vmem:[%s5703_s18 + $0x9f8] sm:$0xff]  ;;  %10182 = vst [vmem:[#allocation28_spill] sm:$0xff] %v7102_v32  ;;  %4209 = vmatpush1.bf16.msra.mxu1 %v5173_v41  ;;  %v5179_v46 = vld [vmem:[#allocation5 + $0x1c0] ss:$8 sps:$4 sm:$0xff]  }
 0x183   : > { %10181 = vst [vmem:[#allocation64_spill] sm:$0xff] %v7099_v33  ;;  %v7109_v47 = vld [vmem:[%s5703_s18 + $0xa58] sm:$0xff]  ;;  %v7112_v24 = vld [vmem:[%s5703_s18 + $0xa88] sm:$0xff]  ;;  %4210 = vmatprep.subr.bf16.mxu1 %v5181_v4 }
 0x184   : > { %4316 = vmatpush1.bf16.msra.mxu0 %v5128_v52  ;;  %v7089_v52 = vld [vmem:[%s5703_s18 + $0x998] sm:$0xff]  ;;  %10183 = vst [vmem:[#allocation36_spill] sm:$0xff] %v7109_v47  ;;  %10184 = vst [vmem:[#allocation44_spill] sm:$0xff] %v7112_v24  ;;  %v7122_v21 = vld [vmem:[%s5703_s18 + $0xae8] sm:$0xff]  ;;  %v1378_v56 = vunpack.c.h.bf16 %v7112_v24  ;;  %v10193_v24 = vunpack.c.h.bf16 %v6842_v55  ;;  %v10194_v47 = vunpack.c.h.bf16 %v6837_v7  ;;  %v10201_v7 = vunpack.c.h.bf16 %v6999_v9 }
 0x185   : > { %4317 = vmatprep.subr.bf16.mxu0 %v5136_v39  ;;  %10179 = vst [vmem:[#allocation51_spill] sm:$0xff] %v7089_v52  ;;  %v7119_v41 = vld [vmem:[%s5703_s18 + $0xab8] sm:$0xff]  ;;  %10186 = vst [vmem:[#allocation52_spill] sm:$0xff] %v7122_v21  ;;  %v5148_v39 = vld [vmem:[#allocation5 + $0x464] ss:$8 sps:$4 sm:$0xff]  }
 0x186   : > { %10185 = vst [vmem:[#allocation72_spill] sm:$0xff] %v7119_v41  ;;  %v7132_v4 = vld [vmem:[%s5703_s18 + $0xb48] sm:$0xff]  ;;  %v7139_v2 = vld [vmem:[%s5703_s18 + $0xb78] sm:$0xff]  ;;  %4211 = vmatpush1.bf16.msra.mxu1 %v5179_v46  ;;  %v1390_v27 = vunpack.c.h.bf16 %v7119_v41  ;;  %v10196_v41 = vunpack.c.h.bf16 %v6875_v50  ;;  %v10200_v46 = vunpack.c.h.bf16 %v6952_v30  ;;  %v10203_v50 = vunpack.c.h.bf16 %v7039_v0  ;;  %v7543_v0 = vld [vmem:[%s5703_s18 + $0x9e0] sm:$0xff] }
 0x187   : > { %10188 = vst [vmem:[#allocation65_spill] sm:$0xff] %v7132_v4  ;;  %10189 = vst [vmem:[#allocation73_spill] sm:$0xff] %v7139_v2  ;;  %v7142_v38 = vld [vmem:[%s5703_s18 + $0xba8] sm:$0xff]  ;;  %v5185_v14 = vld [vmem:[#allocation5 + $0x1d0] ss:$8 sps:$4 sm:$0xff]   ;;  %4212 = vmatprep.subr.bf16.mxu1 %v5187_v6  ;;  %v10195_v4 = vunpack.c.h.bf16 %v6881_v42  ;;  %v10206_v30 = vunpack.c.h.bf16 %v6884_v36 }
 0x188   : > { %4318 = vmatpush1.bf16.msra.mxu0 %v5134_v35  ;;  %v7129_v35 = vld [vmem:[%s5703_s18 + $0xb18] sm:$0xff]  ;;  %10190 = vst [vmem:[#allocation66_spill] sm:$0xff] %v7142_v38  ;;  %v7164_v6 = vld [vmem:[%s5703_s18 + $0x20] sm:$0xff]  ;;  %v10198_v38 = vunpack.c.h.bf16 %v6914_v19  ;;  %v1978_v55 = vmax.f32 %v10200_v46, %v10199_v54  ;;  %v10207_v46 = vunpack.c.h.bf16 %v7079_v49  ;;  %v10213_v49 = vunpack.c.h.bf16 %v6852_v22  ;;  %10297 = vst [vmem:[#allocation110_spill] sm:$0xff] %v7543_v0 }
 0x189   : > { %4319 = vmatprep.subr.bf16.mxu0 %v5142_v26  ;;  %10187 = vst [vmem:[#allocation60_spill] sm:$0xff] %v7129_v35  ;;  %v7149_v10 = vld [vmem:[%s5703_s18 + $0xbd8] sm:$0xff]  ;;  %v5146_v26 = vld [vmem:[#allocation5 + $0x460] ss:$8 sps:$4 sm:$0xff]   ;;  %10192 = vst [vmem:[#allocation67_spill] sm:$0xff] %v7164_v6  ;;  %v1666_v40 = vmax.f32 %v10196_v41, %v10195_v4 }
 0x18a   : > { %10191 = vst [vmem:[#allocation74_spill] sm:$0xff] %v7149_v10  ;;  %v5154_v16 = vld [vmem:[#allocation5 + $0x474] ss:$8 sps:$4 sm:$0xff]   ;;  %4213 = vmatpush1.bf16.msra.mxu1 %v5185_v14  ;;  %v5191_v32 = vld [vmem:[#allocation5 + $0x1e0] ss:$8 sps:$4 sm:$0xff]   ;;  %v10204_v14 = vunpack.c.h.bf16 %v7032_v25 }
 0x18b   : > { %v5152_v4 = vld [vmem:[#allocation5 + $0x470] ss:$8 sps:$4 sm:$0xff]   ;;  %4214 = vmatprep.subr.bf16.mxu1 %v5193_v60  ;;  %v5199_v19 = vld [vmem:[#allocation5 + $0x1f4] ss:$8 sps:$4 sm:$0xff]   ;;  %v1667_v54 = vmax.f32 %v1666_v40, %v10206_v30  ;;  %v5160_v25 = vld [vmem:[#allocation5 + $0x484] ss:$8 sps:$4 sm:$0xff]   ;;  %v10210_v60 = vunpack.c.h.bf16 %v6962_v37  ;;  %v10212_v40 = vunpack.c.h.bf16 %v7042_v48 }
 0x18c   : > { %4320 = vmatpush1.bf16.msra.mxu0 %v5140_v29  ;;  %v10197_v29 = vunpack.c.h.bf16 %v6921_v11  ;;  %v2290_v41 = vmax.f32 %v10204_v14, %v10203_v50  ;;  %v10209_v50 = vunpack.c.h.bf16 %v6924_v43  ;;  %v2602_v43 = vmax.f32 %v1378_v56, %v1390_v27  ;;  %v7533_v37 = vld [vmem:[%s5703_s18 + $0x980] sm:$0xff]  ;;  %v7550_v48 = vld [vmem:[%s5703_s18 + $0xa10] sm:$0xff] }
 0x18d   : > { %4321 = vmatprep.subr.bf16.mxu0 %v5148_v39  ;;  %v1510_v39 = vmax.f32 %v10194_v47, %v10193_v24  ;;  %v10202_v47 = vunpack.c.h.bf16 %v6992_v3  ;;  %v10208_v3 = vunpack.c.h.bf16 %v7072_v62  ;;  %v1979_v14 = vmax.f32 %v1978_v55, %v10210_v60  ;;  %10295 = vst [vmem:[#allocation102_spill] sm:$0xff] %v7533_v37  ;;  %10298 = vst [vmem:[#allocation97_spill] sm:$0xff] %v7550_v48  ;;  %v7560_v22 = vld [vmem:[%s5703_s18 + $0xa70] sm:$0xff]  ;;  %v7563_v11 = vld [vmem:[%s5703_s18 + $0xaa0] sm:$0xff] }
 0x18e   : > { %v1822_v2 = vmax.f32 %v10198_v38, %v10197_v29  ;;  %v10205_v38 = vunpack.c.h.bf16 %v6847_v18  ;;  %v2291_v30 = vmax.f32 %v2290_v41, %v10212_v40  ;;  %4215 = vmatpush1.bf16.msra.mxu1 %v5191_v32  ;;  %v10216_v55 = vunpack.c.h.bf16 %v6930_v20  ;;  %v7540_v20 = vld [vmem:[%s5703_s18 + $0x9b0] sm:$0xff]  ;;  %v7553_v18 = vld [vmem:[%s5703_s18 + $0xa40] sm:$0xff]  ;;  %10300 = vst [vmem:[#allocation93_spill] sm:$0xff] %v7560_v22  ;;  %10301 = vst [vmem:[#allocation111_spill] sm:$0xff] %v7563_v11 }
 0x18f   : > { %v2134_v24 = vmax.f32 %v10202_v47, %v10201_v7  ;;  %v2446_v7 = vmax.f32 %v10208_v3, %v10207_v46  ;;  %v10214_v3 = vunpack.c.h.bf16 %v6889_v8  ;;  %v10218_v41 = vunpack.c.h.bf16 %v7009_v17  ;;  %4216 = vmatprep.subr.bf16.mxu1 %v5199_v19  ;;  %v7493_v17 = vld [vmem:[%s5703_s18 + $0x800] sm:$0xff]  ;;  %10296 = vst [vmem:[#allocation92_spill] sm:$0xff] %v7540_v20  ;;  %10299 = vst [vmem:[#allocation103_spill] sm:$0xff] %v7553_v18  ;;  %v7570_v36 = vld [vmem:[%s5703_s18 + $0xad0] sm:$0xff] }
 0x190   : > { %4322 = vmatpush1.bf16.msra.mxu0 %v5146_v26  ;;  %v1511_v29 = vmax.f32 %v1510_v39, %v10205_v38  ;;  %v1823_v26 = vmax.f32 %v1822_v2, %v10209_v50  ;;  %v10211_v39 = vunpack.c.h.bf16 %v7002_v51  ;;  %v5197_v2 = vld [vmem:[#allocation5 + $0x1f0] ss:$8 sps:$4 sm:$0xff]   ;;  %v10221_v32 = vunpack.c.h.bf16 %v6895_v31  ;;  %v7483_v31 = vld [vmem:[%s5703_s18 + $0x7a0] sm:$0xff]  ;;  %10302 = vst [vmem:[#allocation98_spill] sm:$0xff] %v7570_v36 }
 0x191   : > { %4323 = vmatprep.subr.bf16.mxu0 %v5154_v16  ;;  %v1668_v46 = vmax.f32 %v1667_v54, %v10214_v3  ;;  %v10215_v16 = vunpack.c.h.bf16 %v7082_v61  ;;  %v5158_v54 = vld [vmem:[#allocation5 + $0x480] ss:$8 sps:$4 sm:$0xff]   ;;  %v5166_v3 = vld [vmem:[#allocation5 + $0x494] ss:$8 sps:$4 sm:$0xff]   ;;  %v10225_v19 = vunpack.c.h.bf16 %v7012_v63  ;;  %v5184_v61 = vld [vmem:[#allocation5 + $0x4c4] ss:$8 sps:$4 sm:$0xff]   ;;  %v1312_v42 = vunpack.c.h.bf16 %v7533_v37 }
 0x192   : > { %v2135_v38 = vmax.f32 %v2134_v24, %v10211_v39  ;;  %v1512_v62 = vmax.f32 %v1511_v29, %v10213_v49  ;;  %v1824_v50 = vmax.f32 %v1823_v26, %v10216_v55  ;;  %v10217_v24 = vunpack.c.h.bf16 %v6969_v57  ;;  %4217 = vmatpush1.bf16.msra.mxu1 %v5197_v2  ;;  %v7463_v63 = vld [vmem:[%s5703_s18 + $0x6e0] sm:$0xff]  ;;  %10288 = vst [vmem:[#allocation85_spill] sm:$0xff] %v7483_v31 }
 0x193   : > { %v2447_v47 = vmax.f32 %v2446_v7, %v10215_v16  ;;  %v10219_v49 = vunpack.c.h.bf16 %v7049_v13  ;;  %v10220_v7 = vunpack.c.h.bf16 %v6857_v1  ;;  %v1669_v27 = vmax.f32 %v1668_v46, %v10221_v32  ;;  %v7503_v57 = vld [vmem:[%s5703_s18 + $0x860] sm:$0xff]  ;;  %v7520_v13 = vld [vmem:[%s5703_s18 + $0x8f0] sm:$0xff] }
 0x194   : > { %v1980_v60 = vmax.f32 %v1979_v14, %v10217_v24  ;;  %v2136_v39 = vmax.f32 %v2135_v38, %v10218_v41  ;;  %4324 = vmatpush1.bf16.msra.mxu0 %v5152_v4  ;;  %v10222_v26 = vunpack.c.h.bf16 %v7089_v52  ;;  %v10223_v38 = vunpack.c.h.bf16 %v6933_v12  ;;  %10289 = vst [vmem:[#allocation95_spill] sm:$0xff] %v7503_v57  ;;  %v7510_v12 = vld [vmem:[%s5703_s18 + $0x890] sm:$0xff]  ;;  %v7513_v8 = vld [vmem:[%s5703_s18 + $0x8c0] sm:$0xff]  ;;  %10292 = vst [vmem:[#allocation91_spill] sm:$0xff] %v7520_v13 }
 0x195   : > { %v2292_v29 = vmax.f32 %v2291_v30, %v10219_v49  ;;  %v1513_v56 = vmax.f32 %v1512_v62, %v10220_v7  ;;  %4325 = vmatprep.subr.bf16.mxu0 %v5160_v25  ;;  %v10224_v4 = vunpack.c.h.bf16 %v6972_v59  ;;  %v10226_v62 = vunpack.c.h.bf16 %v7052_v58  ;;  %v7473_v59 = vld [vmem:[%s5703_s18 + $0x740] sm:$0xff]  ;;  %v7490_v58 = vld [vmem:[%s5703_s18 + $0x7d0] sm:$0xff]  ;;  %10290 = vst [vmem:[#allocation101_spill] sm:$0xff] %v7510_v12  ;;  %10291 = vst [vmem:[#allocation88_spill] sm:$0xff] %v7513_v8 }
 0x196   : > { %v2448_v40 = vmax.f32 %v2447_v47, %v10222_v26  ;;  %v1825_v16 = vmax.f32 %v1824_v50, %v10223_v38  ;;  %v2137_v55 = vmax.f32 %v2136_v39, %v10225_v19  ;;  %v10227_v46 = vunpack.c.h.bf16 %v6861_v23  ;;  %v5205_v26 = vld [vmem:[#allocation5 + $0x204] ss:$8 sps:$4 sm:$0xff]   ;;  %10286 = vst [vmem:[#allocation108_spill] sm:$0xff] %v7473_v59  ;;  %v7500_v23 = vld [vmem:[%s5703_s18 + $0x830] sm:$0xff] }
 0x197   : > { %v1981_v30 = vmax.f32 %v1980_v60, %v10224_v4  ;;  %v2293_v24 = vmax.f32 %v2292_v29, %v10226_v62  ;;  %v10228_v47 = vunpack.c.h.bf16 %v6898_v15  ;;  %v10229_v25 = vunpack.c.h.bf16 %v7092_v44  ;;  %v5164_v62 = vld [vmem:[#allocation5 + $0x490] ss:$8 sps:$4 sm:$0xff]   ;;  %4227 = vmatprep.subr.bf16.mxu1 %v5205_v26  ;;  %v10267_v26 = vld [vmem:[#allocation73_spill] sm:$0xff] }
 0x198   : > { %v1514_v41 = vmax.f32 %v1513_v56, %v10227_v46  ;;  %v10230_v50 = vunpack.c.h.bf16 %v7122_v21  ;;  %v10231_v60 = vunpack.c.h.bf16 %v6939_v28  ;;  %v10232_v38 = vunpack.c.h.bf16 %v6979_v45  ;;  %4326 = vmatpush1.bf16.msra.mxu0 %v5158_v54  ;;  %v10245_v44 = vld [vmem:[#allocation34_spill] sm:$0xff]  ;;  %v7453_v15 = vld [vmem:[%s5703_s18 + $0x680] sm:$0xff] }
 0x199   : > { %v1670_v49 = vmax.f32 %v1669_v27, %v10228_v47  ;;  %v2449_v7 = vmax.f32 %v2448_v40, %v10229_v25  ;;  %v10233_v4 = vunpack.c.h.bf16 %v7019_v34  ;;  %v10234_v19 = vunpack.c.h.bf16 %v7059_v53  ;;  %v10235_v40 = vld [vmem:[#allocation22_spill] sm:$0xff]  ;;  %4327 = vmatprep.subr.bf16.mxu0 %v5166_v3  ;;  %v10253_v3 = vld [vmem:[#allocation28_spill] sm:$0xff] }
 0x19a   : > { %v2603_v32 = vmax.f32 %v2602_v43, %v10230_v50  ;;  %v1826_v39 = vmax.f32 %v1825_v16, %v10231_v60  ;;  %v1982_v29 = vmax.f32 %v1981_v30, %v10232_v38  ;;  %v10236_v46 = vunpack.c.h.bf16 %v10235_v40  ;;  %v10237_v43 = vld [vmem:[#allocation45_spill] sm:$0xff]  ;;  %v7440_v45 = vld [vmem:[%s5703_s18 + $0x5f0] sm:$0xff] }
 0x19b   : > { %v2138_v56 = vmax.f32 %v2137_v55, %v10233_v4  ;;  %v2294_v27 = vmax.f32 %v2293_v24, %v10234_v19  ;;  %v10238_v25 = vunpack.c.h.bf16 %v10237_v43  ;;  %v10239_v50 = vunpack.c.h.bf16 %v7099_v33  ;;  %v5172_v38 = vld [vmem:[#allocation5 + $0x4a4] ss:$8 sps:$4 sm:$0xff]   ;;  %v10241_v55 = vld [vmem:[#allocation55_spill] sm:$0xff]  ;;  %10282 = vst [vmem:[#allocation89_spill] sm:$0xff] %v7440_v45 }
 0x19c   : > { %v1515_v47 = vmax.f32 %v1514_v41, %v10236_v46  ;;  %v10240_v60 = vunpack.c.h.bf16 %v7129_v35  ;;  %v10242_v4 = vunpack.c.h.bf16 %v10241_v55  ;;  %v10243_v24 = vld [vmem:[#allocation33_spill] sm:$0xff]  ;;  %v10246_v52 = vunpack.c.h.bf16 %v10245_v44  ;;  %v10247_v46 = vld [vmem:[#allocation27_spill] sm:$0xff]  ;;  %4328 = vmatpush1.bf16.msra.mxu0 %v5164_v62 }
 0x19d   : > { %v1671_v2 = vmax.f32 %v1670_v49, %v10238_v25  ;;  %v2450_v16 = vmax.f32 %v2449_v7, %v10239_v50  ;;  %v10244_v54 = vunpack.c.h.bf16 %v10243_v24  ;;  %v10248_v21 = vunpack.c.h.bf16 %v10247_v46  ;;  %v10249_v25 = vld [vmem:[#allocation21_spill] sm:$0xff]  ;;  %v10251_v50 = vld [vmem:[#allocation54_spill] sm:$0xff]  ;;  %4329 = vmatprep.subr.bf16.mxu0 %v5172_v38 }
 0x19e   : > { %v2604_v30 = vmax.f32 %v2603_v32, %v10240_v60  ;;  %v1827_v14 = vmax.f32 %v1826_v39, %v10242_v4  ;;  %v2139_v41 = vmax.f32 %v2138_v56, %v10246_v52  ;;  %v10250_v33 = vunpack.c.h.bf16 %v10249_v25  ;;  %v10255_v55 = vld [vmem:[#allocation65_spill] sm:$0xff]  ;;  %v7450_v40 = vld [vmem:[%s5703_s18 + $0x650] sm:$0xff] }
 0x19f   : > { %v1983_v19 = vmax.f32 %v1982_v29, %v10244_v54  ;;  %v2295_v49 = vmax.f32 %v2294_v27, %v10248_v21  ;;  %v10252_v35 = vunpack.c.h.bf16 %v10251_v50  ;;  %v10254_v60 = vunpack.c.h.bf16 %v10253_v3  ;;  %v10257_v29 = vld [vmem:[#allocation24_spill] sm:$0xff]  ;;  %v10259_v52 = vld [vmem:[#allocation41_spill] sm:$0xff]  ;;  %v10261_v21 = vld [vmem:[#allocation42_spill] sm:$0xff]  ;;  %10284 = vst [vmem:[#allocation100_spill] sm:$0xff] %v7450_v40 }
 0x1a0   : > { %v1516_v7 = vmax.f32 %v1515_v47, %v10250_v33  ;;  %v10256_v39 = vunpack.c.h.bf16 %v10255_v55  ;;  %v10258_v54 = vunpack.c.h.bf16 %v10257_v29  ;;  %v10260_v56 = vunpack.c.h.bf16 %v10259_v52  ;;  %v10263_v33 = vld [vmem:[#allocation35_spill] sm:$0xff]  ;;  %v7423_v53 = vld [vmem:[%s5703_s18 + $0x560] sm:$0xff] }
 0x1a1   : > { %v1672_v32 = vmax.f32 %v1671_v2, %v10252_v35  ;;  %v2451_v43 = vmax.f32 %v2450_v16, %v10254_v60  ;;  %v10262_v27 = vunpack.c.h.bf16 %v10261_v21  ;;  %v10264_v47 = vunpack.c.h.bf16 %v10263_v33  ;;  %v5170_v35 = vld [vmem:[#allocation5 + $0x4a0] ss:$8 sps:$4 sm:$0xff]   ;;  %v7480_v28 = vld [vmem:[%s5703_s18 + $0x770] sm:$0xff] }
 0x1a2   : > { %v2605_v4 = vmax.f32 %v2604_v30, %v10256_v39  ;;  %v1828_v44 = vmax.f32 %v1827_v14, %v10258_v54  ;;  %v1984_v46 = vmax.f32 %v1983_v19, %v10260_v56  ;;  %v1517_v2 = vrot.slane %v1516_v7, 4  ;;  %v10265_v60 = vld [vmem:[#allocation36_spill] sm:$0xff]  ;;  %4330 = vmatpush1.bf16.msra.mxu0 %v5170_v35  ;;  %10287 = vst [vmem:[#allocation107_spill] sm:$0xff] %v7480_v28  ;;  %v7530_v1 = vld [vmem:[%s5703_s18 + $0x950] sm:$0xff] }
 0x1a3   : > { %v2140_v25 = vmax.f32 %v2139_v41, %v10262_v27  ;;  %v2296_v50 = vmax.f32 %v2295_v49, %v10264_v47  ;;  %v1673_v16 = vrot.slane %v1672_v32, 4  ;;  %v10266_v3 = vunpack.c.h.bf16 %v10265_v60  ;;  %v5178_v14 = vld [vmem:[#allocation5 + $0x4b4] ss:$8 sps:$4 sm:$0xff]   ;;  %v10269_v49 = vld [vmem:[#allocation66_spill] sm:$0xff]  ;;  %v7443_v34 = vld [vmem:[%s5703_s18 + $0x620] sm:$0xff]  ;;  %10294 = vst [vmem:[#allocation96_spill] sm:$0xff] %v7530_v1 }
 0x1a4   : > { %v10268_v39 = vunpack.c.h.bf16 %v10267_v26  ;;  %v1829_v54 = vrot.slane %v1828_v44, 4  ;;  %v1985_v19 = vrot.slane %v1984_v46, 4  ;;  %v1518_v41 = vmax.f32 %v1516_v7, %v1517_v2  ;;  %4331 = vmatprep.subr.bf16.mxu0 %v5178_v14  ;;  %10283 = vst [vmem:[#allocation94_spill] sm:$0xff] %v7443_v34  ;;  %v7523_v51 = vld [vmem:[%s5703_s18 + $0x920] sm:$0xff]  ;;  %v7580_v45 = vld [vmem:[%s5703_s18 + $0xb30] sm:$0xff] }
 0x1a5   : > { %v2452_v30 = vmax.f32 %v2451_v43, %v10266_v3  ;;  %v2141_v56 = vrot.slane %v2140_v25, 4  ;;  %v2297_v21 = vrot.slane %v2296_v50, 4  ;;  %v1674_v27 = vmax.f32 %v1672_v32, %v1673_v16  ;;  %v5176_v43 = vld [vmem:[#allocation5 + $0x4b0] ss:$8 sps:$4 sm:$0xff]   ;;  %10293 = vst [vmem:[#allocation109_spill] sm:$0xff] %v7523_v51  ;;  %v7573_v13 = vld [vmem:[%s5703_s18 + $0xb00] sm:$0xff] }
 0x1a6   : > { %v2606_v55 = vmax.f32 %v2605_v4, %v10268_v39  ;;  %v10270_v62 = vunpack.c.h.bf16 %v10269_v49  ;;  %v1830_v52 = vmax.f32 %v1828_v44, %v1829_v54  ;;  %v1986_v29 = vmax.f32 %v1984_v46, %v1985_v19  ;;  %4332 = vmatpush1.bf16.msra.mxu0 %v5176_v43  ;;  %v7298_v43 = vld [vmem:[%s5703_s18 + $0x80] sm:$0xff]  ;;  %10303 = vst [vmem:[#allocation104_spill] sm:$0xff] %v7573_v13  ;;  %v7600_v59 = vld [vmem:[%s5703_s18 + $0xbf0] sm:$0xff] }
 0x1a7   : > { %v2453_v33 = vrot.slane %v2452_v30, 4  ;;  %v2142_v24 = vmax.f32 %v2140_v25, %v2141_v56  ;;  %v2298_v60 = vmax.f32 %v2296_v50, %v2297_v21  ;;  %v1519_v3 = vrot.slane %v1518_v41, 2  ;;  %4333 = vmatprep.subr.bf16.mxu0 %v5184_v61  ;;  %v7301_v61 = vld [vmem:[%s5703_s18 + $0xb0] sm:$0xff]  ;;  %10304 = vst [vmem:[#allocation112_spill] sm:$0xff] %v7580_v45  ;;  %10308 = vst [vmem:[#allocation114_spill] sm:$0xff] %v7600_v59 }
 0x1a8   : > { %v2607_v47 = vmax.f32 %v2606_v55, %v10270_v62  ;;  %v1675_v4 = vrot.slane %v1674_v27, 2  ;;  %v10271_v39 = vunpack.c.h.bf16 %v7149_v10  ;;  %v1831_v7 = vrot.slane %v1830_v52, 2  ;;  %v7430_v10 = vld [vmem:[%s5703_s18 + $0x590] sm:$0xff] }
 0x1a9   : > { %v2454_v38 = vmax.f32 %v2452_v30, %v2453_v33  ;;  %v1987_v32 = vrot.slane %v1986_v29, 2  ;;  %v2143_v2 = vrot.slane %v2142_v24, 2  ;;  %v2299_v16 = vrot.slane %v2298_v60, 2  ;;  %v5182_v33 = vld [vmem:[#allocation5 + $0x4c0] ss:$8 sps:$4 sm:$0xff]  }
 0x1aa   : > { %v2608_v26 = vmax.f32 %v2607_v47, %v10271_v39  ;;  %v1520_v49 = vmax.f32 %v1518_v41, %v1519_v3  ;;  %v1676_v55 = vmax.f32 %v1674_v27, %v1675_v4  ;;  %v1832_v25 = vmax.f32 %v1830_v52, %v1831_v7  ;;  %v5190_v30 = vld [vmem:[#allocation5 + $0x4d4] ss:$8 sps:$4 sm:$0xff]   ;;  %4334 = vmatpush1.bf16.msra.mxu0 %v5182_v33  ;;  %v5188_v7 = vld [vmem:[#allocation5 + $0x4d0] ss:$8 sps:$4 sm:$0xff]  }
 0x1ab   : > { %v2455_v44 = vrot.slane %v2454_v38, 2  ;;  %v1988_v50 = vmax.f32 %v1986_v29, %v1987_v32  ;;  %v2144_v21 = vmax.f32 %v2142_v24, %v2143_v2  ;;  %v2300_v35 = vmax.f32 %v2298_v60, %v2299_v16  ;;  %v7295_v3 = vld [vmem:[%s5703_s18 + $0x50] sm:$0xff]  ;;  %v7305_v16 = vld [vmem:[%s5703_s18 + $0xe0] sm:$0xff]  ;;  %4335 = vmatprep.subr.bf16.mxu0 %v5190_v30 }
 0x1ac   : > { %v2609_v46 = vrot.slane %v2608_v26, 4  ;;  %v1521_v54 = vrot.slane %v1520_v49, 1  ;;  %v1677_v14 = vrot.slane %v1676_v55, 1  ;;  %v1833_v62 = vrot.slane %v1832_v25, 1  ;;  %10272 = vst [vmem:[#allocation75_spill] sm:$0xff] %v7295_v3  ;;  %v7410_v33 = vld [vmem:[%s5703_s18 + $0x4d0] sm:$0xff] }
 0x1ad   : > { %v2456_v19 = vmax.f32 %v2454_v38, %v2455_v44  ;;  %v1989_v41 = vrot.slane %v1988_v50, 1  ;;  %v2145_v27 = vrot.slane %v2144_v21, 1  ;;  %v2301_v47 = vrot.slane %v2300_v35, 1  ;;  %10280 = vst [vmem:[#allocation86_spill] sm:$0xff] %v7410_v33  ;;  %v7413_v30 = vld [vmem:[%s5703_s18 + $0x500] sm:$0xff] }
 0x1ae   : > { %v2610_v56 = vmax.f32 %v2608_v26, %v2609_v46  ;;  %v1522_v29 = vmax.f32 %v1520_v49, %v1521_v54  ;;  %v1678_v24 = vmax.f32 %v1676_v55, %v1677_v14  ;;  %v1834_v4 = vmax.f32 %v1832_v25, %v1833_v62  ;;  %v7308_v55 = vld [vmem:[%s5703_s18 + $0x110] sm:$0xff]  ;;  %v5196_v46 = vld [vmem:[#allocation5 + $0x4e4] ss:$8 sps:$4 sm:$0xff]   ;;  %4336 = vmatpush1.bf16.msra.mxu0 %v5188_v7 }
 0x1af   : > { %v2457_v52 = vrot.slane %v2456_v19, 1  ;;  %v1990_v38 = vmax.f32 %v1988_v50, %v1989_v41  ;;  %v2146_v26 = vmax.f32 %v2144_v21, %v2145_v27  ;;  %v2302_v39 = vmax.f32 %v2300_v35, %v2301_v47  ;;  %v7313_v50 = vld [vmem:[%s5703_s18 + $0x140] sm:$0xff]  ;;  %v7329_v27 = vld [vmem:[%s5703_s18 + $0x1d0] sm:$0xff]  ;;  %4337 = vmatprep.subr.bf16.mxu0 %v5196_v46 }
 0x1b0   : > { %v2611_v60 = vrot.slane %v2610_v56, 2  ;;  %v2855_v49 = vsel %vm2827_vm0, %v1678_v24, %v1522_v29  ;;  %v7326_v41 = vld [vmem:[%s5703_s18 + $0x1a0] sm:$0xff]  ;;  %v7342_v24 = vld [vmem:[%s5703_s18 + $0x230] sm:$0xff]  ;;  %v1288_v5 = vunpack.c.h.bf16 %v7523_v51  ;;  %v1300_v9 = vunpack.c.h.bf16 %v7530_v1 }
 0x1b1   : > { %v2458_v32 = vmax.f32 %v2456_v19, %v2457_v52  ;;  %v2856_v25 = vsel %vm2829_vm1, %v1834_v4, %v2855_v49  ;;  %v7320_v19 = vld [vmem:[%s5703_s18 + $0x170] sm:$0xff]  ;;  %10274 = vst [vmem:[#allocation76_spill] sm:$0xff] %v7326_v41  ;;  %v5194_v52 = vld [vmem:[#allocation5 + $0x4e0] ss:$8 sps:$4 sm:$0xff]   ;;  %v1324_v51 = vunpack.c.h.bf16 %v7540_v20  ;;  %v1384_v8 = vunpack.c.h.bf16 %v7563_v11 }
 0x1b2   : > { %v2612_v2 = vmax.f32 %v2610_v56, %v2611_v60  ;;  %v2857_v14 = vsel %vm2831_vm2, %v1990_v38, %v2856_v25  ;;  %10273 = vst [vmem:[#allocation68_spill] sm:$0xff] %v7320_v19  ;;  %v7336_v38 = vld [vmem:[%s5703_s18 + $0x200] sm:$0xff]  ;;  %v5202_v25 = vld [vmem:[#allocation5 + $0x4f4] ss:$8 sps:$4 sm:$0xff]   ;;  %4338 = vmatpush1.bf16.msra.mxu0 %v5194_v52  ;;  %v1408_v37 = vunpack.c.h.bf16 %v7573_v13  ;;  %v1420_v28 = vunpack.c.h.bf16 %v7580_v45 }
 0x1b3   : > { %v2858_v62 = vsel %vm2833_vm3, %v2146_v26, %v2857_v14  ;;  %v7345_v7 = vld [vmem:[%s5703_s18 + $0x260] sm:$0xff]  ;;  %v7352_v49 = vld [vmem:[%s5703_s18 + $0x290] sm:$0xff]  ;;  %4339 = vmatprep.subr.bf16.mxu0 %v5202_v25  ;;  %v1468_v13 = vunpack.c.h.bf16 %v7600_v59  ;;  %v10309_v18 = vunpack.c.h.bf16 %v7295_v3  ;;  %v10310_v45 = vunpack.c.h.bf16 %v7164_v6 }
 0x1b4   : > { %v2613_v54 = vrot.slane %v2612_v2, 1  ;;  %v2859_v4 = vsel %vm2835_vm4, %v2302_v39, %v2858_v62  ;;  %v7355_v46 = vld [vmem:[%s5703_s18 + $0x2c0] sm:$0xff]  ;;  %v7361_v35 = vld [vmem:[%s5703_s18 + $0x2f0] sm:$0xff]  ;;  %v10317_v3 = vunpack.c.h.bf16 %v7450_v40  ;;  %v10318_v6 = vunpack.c.h.bf16 %v7443_v34 }
 0x1b5   : > { %v2860_v14 = vsel %vm2837_vm5, %v2458_v32, %v2859_v4  ;;  %10275 = vst [vmem:[#allocation78_spill] sm:$0xff] %v7361_v35  ;;  %v7364_v39 = vld [vmem:[%s5703_s18 + $0x320] sm:$0xff]  ;;  %v7370_v32 = vld [vmem:[%s5703_s18 + $0x350] sm:$0xff]  ;;  %v10324_v40 = vunpack.c.h.bf16 %v7413_v30 }
 0x1b6   : > { %v2614_v60 = vmax.f32 %v2612_v2, %v2613_v54  ;;  %10276 = vst [vmem:[#allocation77_spill] sm:$0xff] %v7364_v39  ;;  %v5200_v54 = vld [vmem:[#allocation5 + $0x4f0] ss:$8 sps:$4 sm:$0xff]   ;;  %10277 = vst [vmem:[#allocation80_spill] sm:$0xff] %v7370_v32  ;;  %v7373_v47 = vld [vmem:[%s5703_s18 + $0x380] sm:$0xff]  ;;  %v10314_v44 = vunpack.c.h.bf16 %v7364_v39 }
 0x1b7   : > { %v7380_v52 = vld [vmem:[%s5703_s18 + $0x3b0] sm:$0xff]  ;;  %v5208_v26 = vld [vmem:[#allocation5 + $0x504] ss:$8 sps:$4 sm:$0xff]   ;;  %4340 = vmatpush1.bf16.msra.mxu0 %v5200_v54 }
 0x1b8   : > { %v2861_v62 = vsel %vm2839_vm6, %v2614_v60, %v2860_v14  ;;  %v7383_v60 = vld [vmem:[%s5703_s18 + $0x3e0] sm:$0xff]  ;;  %v7390_v29 = vld [vmem:[%s5703_s18 + $0x410] sm:$0xff]  ;;  %4350 = vmatprep.subr.bf16.mxu0 %v5208_v26  ;;  %v1336_v26 = vunpack.c.h.bf16 %v7543_v0  ;;  %v10311_v0 = vunpack.c.h.bf16 %v7329_v27 }
 0x1b9   : > { %v2972_v56 = vpack.c.bf16 %v2861_v62, %v2861_v62  ;;  %v7393_v25 = vld [vmem:[%s5703_s18 + $0x440] sm:$0xff]  ;;  %v7400_v62 = vld [vmem:[%s5703_s18 + $0x470] sm:$0xff] }
 0x1ba   : > { %10278 = vst [vmem:[#allocation83_spill] sm:$0xff] %v7393_v25  ;;  %10279 = vst [vmem:[#allocation82_spill] sm:$0xff] %v7400_v62  ;;  %v7403_v4 = vld [vmem:[%s5703_s18 + $0x4a0] sm:$0xff]  ;;  %v7420_v21 = vld [vmem:[%s5703_s18 + $0x530] sm:$0xff]  ;;  %v1396_v62 = vunpack.c.h.bf16 %v7570_v36 }
 0x1bb   : > { %4218 = vmatprep.mubr.bf16.mxu1 %v2972_v56  ;;  %v7433_v2 = vld [vmem:[%s5703_s18 + $0x5c0] sm:$0xff]  ;;  %v7460_v14 = vld [vmem:[%s5703_s18 + $0x6b0] sm:$0xff]  ;;  %v10316_v35 = vunpack.c.h.bf16 %v7403_v4 }
 0x1bc   : > { %10281 = vst [vmem:[#allocation90_spill] sm:$0xff] %v7433_v2  ;;  %v7470_v56 = vld [vmem:[%s5703_s18 + $0x710] sm:$0xff]  ;;  %v7583_v1 = vld [vmem:[%s5703_s18 + $0xb60] sm:$0xff]  ;;  %v1588_v2 = vmax.f32 %v10310_v45, %v10309_v18  ;;  %v2212_v18 = vmax.f32 %v10318_v6, %v10317_v3  ;;  %v10319_v45 = vunpack.c.h.bf16 %v7490_v58  ;;  %v2680_v39 = vmax.f32 %v1384_v8, %v1396_v62 }
 0x1bd   : > { %10285 = vst [vmem:[#allocation99_spill] sm:$0xff] %v7470_v56  ;;  %10305 = vst [vmem:[#allocation105_spill] sm:$0xff] %v7583_v1  ;;  %v7590_v54 = vld [vmem:[%s5703_s18 + $0xb90] sm:$0xff]  ;;  %v7593_v19 = vld [vmem:[%s5703_s18 + $0xbc0] sm:$0xff]  ;;  %v1432_v20 = vunpack.c.h.bf16 %v7583_v1  ;;  %v10312_v1 = vunpack.c.h.bf16 %v7326_v41  ;;  %v10320_v41 = vunpack.c.h.bf16 %v7483_v31  ;;  %v10325_v6 = vunpack.c.h.bf16 %v7453_v15 }
 0x1be   : > { %10306 = vst [vmem:[#allocation113_spill] sm:$0xff] %v7590_v54  ;;  %10307 = vst [vmem:[#allocation106_spill] sm:$0xff] %v7593_v19  ;;  %v1444_v22 = vunpack.c.h.bf16 %v7590_v54  ;;  %v1456_v36 = vunpack.c.h.bf16 %v7593_v19  ;;  %v10313_v54 = vunpack.c.h.bf16 %v7370_v32  ;;  %v10315_v19 = vunpack.c.h.bf16 %v7410_v33 }
 0x1bf   : > { %v1744_v11 = vmax.f32 %v10312_v1, %v10311_v0  ;;  %v2368_v1 = vmax.f32 %v10320_v41, %v10319_v45  ;;  %v10321_v0 = vunpack.c.h.bf16 %v7298_v43  ;;  %v2524_v33 = vmax.f32 %v1288_v5, %v1300_v9 }
 0x1c0   : > { %v1900_v25 = vmax.f32 %v10314_v44, %v10313_v54  ;;  %v2056_v59 = vmax.f32 %v10316_v35, %v10315_v19  ;;  %v10322_v44 = vunpack.c.h.bf16 %v7336_v38  ;;  %v10323_v35 = vunpack.c.h.bf16 %v7373_v47 }
 0x1c1   : > { %v1589_v32 = vmax.f32 %v1588_v2, %v10321_v0  ;;  %v2213_v3 = vmax.f32 %v2212_v18, %v10325_v6  ;;  %v10326_v31 = vunpack.c.h.bf16 %v7493_v17  ;;  %v10327_v45 = vunpack.c.h.bf16 %v7301_v61 }
 0x1c2   : > { %v1745_v54 = vmax.f32 %v1744_v11, %v10322_v44  ;;  %v1901_v19 = vmax.f32 %v1900_v25, %v10323_v35  ;;  %v2057_v34 = vmax.f32 %v2056_v59, %v10324_v40  ;;  %v10328_v0 = vunpack.c.h.bf16 %v7342_v24 }
 0x1c3   : > { %v2369_v41 = vmax.f32 %v2368_v1, %v10326_v31  ;;  %v1590_v2 = vmax.f32 %v1589_v32, %v10327_v45  ;;  %v2525_v5 = vmax.f32 %v2524_v33, %v1312_v42  ;;  %v2681_v8 = vmax.f32 %v2680_v39, %v1408_v37 }
 0x1c4   : > { %v1746_v11 = vmax.f32 %v1745_v54, %v10328_v0  ;;  %v10329_v9 = vunpack.c.h.bf16 %v7380_v52  ;;  %v10330_v25 = vunpack.c.h.bf16 %v7420_v21  ;;  %v10331_v40 = vunpack.c.h.bf16 %v7460_v14 }
 0x1c5   : > { %v10332_v44 = vunpack.c.h.bf16 %v7500_v23  ;;  %v10333_v1 = vunpack.c.h.bf16 %v7305_v16  ;;  %v10334_v35 = vunpack.c.h.bf16 %v7345_v7  ;;  %v2526_v42 = vmax.f32 %v2525_v5, %v1324_v51 }
 0x1c6   : > { %v1902_v62 = vmax.f32 %v1901_v19, %v10329_v9  ;;  %v2058_v59 = vmax.f32 %v2057_v34, %v10330_v25  ;;  %v2214_v18 = vmax.f32 %v2213_v3, %v10331_v40  ;;  %v2682_v37 = vmax.f32 %v2681_v8, %v1420_v28 }
 0x1c7   : > { %v2370_v31 = vmax.f32 %v2369_v41, %v10332_v44  ;;  %v1591_v32 = vmax.f32 %v1590_v2, %v10333_v1  ;;  %v1747_v54 = vmax.f32 %v1746_v11, %v10334_v35  ;;  %v10335_v33 = vunpack.c.h.bf16 %v7383_v60 }
 0x1c8   : > { %v10336_v19 = vunpack.c.h.bf16 %v7423_v53  ;;  %v10337_v6 = vunpack.c.h.bf16 %v7463_v63  ;;  %v10338_v45 = vunpack.c.h.bf16 %v7503_v57  ;;  %v10339_v0 = vunpack.c.h.bf16 %v7308_v55 }
 0x1c9   : > { %v1903_v39 = vmax.f32 %v1902_v62, %v10335_v33  ;;  %v10340_v9 = vunpack.c.h.bf16 %v7352_v49  ;;  %v2527_v51 = vmax.f32 %v2526_v42, %v1336_v26  ;;  %v2683_v28 = vmax.f32 %v2682_v37, %v1432_v20  ;;  %v10348_v42 = vld [vmem:[#allocation83_spill] sm:$0xff] }
 0x1ca   : > { %v2059_v34 = vmax.f32 %v2058_v59, %v10336_v19  ;;  %v2215_v3 = vmax.f32 %v2214_v18, %v10337_v6  ;;  %v2371_v41 = vmax.f32 %v2370_v31, %v10338_v45  ;;  %v1592_v2 = vmax.f32 %v1591_v32, %v10339_v0  ;;  %v10352_v6 = vld [vmem:[#allocation108_spill] sm:$0xff] }
 0x1cb   : > { %v1748_v11 = vmax.f32 %v1747_v54, %v10340_v9  ;;  %v10341_v5 = vunpack.c.h.bf16 %v7390_v29  ;;  %v10342_v62 = vunpack.c.h.bf16 %v7430_v10  ;;  %v10343_v59 = vunpack.c.h.bf16 %v7470_v56 }
 0x1cc   : > { %v10344_v18 = vunpack.c.h.bf16 %v7510_v12  ;;  %v10345_v31 = vunpack.c.h.bf16 %v7313_v50  ;;  %v10346_v32 = vunpack.c.h.bf16 %v7355_v46  ;;  %v10347_v20 = vunpack.c.h.bf16 %v7550_v48 }
 0x1cd   : > { %v1904_v8 = vmax.f32 %v1903_v39, %v10341_v5  ;;  %v2060_v25 = vmax.f32 %v2059_v34, %v10342_v62  ;;  %v2216_v40 = vmax.f32 %v2215_v3, %v10343_v59  ;;  %v2684_v54 = vmax.f32 %v2683_v28, %v1444_v22  ;;  %v10350_v39 = vld [vmem:[#allocation90_spill] sm:$0xff] }
 0x1ce   : > { %v2372_v44 = vmax.f32 %v2371_v41, %v10344_v18  ;;  %v1593_v1 = vmax.f32 %v1592_v2, %v10345_v31  ;;  %v1749_v35 = vmax.f32 %v1748_v11, %v10346_v32  ;;  %v2528_v26 = vmax.f32 %v2527_v51, %v10347_v20  ;;  %v10354_v41 = vld [vmem:[#allocation88_spill] sm:$0xff]  ;;  %v10358_v11 = vld [vmem:[#allocation78_spill] sm:$0xff]  ;;  %v10360_v51 = vld [vmem:[#allocation103_spill] sm:$0xff] }
 0x1cf   : > { %v10349_v37 = vunpack.c.h.bf16 %v10348_v42  ;;  %v10351_v19 = vunpack.c.h.bf16 %v10350_v39  ;;  %v10353_v3 = vunpack.c.h.bf16 %v10352_v6  ;;  %v10355_v0 = vunpack.c.h.bf16 %v10354_v41  ;;  %v10356_v2 = vld [vmem:[#allocation68_spill] sm:$0xff]  ;;  %v10370_v6 = vld [vmem:[#allocation93_spill] sm:$0xff] }
 0x1d0   : > { %v10357_v5 = vunpack.c.h.bf16 %v10356_v2  ;;  %v10359_v59 = vunpack.c.h.bf16 %v10358_v11  ;;  %v10361_v22 = vunpack.c.h.bf16 %v10360_v51  ;;  %v2685_v31 = vmax.f32 %v2684_v54, %v1456_v36 }
 0x1d1   : > { %v1905_v33 = vmax.f32 %v1904_v8, %v10349_v37  ;;  %v2061_v34 = vmax.f32 %v2060_v25, %v10351_v19  ;;  %v2217_v45 = vmax.f32 %v2216_v40, %v10353_v3  ;;  %v2373_v9 = vmax.f32 %v2372_v44, %v10355_v0  ;;  %v10362_v8 = vld [vmem:[#allocation82_spill] sm:$0xff]  ;;  %v10364_v25 = vld [vmem:[#allocation89_spill] sm:$0xff]  ;;  %v10366_v40 = vld [vmem:[#allocation107_spill] sm:$0xff] }
 0x1d2   : > { %v1594_v62 = vmax.f32 %v1593_v1, %v10357_v5  ;;  %v1750_v18 = vmax.f32 %v1749_v35, %v10359_v59  ;;  %v2529_v28 = vmax.f32 %v2528_v26, %v10361_v22  ;;  %v10363_v32 = vunpack.c.h.bf16 %v10362_v8  ;;  %v10368_v44 = vld [vmem:[#allocation91_spill] sm:$0xff] }
 0x1d3   : > { %v10365_v37 = vunpack.c.h.bf16 %v10364_v25  ;;  %v10367_v3 = vunpack.c.h.bf16 %v10366_v40  ;;  %v10369_v0 = vunpack.c.h.bf16 %v10368_v44  ;;  %v10371_v35 = vunpack.c.h.bf16 %v10370_v6 }
 0x1d4   : > { %v1906_v20 = vmax.f32 %v1905_v33, %v10363_v32  ;;  %v1595_v1 = vrot.slane %v1594_v62, 4  ;;  %v1751_v5 = vrot.slane %v1750_v18, 4  ;;  %v2686_v51 = vmax.f32 %v2685_v31, %v1468_v13 }
 0x1d5   : > { %v2062_v19 = vmax.f32 %v2061_v34, %v10365_v37  ;;  %v2218_v48 = vmax.f32 %v2217_v45, %v10367_v3  ;;  %v2374_v41 = vmax.f32 %v2373_v9, %v10369_v0  ;;  %v2530_v59 = vmax.f32 %v2529_v28, %v10371_v35 }
 0x1d6   : > { %v1907_v26 = vrot.slane %v1906_v20, 4  ;;  %v1596_v33 = vmax.f32 %v1594_v62, %v1595_v1  ;;  %v1752_v32 = vmax.f32 %v1750_v18, %v1751_v5  ;;  %v2687_v34 = vrot.slane %v2686_v51, 4 }
 0x1d7   : > { %v2063_v36 = vrot.slane %v2062_v19, 4  ;;  %v2219_v54 = vrot.slane %v2218_v48, 4  ;;  %v2375_v22 = vrot.slane %v2374_v41, 4  ;;  %v2531_v12 = vrot.slane %v2530_v59, 4 }
 0x1d8   : > { %v1908_v37 = vmax.f32 %v1906_v20, %v1907_v26  ;;  %v1597_v44 = vrot.slane %v1596_v33, 2  ;;  %v1753_v9 = vrot.slane %v1752_v32, 2  ;;  %v2688_v56 = vmax.f32 %v2686_v51, %v2687_v34 }
 0x1d9   : > { %v2064_v40 = vmax.f32 %v2062_v19, %v2063_v36  ;;  %v2220_v45 = vmax.f32 %v2218_v48, %v2219_v54  ;;  %v2376_v3 = vmax.f32 %v2374_v41, %v2375_v22  ;;  %v2532_v0 = vmax.f32 %v2530_v59, %v2531_v12 }
 0x1da   : > { %v1909_v25 = vrot.slane %v1908_v37, 2  ;;  %v1598_v31 = vmax.f32 %v1596_v33, %v1597_v44  ;;  %v1754_v35 = vmax.f32 %v1752_v32, %v1753_v9  ;;  %v2689_v8 = vrot.slane %v2688_v56, 2 }
 0x1db   : > { %v2065_v6 = vrot.slane %v2064_v40, 2  ;;  %v2221_v28 = vrot.slane %v2220_v45, 2  ;;  %v2377_v13 = vrot.slane %v2376_v3, 2  ;;  %v2533_v57 = vrot.slane %v2532_v0, 2 }
 0x1dc   : > { %v1910_v62 = vmax.f32 %v1908_v37, %v1909_v25  ;;  %v1599_v20 = vrot.slane %v1598_v31, 1  ;;  %v1755_v19 = vrot.slane %v1754_v35, 1  ;;  %v2690_v41 = vmax.f32 %v2688_v56, %v2689_v8  ;;  %v10372_v37 = vld [vmem:[#allocation87_spill] sm:$0xff] }
 0x1dd   : > { %v2066_v18 = vmax.f32 %v2064_v40, %v2065_v6  ;;  %v2222_v1 = vmax.f32 %v2220_v45, %v2221_v28  ;;  %v2378_v5 = vmax.f32 %v2376_v3, %v2377_v13  ;;  %v2534_v48 = vmax.f32 %v2532_v0, %v2533_v57  ;;  %v10374_v57 = vld [vmem:[#allocation84_spill] sm:$0xff]  ;;  %v10376_v0 = vld [vmem:[#allocation29_spill] sm:$0xff]  ;;  %v10378_v13 = vld [vmem:[#allocation30_spill] sm:$0xff] }
 0x1de   : > { %v1911_v26 = vrot.slane %v1910_v62, 1  ;;  %v1600_v59 = vmax.f32 %v1598_v31, %v1599_v20  ;;  %v1756_v54 = vmax.f32 %v1754_v35, %v1755_v19  ;;  %v2691_v34 = vrot.slane %v2690_v41, 1  ;;  %v10384_v19 = vld [vmem:[#allocation40_spill] sm:$0xff] }
 0x1df   : > { %v2067_v36 = vrot.slane %v2066_v18, 1  ;;  %v2223_v12 = vrot.slane %v2222_v1, 1  ;;  %v2379_v51 = vrot.slane %v2378_v5, 1  ;;  %v2535_v22 = vrot.slane %v2534_v48, 1 }
 0x1e0   : > { %v1912_v44 = vmax.f32 %v1910_v62, %v1911_v26  ;;  %v2692_v6 = vmax.f32 %v2690_v41, %v2691_v34  ;;  %v2897_v40 = vsel %vm2827_vm0, %v1756_v54, %v1600_v59  ;;  %v10373_v45 = vunpack.c.l.bf16 %v10372_v37  ;;  %v10380_v62 = vld [vmem:[#allocation23_spill] sm:$0xff]  ;;  %v10386_v41 = vld [vmem:[#allocation32_spill] sm:$0xff] }
 0x1e1   : > { %v2068_v33 = vmax.f32 %v2066_v18, %v2067_v36  ;;  %v2224_v32 = vmax.f32 %v2222_v1, %v2223_v12  ;;  %v2380_v9 = vmax.f32 %v2378_v5, %v2379_v51  ;;  %v2536_v25 = vmax.f32 %v2534_v48, %v2535_v22  ;;  %v10382_v1 = vld [vmem:[#allocation53_spill] sm:$0xff]  ;;  %v10388_v51 = vld [vmem:[#allocation79_spill] sm:$0xff] }
 0x1e2   : > { %v10375_v56 = vunpack.c.l.bf16 %v10374_v57  ;;  %v2898_v3 = vsel %vm2829_vm1, %v1912_v44, %v2897_v40  ;;  %v10377_v28 = vunpack.c.l.bf16 %v10376_v0  ;;  %v10379_v31 = vunpack.c.l.bf16 %v10378_v13  ;;  %v10390_v22 = vld [vmem:[#allocation49_spill] sm:$0xff]  ;;  %v10392_v44 = vld [vmem:[#allocation18_spill] sm:$0xff] }
 0x1e3   : > { %v10381_v18 = vunpack.c.l.bf16 %v10380_v62  ;;  %v10383_v5 = vunpack.c.l.bf16 %v10382_v1  ;;  %v10385_v48 = vunpack.c.l.bf16 %v10384_v19  ;;  %v10387_v26 = vunpack.c.l.bf16 %v10386_v41  ;;  %v10400_v1 = vld [vmem:[#allocation31_spill] sm:$0xff]  ;;  %v10404_v41 = vld [vmem:[#allocation81_spill] sm:$0xff] }
 0x1e4   : > { %v1497_v8 = vmax.f32 %v10375_v56, %v10373_v45  ;;  %v1653_v35 = vmax.f32 %v10379_v31, %v10377_v28  ;;  %v2899_v12 = vsel %vm2831_vm2, %v2068_v33, %v2898_v3  ;;  %v10389_v59 = vunpack.c.l.bf16 %v10388_v51  ;;  %v10394_v45 = vld [vmem:[#allocation69_spill] sm:$0xff]  ;;  %v10396_v56 = vld [vmem:[#allocation70_spill] sm:$0xff] }
 0x1e5   : > { %v1809_v20 = vmax.f32 %v10383_v5, %v10381_v18  ;;  %v1965_v36 = vmax.f32 %v10387_v26, %v10385_v48  ;;  %v10391_v34 = vunpack.c.l.bf16 %v10390_v22  ;;  %v10393_v40 = vunpack.c.l.bf16 %v10392_v44  ;;  %v10398_v31 = vld [vmem:[#allocation38_spill] sm:$0xff]  ;;  %v10402_v5 = vld [vmem:[#allocation17_spill] sm:$0xff]  ;;  %v10408_v44 = vld [vmem:[#allocation19_spill] sm:$0xff] }
 0x1e6   : > { %v1498_v54 = vmax.f32 %v1497_v8, %v10389_v59  ;;  %v10395_v57 = vunpack.c.l.bf16 %v10394_v45  ;;  %v10397_v0 = vunpack.c.l.bf16 %v10396_v56  ;;  %v2900_v13 = vsel %vm2833_vm3, %v2224_v32, %v2899_v12  ;;  %v10406_v59 = vld [vmem:[#allocation57_spill] sm:$0xff] }
 0x1e7   : > { %v2121_v37 = vmax.f32 %v10393_v40, %v10391_v34  ;;  %v10399_v62 = vunpack.c.l.bf16 %v10398_v31  ;;  %v10401_v33 = vunpack.c.l.bf16 %v10400_v1  ;;  %v10403_v8 = vunpack.c.l.bf16 %v10402_v5 }
 0x1e8   : > { %v2277_v28 = vmax.f32 %v10397_v0, %v10395_v57  ;;  %v2901_v48 = vsel %vm2835_vm4, %v2380_v9, %v2900_v13  ;;  %v10405_v26 = vunpack.c.l.bf16 %v10404_v41  ;;  %v10407_v22 = vunpack.c.l.bf16 %v10406_v59  ;;  %v10422_v41 = vld [vmem:[#allocation15_spill] sm:$0xff]  ;;  %v10424_v59 = vld [vmem:[#allocation16_spill] sm:$0xff] }
 0x1e9   : > { %v1654_v18 = vmax.f32 %v1653_v35, %v10399_v62  ;;  %v1810_v3 = vmax.f32 %v1809_v20, %v10401_v33  ;;  %v1966_v19 = vmax.f32 %v1965_v36, %v10403_v8  ;;  %v10409_v40 = vunpack.c.l.bf16 %v10408_v44  ;;  %v10410_v35 = vld [vmem:[#allocation37_spill] sm:$0xff]  ;;  %v10412_v20 = vld [vmem:[#allocation39_spill] sm:$0xff]  ;;  %v10414_v36 = vld [vmem:[#allocation48_spill] sm:$0xff] }
 0x1ea   : > { %v1499_v51 = vmax.f32 %v1498_v54, %v10405_v26  ;;  %v2122_v34 = vmax.f32 %v2121_v37, %v10407_v22  ;;  %v2902_v12 = vsel %vm2837_vm5, %v2536_v25, %v2901_v48  ;;  %v10411_v45 = vunpack.c.l.bf16 %v10410_v35  ;;  %v10416_v54 = vld [vmem:[#allocation14_spill] sm:$0xff]  ;;  %v10426_v44 = vld [vmem:[#allocation56_spill] sm:$0xff] }
 0x1eb   : > { %v2278_v32 = vmax.f32 %v2277_v28, %v10409_v40  ;;  %v10413_v56 = vunpack.c.l.bf16 %v10412_v20  ;;  %v10415_v31 = vunpack.c.l.bf16 %v10414_v36  ;;  %v2903_v13 = vsel %vm2839_vm6, %v2692_v6, %v2902_v12  ;;  %v10418_v37 = vld [vmem:[#allocation62_spill] sm:$0xff]  ;;  %v10428_v6 = vld [vmem:[#allocation13_spill] sm:$0xff] }
 0x1ec   : > { %v1655_v57 = vmax.f32 %v1654_v18, %v10411_v45  ;;  %v10417_v62 = vunpack.c.l.bf16 %v10416_v54  ;;  %v10419_v33 = vunpack.c.l.bf16 %v10418_v37  ;;  %v10420_v28 = vld [vmem:[#allocation50_spill] sm:$0xff]  ;;  %v2978_v48 = vpack.c.bf16 %v2903_v13, %v2903_v13  ;;  %v10436_v13 = vld [vmem:[#allocation43_spill] sm:$0xff] }
 0x1ed   : > { %v1811_v0 = vmax.f32 %v1810_v3, %v10413_v56  ;;  %v1967_v9 = vmax.f32 %v1966_v19, %v10415_v31  ;;  %v10421_v8 = vunpack.c.l.bf16 %v10420_v28  ;;  %v10423_v18 = vunpack.c.l.bf16 %v10422_v41 }
 0x1ee   : > { %v1500_v1 = vmax.f32 %v1499_v51, %v10417_v62  ;;  %v2123_v5 = vmax.f32 %v2122_v34, %v10419_v33  ;;  %v10425_v3 = vunpack.c.l.bf16 %v10424_v59  ;;  %v10427_v19 = vunpack.c.l.bf16 %v10426_v44  ;;  %v10430_v51 = vld [vmem:[#allocation61_spill] sm:$0xff]  ;;  %v10432_v34 = vld [vmem:[#allocation58_spill] sm:$0xff]  ;;  %4341 = vmatprep.mubr.bf16.mxu0 %v2978_v48  ;;  %v10440_v33 = vld [vmem:[#allocation47_spill] sm:$0xff] }
 0x1ef   : > { %v2279_v25 = vmax.f32 %v2278_v32, %v10421_v8  ;;  %v1656_v26 = vmax.f32 %v1655_v57, %v10423_v18  ;;  %v10429_v12 = vunpack.c.l.bf16 %v10428_v6  ;;  %v10431_v45 = vunpack.c.l.bf16 %v10430_v51  ;;  %v10434_v32 = vld [vmem:[#allocation71_spill] sm:$0xff]  ;;  %v10438_v62 = vld [vmem:[#allocation46_spill] sm:$0xff]  ;;  %v10442_v8 = vld [vmem:[#allocation25_spill] sm:$0xff] }
 0x1f0   : > { %v1812_v22 = vmax.f32 %v1811_v0, %v10425_v3  ;;  %v1968_v40 = vmax.f32 %v1967_v9, %v10427_v19  ;;  %v10433_v56 = vunpack.c.l.bf16 %v10432_v34  ;;  %v10435_v31 = vunpack.c.l.bf16 %v10434_v32  ;;  %v10444_v18 = vld [vmem:[#allocation72_spill] sm:$0xff]  ;;  %v10448_v44 = vld [vmem:[#allocation22_spill] sm:$0xff] }
 0x1f1   : > { %v1501_v35 = vmax.f32 %v1500_v1, %v10429_v12  ;;  %v2124_v20 = vmax.f32 %v2123_v5, %v10431_v45  ;;  %v10437_v54 = vunpack.c.l.bf16 %v10436_v13  ;;  %v10439_v0 = vunpack.c.l.bf16 %v10438_v62  ;;  %v10446_v59 = vld [vmem:[#allocation44_spill] sm:$0xff]  ;;  %v10450_v12 = vld [vmem:[#allocation26_spill] sm:$0xff]  ;;  %v10452_v45 = vld [vmem:[#allocation63_spill] sm:$0xff] }
 0x1f2   : > { %v2280_v36 = vmax.f32 %v2279_v25, %v10433_v56  ;;  %v10441_v9 = vunpack.c.l.bf16 %v10440_v33  ;;  %v10443_v1 = vunpack.c.l.bf16 %v10442_v8  ;;  %v10445_v5 = vunpack.c.l.bf16 %v10444_v18  ;;  %v10454_v56 = vld [vmem:[#allocation20_spill] sm:$0xff]  ;;  %v10460_v33 = vld [vmem:[#allocation33_spill] sm:$0xff] }
 0x1f3   : > { %v2433_v57 = vmax.f32 %v10437_v54, %v10435_v31  ;;  %v1657_v37 = vmax.f32 %v1656_v26, %v10439_v0  ;;  %v10447_v3 = vunpack.c.l.bf16 %v10446_v59  ;;  %v10449_v19 = vunpack.c.l.bf16 %v10448_v44  ;;  %v10456_v31 = vld [vmem:[#allocation45_spill] sm:$0xff]  ;;  %v10458_v54 = vld [vmem:[#allocation55_spill] sm:$0xff] }
 0x1f4   : > { %v1813_v28 = vmax.f32 %v1812_v22, %v10441_v9  ;;  %v1969_v41 = vmax.f32 %v1968_v40, %v10443_v1  ;;  %v10451_v51 = vunpack.c.l.bf16 %v10450_v12  ;;  %v10453_v34 = vunpack.c.l.bf16 %v10452_v45  ;;  %v10462_v1 = vld [vmem:[#allocation52_spill] sm:$0xff] }
 0x1f5   : > { %v2589_v25 = vmax.f32 %v10447_v3, %v10445_v5  ;;  %v1502_v6 = vmax.f32 %v1501_v35, %v10449_v19  ;;  %v10455_v32 = vunpack.c.l.bf16 %v10454_v56  ;;  %v10457_v13 = vunpack.c.l.bf16 %v10456_v31  ;;  %v10464_v5 = vld [vmem:[#allocation21_spill] sm:$0xff]  ;;  %v10466_v3 = vld [vmem:[#allocation34_spill] sm:$0xff]  ;;  %v10468_v19 = vld [vmem:[#allocation27_spill] sm:$0xff] }
 0x1f6   : > { %v2125_v48 = vmax.f32 %v2124_v20, %v10451_v51  ;;  %v2281_v26 = vmax.f32 %v2280_v36, %v10453_v34  ;;  %v10459_v62 = vunpack.c.l.bf16 %v10458_v54  ;;  %v10461_v9 = vunpack.c.l.bf16 %v10460_v33  ;;  %v10470_v51 = vld [vmem:[#allocation51_spill] sm:$0xff]  ;;  %v10472_v34 = vld [vmem:[#allocation54_spill] sm:$0xff] }
 0x1f7   : > { %v2434_v22 = vmax.f32 %v2433_v57, %v10455_v32  ;;  %v1658_v40 = vmax.f32 %v1657_v37, %v10457_v13  ;;  %v10463_v35 = vunpack.c.l.bf16 %v10462_v1  ;;  %v10465_v20 = vunpack.c.l.bf16 %v10464_v5  ;;  %v10474_v32 = vld [vmem:[#allocation24_spill] sm:$0xff]  ;;  %v10476_v13 = vld [vmem:[#allocation41_spill] sm:$0xff] }
 0x1f8   : > { %v1814_v0 = vmax.f32 %v1813_v28, %v10459_v62  ;;  %v1970_v8 = vmax.f32 %v1969_v41, %v10461_v9  ;;  %v10467_v36 = vunpack.c.l.bf16 %v10466_v3  ;;  %v10469_v57 = vunpack.c.l.bf16 %v10468_v19  ;;  %v10478_v62 = vld [vmem:[#allocation60_spill] sm:$0xff] }
 0x1f9   : > { %v2590_v18 = vmax.f32 %v2589_v25, %v10463_v35  ;;  %v1503_v59 = vmax.f32 %v1502_v6, %v10465_v20  ;;  %v10471_v37 = vunpack.c.l.bf16 %v10470_v51  ;;  %v10473_v28 = vunpack.c.l.bf16 %v10472_v34 }
 0x1fa   : > { %v2126_v44 = vmax.f32 %v2125_v48, %v10467_v36  ;;  %v2282_v12 = vmax.f32 %v2281_v26, %v10469_v57  ;;  %v10475_v41 = vunpack.c.l.bf16 %v10474_v32  ;;  %v10477_v25 = vunpack.c.l.bf16 %v10476_v13  ;;  %v10480_v48 = vld [vmem:[#allocation42_spill] sm:$0xff]  ;;  %v10482_v26 = vld [vmem:[#allocation35_spill] sm:$0xff] }
 0x1fb   : > { %v2435_v45 = vmax.f32 %v2434_v22, %v10471_v37  ;;  %v1659_v56 = vmax.f32 %v1658_v40, %v10473_v28  ;;  %v10479_v6 = vunpack.c.l.bf16 %v10478_v62  ;;  %v1504_v9 = vrot.slane %v1503_v59, 4  ;;  %v10484_v22 = vld [vmem:[#allocation59_spill] sm:$0xff]  ;;  %v10490_v62 = vld [vmem:[#allocation73_spill] sm:$0xff] }
 0x1fc   : > { %v1815_v31 = vmax.f32 %v1814_v0, %v10475_v41  ;;  %v1971_v54 = vmax.f32 %v1970_v8, %v10477_v25  ;;  %v10481_v1 = vunpack.c.l.bf16 %v10480_v48  ;;  %v10483_v5 = vunpack.c.l.bf16 %v10482_v26  ;;  %v10486_v0 = vld [vmem:[#allocation65_spill] sm:$0xff]  ;;  %v10492_v26 = vld [vmem:[#allocation28_spill] sm:$0xff] }
 0x1fd   : > { %v2591_v33 = vmax.f32 %v2590_v18, %v10479_v6  ;;  %v10485_v3 = vunpack.c.l.bf16 %v10484_v22  ;;  %v1660_v40 = vrot.slane %v1659_v56, 4  ;;  %v10487_v51 = vunpack.c.l.bf16 %v10486_v0  ;;  %v10488_v18 = vld [vmem:[#allocation64_spill] sm:$0xff] }
 0x1fe   : > { %v2127_v35 = vmax.f32 %v2126_v44, %v10481_v1  ;;  %v2283_v20 = vmax.f32 %v2282_v12, %v10483_v5  ;;  %v1816_v19 = vrot.slane %v1815_v31, 4  ;;  %v1972_v57 = vrot.slane %v1971_v54, 4 }
 0x1ff   : > { %v2436_v36 = vmax.f32 %v2435_v45, %v10485_v3  ;;  %v2592_v37 = vmax.f32 %v2591_v33, %v10487_v51  ;;  %v1505_v8 = vmax.f32 %v1503_v59, %v1504_v9  ;;  %v10489_v32 = vunpack.c.l.bf16 %v10488_v18  ;;  %v10494_v9 = vld [vmem:[#allocation66_spill] sm:$0xff] }
 0x200   : > { %v2128_v34 = vrot.slane %v2127_v35, 4  ;;  %v2284_v28 = vrot.slane %v2283_v20, 4  ;;  %v1661_v13 = vmax.f32 %v1659_v56, %v1660_v40  ;;  %v1817_v44 = vmax.f32 %v1815_v31, %v1816_v19  ;;  %v10496_v31 = vld [vmem:[#allocation36_spill] sm:$0xff] }
 0x201   : > { %v2437_v41 = vmax.f32 %v2436_v36, %v10489_v32  ;;  %v1973_v25 = vmax.f32 %v1971_v54, %v1972_v57  ;;  %v10491_v12 = vunpack.c.l.bf16 %v10490_v62  ;;  %v1506_v48 = vrot.slane %v1505_v8, 2 }
 0x202   : > { %v2129_v45 = vmax.f32 %v2127_v35, %v2128_v34  ;;  %v2285_v1 = vmax.f32 %v2283_v20, %v2284_v28  ;;  %v10493_v5 = vunpack.c.l.bf16 %v10492_v26  ;;  %v1662_v3 = vrot.slane %v1661_v13, 2  ;;  %v10498_v35 = vld [vmem:[#allocation74_spill] sm:$0xff] }
 0x203   : > { %v2593_v6 = vmax.f32 %v2592_v37, %v10491_v12  ;;  %v1818_v33 = vrot.slane %v1817_v44, 2  ;;  %v1974_v59 = vrot.slane %v1973_v25, 2  ;;  %v10495_v0 = vunpack.c.l.bf16 %v10494_v9 }
 0x204   : > { %v2438_v22 = vmax.f32 %v2437_v41, %v10493_v5  ;;  %v1507_v18 = vmax.f32 %v1505_v8, %v1506_v48  ;;  %v2130_v36 = vrot.slane %v2129_v45, 2  ;;  %v2286_v56 = vrot.slane %v2285_v1, 2 }
 0x205   : > { %v2594_v51 = vmax.f32 %v2593_v6, %v10495_v0  ;;  %v10497_v54 = vunpack.c.l.bf16 %v10496_v31  ;;  %v1663_v19 = vmax.f32 %v1661_v13, %v1662_v3  ;;  %v1819_v57 = vmax.f32 %v1817_v44, %v1818_v33 }
 0x206   : > { %v1975_v37 = vmax.f32 %v1973_v25, %v1974_v59  ;;  %v10499_v20 = vunpack.c.l.bf16 %v10498_v35  ;;  %v1508_v28 = vrot.slane %v1507_v18, 1  ;;  %v2131_v32 = vmax.f32 %v2129_v45, %v2130_v36  ;;  %v10500_v59 = vld [vmem:[#allocation75_spill] sm:$0xff]  ;;  %v10505_v35 = vld [vmem:[#allocation76_spill] sm:$0xff] }
 0x207   : > { %v2439_v40 = vmax.f32 %v2438_v22, %v10497_v54  ;;  %v2287_v41 = vmax.f32 %v2285_v1, %v2286_v56  ;;  %v1664_v12 = vrot.slane %v1663_v19, 1  ;;  %v1820_v26 = vrot.slane %v1819_v57, 1  ;;  %v10502_v45 = vld [vmem:[#allocation67_spill] sm:$0xff] }
 0x208   : > { %v2595_v34 = vmax.f32 %v2594_v51, %v10499_v20  ;;  %v1976_v5 = vrot.slane %v1975_v37, 1  ;;  %v1509_v8 = vmax.f32 %v1507_v18, %v1508_v28  ;;  %v2132_v48 = vrot.slane %v2131_v32, 1 }
 0x209   : > { %v2440_v62 = vrot.slane %v2439_v40, 4  ;;  %v2288_v9 = vrot.slane %v2287_v41, 1  ;;  %v1665_v31 = vmax.f32 %v1663_v19, %v1664_v12  ;;  %v1821_v22 = vmax.f32 %v1819_v57, %v1820_v26  ;;  %v10507_v19 = vld [vmem:[#allocation80_spill] sm:$0xff]  ;;  %v10512_v26 = vld [vmem:[#allocation86_spill] sm:$0xff] }
 0x20a   : > { %v2596_v6 = vrot.slane %v2595_v34, 4  ;;  %v1977_v13 = vmax.f32 %v1975_v37, %v1976_v5  ;;  %v2133_v25 = vmax.f32 %v2131_v32, %v2132_v48  ;;  %v10501_v51 = vunpack.c.l.bf16 %v10500_v59  ;;  %v10509_v37 = vld [vmem:[#allocation77_spill] sm:$0xff] }
 0x20b   : > { %v2441_v0 = vmax.f32 %v2439_v40, %v2440_v62  ;;  %v2289_v3 = vmax.f32 %v2287_v41, %v2288_v9  ;;  %v10503_v1 = vunpack.c.l.bf16 %v10502_v45  ;;  %v2848_v54 = vsel %vm2827_vm0, %v1665_v31, %v1509_v8 }
 0x20c   : > { %v2597_v44 = vmax.f32 %v2595_v34, %v2596_v6  ;;  %v10504_v18 = vunpack.c.l.bf16 %v7329_v27  ;;  %v10506_v20 = vunpack.c.l.bf16 %v10505_v35  ;;  %v10508_v57 = vunpack.c.l.bf16 %v10507_v19  ;;  %v10523_v35 = vld [vmem:[#allocation100_spill] sm:$0xff] }
 0x20d   : > { %v2442_v33 = vrot.slane %v2441_v0, 2  ;;  %v1575_v36 = vmax.f32 %v10503_v1, %v10501_v51  ;;  %v10510_v34 = vunpack.c.l.bf16 %v10509_v37  ;;  %v2849_v41 = vsel %vm2829_vm1, %v1821_v22, %v2848_v54 }
 0x20e   : > { %v2598_v56 = vrot.slane %v2597_v44, 2  ;;  %v1731_v40 = vmax.f32 %v10506_v20, %v10504_v18  ;;  %v10511_v62 = vunpack.c.l.bf16 %v7298_v43  ;;  %v10513_v5 = vunpack.c.l.bf16 %v10512_v26 }
 0x20f   : > { %v1887_v28 = vmax.f32 %v10510_v34, %v10508_v57  ;;  %v2443_v32 = vmax.f32 %v2441_v0, %v2442_v33  ;;  %v10514_v6 = vunpack.c.l.bf16 %v7403_v4  ;;  %v2850_v48 = vsel %vm2831_vm2, %v1977_v13, %v2849_v41 }
 0x210   : > { %v1576_v12 = vmax.f32 %v1575_v36, %v10511_v62  ;;  %v2599_v27 = vmax.f32 %v2597_v44, %v2598_v56  ;;  %v10515_v9 = vunpack.c.l.bf16 %v7336_v38  ;;  %v10516_v59 = vunpack.c.l.bf16 %v7373_v47 }
 0x211   : > { %v2043_v8 = vmax.f32 %v10514_v6, %v10513_v5  ;;  %v2444_v0 = vrot.slane %v2443_v32, 1  ;;  %v2851_v22 = vsel %vm2833_vm3, %v2133_v25, %v2850_v48  ;;  %v10517_v43 = vunpack.c.l.bf16 %v7301_v61  ;;  %v5203_v6 = vld [vmem:[#allocation5 + $0x200] ss:$8 sps:$4 sm:$0xff]  }
 0x212   : > { %v1732_v31 = vmax.f32 %v1731_v40, %v10515_v9  ;;  %v1888_v51 = vmax.f32 %v1887_v28, %v10516_v59  ;;  %v10518_v45 = vunpack.c.l.bf16 %v7413_v30  ;;  %v2600_v4 = vrot.slane %v2599_v27, 1  ;;  %v10525_v30 = vld [vmem:[#allocation94_spill] sm:$0xff]  ;;  %v10530_v28 = vld [vmem:[#allocation85_spill] sm:$0xff] }
 0x213   : > { %v1577_v33 = vmax.f32 %v1576_v12, %v10517_v43  ;;  %v2852_v44 = vsel %vm2835_vm4, %v2289_v3, %v2851_v22  ;;  %v10519_v13 = vunpack.c.l.bf16 %v7342_v24  ;;  %v10520_v38 = vunpack.c.l.bf16 %v7380_v52  ;;  %v5211_v43 = vld [vmem:[#allocation5 + $0x214] ss:$8 sps:$4 sm:$0xff]  }
 0x214   : > { %v2044_v1 = vmax.f32 %v2043_v8, %v10518_v45  ;;  %v2445_v47 = vmax.f32 %v2443_v32, %v2444_v0  ;;  %v10521_v54 = vunpack.c.l.bf16 %v7305_v16  ;;  %v10522_v25 = vunpack.c.l.bf16 %v7420_v21 }
 0x215   : > { %v1733_v36 = vmax.f32 %v1732_v31, %v10519_v13  ;;  %v1889_v56 = vmax.f32 %v1888_v51, %v10520_v38  ;;  %v10524_v20 = vunpack.c.l.bf16 %v10523_v35  ;;  %v10526_v40 = vunpack.c.l.bf16 %v10525_v30 }
 0x216   : > { %v1578_v18 = vmax.f32 %v1577_v33, %v10521_v54  ;;  %v2045_v61 = vmax.f32 %v2044_v1, %v10522_v25  ;;  %v2601_v57 = vmax.f32 %v2599_v27, %v2600_v4  ;;  %v10527_v3 = vunpack.c.l.bf16 %v7345_v7  ;;  %v10544_v4 = vld [vmem:[#allocation96_spill] sm:$0xff] }
 0x217   : > { %v2199_v19 = vmax.f32 %v10526_v40, %v10524_v20  ;;  %v10528_v37 = vunpack.c.l.bf16 %v7383_v60  ;;  %v10529_v34 = vunpack.c.l.bf16 %v7490_v58  ;;  %v10531_v16 = vunpack.c.l.bf16 %v10530_v28  ;;  %v10556_v20 = vld [vmem:[#allocation82_spill] sm:$0xff] }
 0x218   : > { %v1734_v24 = vmax.f32 %v1733_v36, %v10527_v3  ;;  %v2853_v21 = vsel %vm2837_vm5, %v2445_v47, %v2852_v44  ;;  %v10532_v41 = vunpack.c.l.bf16 %v7308_v55  ;;  %v10533_v12 = vunpack.c.l.bf16 %v7423_v53 }
 0x219   : > { %v1890_v52 = vmax.f32 %v1889_v56, %v10528_v37  ;;  %v2355_v32 = vmax.f32 %v10531_v16, %v10529_v34  ;;  %v10534_v5 = vunpack.c.l.bf16 %v7453_v15  ;;  %v2854_v60 = vsel %vm2839_vm6, %v2601_v57, %v2853_v21  ;;  %v10564_v16 = vld [vmem:[#allocation99_spill] sm:$0xff] }
 0x21a   : > { %v1579_v62 = vmax.f32 %v1578_v18, %v10532_v41  ;;  %v2046_v26 = vmax.f32 %v2045_v61, %v10533_v12  ;;  %v10535_v8 = vunpack.c.l.bf16 %v7352_v49  ;;  %v10536_v27 = vunpack.c.l.bf16 %v7390_v29  ;;  %v10553_v18 = vld [vmem:[#allocation111_spill] sm:$0xff]  ;;  %v10566_v41 = vld [vmem:[#allocation104_spill] sm:$0xff]  ;;  %v5217_v12 = vld [vmem:[#allocation5 + $0x224] ss:$8 sps:$4 sm:$0xff]  }
 0x21b   : > { %v2200_v7 = vmax.f32 %v2199_v19, %v10534_v5  ;;  %v10537_v9 = vunpack.c.l.bf16 %v7493_v17  ;;  %v2971_v55 = vpack.c.bf16 %v2854_v60, %v2854_v60  ;;  %v10538_v59 = vunpack.c.l.bf16 %v7313_v50  ;;  %v10546_v50 = vld [vmem:[#allocation109_spill] sm:$0xff] }
 0x21c   : > { %v1735_v58 = vmax.f32 %v1734_v24, %v10535_v8  ;;  %v1891_v48 = vmax.f32 %v1890_v52, %v10536_v27  ;;  %v10539_v51 = vunpack.c.l.bf16 %v7430_v10  ;;  %v10540_v0 = vunpack.c.l.bf16 %v7460_v14  ;;  %v10562_v52 = vld [vmem:[#allocation89_spill] sm:$0xff]  ;;  %v10570_v8 = vld [vmem:[#allocation92_spill] sm:$0xff] }
 0x21d   : > { %v2356_v31 = vmax.f32 %v2355_v32, %v10537_v9  ;;  %v1580_v53 = vmax.f32 %v1579_v62, %v10538_v59  ;;  %v10541_v49 = vunpack.c.l.bf16 %v7355_v46  ;;  %v10542_v29 = vunpack.c.l.bf16 %v10348_v42  ;;  %4219 = vmatmul.mubr.bf16.vlgmr.msra.gmra.mrb[0].mxu1 %v2971_v55  ;;  %v10551_v42 = vld [vmem:[#allocation98_spill] sm:$0xff] }
 0x21e   : > { %v2047_v15 = vmax.f32 %v2046_v26, %v10539_v51  ;;  %v2201_v22 = vmax.f32 %v2200_v7, %v10540_v0  ;;  %v10543_v17 = vunpack.c.l.bf16 %v7500_v23  ;;  %v10545_v44 = vunpack.c.l.bf16 %v10544_v4  ;;  %4228 = vmatpush1.bf16.msra.mxu1 %v5203_v6  ;;  %v10568_v7 = vld [vmem:[#allocation101_spill] sm:$0xff] }
 0x21f   : > { %v1736_v33 = vmax.f32 %v1735_v58, %v10541_v49  ;;  %v1892_v45 = vmax.f32 %v1891_v48, %v10542_v29  ;;  %v10547_v13 = vunpack.c.l.bf16 %v10546_v50  ;;  %v10548_v10 = vunpack.c.l.bf16 %v10356_v2  ;;  %v10558_v2 = vld [vmem:[#allocation95_spill] sm:$0xff]  ;;  %4229 = vmatprep.subr.bf16.mxu1 %v5211_v43  ;;  %v10576_v43 = vld [vmem:[#allocation88_spill] sm:$0xff]  ;;  %v10578_v29 = vld [vmem:[#allocation110_spill] sm:$0xff] }
 0x220   : > { %v2357_v1 = vmax.f32 %v2356_v31, %v10543_v17  ;;  %v10549_v38 = vunpack.c.l.bf16 %v10350_v39  ;;  %v10550_v46 = vunpack.c.l.bf16 %v7463_v63  ;;  %v10552_v54 = vunpack.c.l.bf16 %v10551_v42  ;;  %v10560_v39 = vld [vmem:[#allocation102_spill] sm:$0xff]  ;;  %v10572_v31 = vld [vmem:[#allocation108_spill] sm:$0xff]  ;;  %v10580_v50 = vld [vmem:[#allocation107_spill] sm:$0xff] }
 0x221   : > { %v2511_v36 = vmax.f32 %v10547_v13, %v10545_v44  ;;  %v1581_v14 = vmax.f32 %v1580_v53, %v10548_v10  ;;  %v10554_v23 = vunpack.c.l.bf16 %v10553_v18  ;;  %v10555_v61 = vunpack.c.l.bf16 %v10358_v11  ;;  %v5209_v63 = vld [vmem:[#allocation5 + $0x210] ss:$8 sps:$4 sm:$0xff]   ;;  %v10574_v53 = vld [vmem:[#allocation112_spill] sm:$0xff]  ;;  %v10582_v10 = vld [vmem:[#allocation105_spill] sm:$0xff] }
 0x222   : > { %v2048_v56 = vmax.f32 %v2047_v15, %v10549_v38  ;;  %v2202_v47 = vmax.f32 %v2201_v22, %v10550_v46  ;;  %v10557_v30 = vunpack.c.l.bf16 %v10556_v20  ;;  %v10559_v19 = vunpack.c.l.bf16 %v10558_v2  ;;  %4230 = vmatpush1.bf16.msra.mxu1 %v5209_v63  ;;  %v10584_v42 = vld [vmem:[#allocation91_spill] sm:$0xff] }
 0x223   : > { %v2667_v25 = vmax.f32 %v10554_v23, %v10552_v54  ;;  %v1737_v35 = vmax.f32 %v1736_v33, %v10555_v61  ;;  %v10561_v3 = vunpack.c.l.bf16 %v10560_v39  ;;  %v1582_v37 = vrot.slane %v1581_v14, 4  ;;  %4231 = vmatprep.subr.bf16.mxu1 %v5217_v12  ;;  %v10586_v23 = vld [vmem:[#allocation97_spill] sm:$0xff] }
 0x224   : > { %v1893_v40 = vmax.f32 %v1892_v45, %v10557_v30  ;;  %v2358_v57 = vmax.f32 %v2357_v1, %v10559_v19  ;;  %v10563_v34 = vunpack.c.l.bf16 %v10562_v52  ;;  %v10565_v32 = vunpack.c.l.bf16 %v10564_v16  ;;  %v5215_v1 = vld [vmem:[#allocation5 + $0x220] ss:$8 sps:$4 sm:$0xff]   ;;  %v5221_v52 = vld [vmem:[#allocation5 + $0x230] ss:$8 sps:$4 sm:$0xff]  }
 0x225   : > { %v2512_v24 = vmax.f32 %v2511_v36, %v10561_v3  ;;  %v10567_v11 = vunpack.c.l.bf16 %v10566_v41  ;;  %v1738_v26 = vrot.slane %v1737_v35, 4  ;;  %v10569_v6 = vunpack.c.l.bf16 %v10568_v7 }
 0x226   : > { %v2049_v28 = vmax.f32 %v2048_v56, %v10563_v34  ;;  %v2203_v21 = vmax.f32 %v2202_v47, %v10565_v32  ;;  %v1894_v5 = vrot.slane %v1893_v40, 4  ;;  %v10571_v58 = vunpack.c.l.bf16 %v10570_v8  ;;  %v5223_v56 = vld [vmem:[#allocation5 + $0x234] ss:$8 sps:$4 sm:$0xff]   ;;  %4232 = vmatpush1.bf16.msra.mxu1 %v5215_v1  ;;  %v10592_v32 = vld [vmem:[#allocation106_spill] sm:$0xff] }
 0x227   : > { %v2668_v62 = vmax.f32 %v2667_v25, %v10567_v11  ;;  %v2359_v60 = vmax.f32 %v2358_v57, %v10569_v6  ;;  %v1583_v48 = vmax.f32 %v1581_v14, %v1582_v37  ;;  %v10573_v55 = vunpack.c.l.bf16 %v10572_v31  ;;  %4233 = vmatprep.subr.bf16.mxu1 %v5223_v56  ;;  %v5229_v11 = vld [vmem:[#allocation5 + $0x244] ss:$8 sps:$4 sm:$0xff]  }
 0x228   : > { %v2513_v27 = vmax.f32 %v2512_v24, %v10571_v58  ;;  %v2050_v9 = vrot.slane %v2049_v28, 4  ;;  %v10575_v51 = vunpack.c.l.bf16 %v10574_v53  ;;  %v1739_v0 = vmax.f32 %v1737_v35, %v1738_v26  ;;  %v10590_v24 = vld [vmem:[#allocation103_spill] sm:$0xff] }
 0x229   : > { %v2204_v59 = vmax.f32 %v2203_v21, %v10573_v55  ;;  %v1895_v22 = vmax.f32 %v1893_v40, %v1894_v5  ;;  %v10577_v49 = vunpack.c.l.bf16 %v10576_v43  ;;  %v10579_v45 = vunpack.c.l.bf16 %v10578_v29  ;;  %v10588_v40 = vld [vmem:[#allocation113_spill] sm:$0xff]  ;;  %v5269_v29 = vld [vmem:[#allocation5 + $0x2b0] ss:$8 sps:$4 sm:$0xff]  }
 0x22a   : > { %v2669_v15 = vmax.f32 %v2668_v62, %v10575_v51  ;;  %v1584_v4 = vrot.slane %v1583_v48, 2  ;;  %v2051_v44 = vmax.f32 %v2049_v28, %v2050_v9  ;;  %v10581_v13 = vunpack.c.l.bf16 %v10580_v50  ;;  %v10594_v5 = vld [vmem:[#allocation93_spill] sm:$0xff]  ;;  %4234 = vmatpush1.bf16.msra.mxu1 %v5221_v52  ;;  %v8182_v52 = vld [vmem:[%s5703_s18 + $0x790] sm:$0xff] }
 0x22b   : > { %v2360_v33 = vmax.f32 %v2359_v60, %v10577_v49  ;;  %v2514_v17 = vmax.f32 %v2513_v27, %v10579_v45  ;;  %v10583_v14 = vunpack.c.l.bf16 %v10582_v10  ;;  %v1740_v46 = vrot.slane %v1739_v0, 2  ;;  %v7987_v60 = vld [vmem:[%s5703_s18 + $0x10] sm:$0xff]  ;;  %4235 = vmatprep.subr.bf16.mxu1 %v5229_v11  ;;  %v8002_v10 = vld [vmem:[%s5703_s18 + $0xa0] sm:$0xff]  ;;  %10638 = vst [vmem:[#allocation72_spill] sm:$0xff] %v8182_v52 }
 0x22c   : > { %v2205_v36 = vmax.f32 %v2204_v59, %v10581_v13  ;;  %v1896_v47 = vrot.slane %v1895_v22, 2  ;;  %v10585_v54 = vunpack.c.l.bf16 %v10584_v42  ;;  %v10587_v25 = vunpack.c.l.bf16 %v10586_v23  ;;  %10596 = vst [vmem:[#allocation83_spill] sm:$0xff] %v7987_v60  ;;  %10601 = vst [vmem:[#allocation78_spill] sm:$0xff] %v8002_v10  ;;  %v8007_v42 = vld [vmem:[%s5703_s18 + $0xd0] sm:$0xff] }
 0x22d   : > { %v2670_v38 = vmax.f32 %v2669_v15, %v10583_v14  ;;  %v1585_v35 = vmax.f32 %v1583_v48, %v1584_v4  ;;  %v2052_v20 = vrot.slane %v2051_v44, 2  ;;  %v10589_v2 = vunpack.c.l.bf16 %v10588_v40  ;;  %v10597_v48 = vld [vmem:[#allocation114_spill] sm:$0xff]  ;;  %v5227_v15 = vld [vmem:[#allocation5 + $0x240] ss:$8 sps:$4 sm:$0xff]   ;;  %10602 = vst [vmem:[#allocation87_spill] sm:$0xff] %v8007_v42 }
 0x22e   : > { %v2361_v18 = vmax.f32 %v2360_v33, %v10585_v54  ;;  %v2515_v61 = vmax.f32 %v2514_v17, %v10587_v25  ;;  %v2206_v30 = vrot.slane %v2205_v36, 4  ;;  %v1741_v57 = vmax.f32 %v1739_v0, %v1740_v46  ;;  %v7992_v0 = vld [vmem:[%s5703_s18 + $0x40] sm:$0xff]  ;;  %v5235_v33 = vld [vmem:[#allocation5 + $0x254] ss:$8 sps:$4 sm:$0xff]   ;;  %4236 = vmatpush1.bf16.msra.mxu1 %v5227_v15 }
 0x22f   : > { %v2671_v19 = vmax.f32 %v2670_v38, %v10589_v2  ;;  %v1897_v39 = vmax.f32 %v1895_v22, %v1896_v47  ;;  %v10591_v63 = vunpack.c.l.bf16 %v10590_v24  ;;  %v1586_v34 = vrot.slane %v1585_v35, 1  ;;  %10599 = vst [vmem:[#allocation90_spill] sm:$0xff] %v7992_v0  ;;  %v7997_v4 = vld [vmem:[%s5703_s18 + $0x70] sm:$0xff]  ;;  %4237 = vmatprep.subr.bf16.mxu1 %v5235_v33  ;;  %v5241_v25 = vld [vmem:[#allocation5 + $0x264] ss:$8 sps:$4 sm:$0xff]  }
 0x230   : > { %v2362_v3 = vrot.slane %v2361_v18, 4  ;;  %v2053_v28 = vmax.f32 %v2051_v44, %v2052_v20  ;;  %v2207_v16 = vmax.f32 %v2205_v36, %v2206_v30  ;;  %v10593_v21 = vunpack.c.l.bf16 %v10592_v32  ;;  %10600 = vst [vmem:[#allocation68_spill] sm:$0xff] %v7997_v4  ;;  %v5233_v47 = vld [vmem:[#allocation5 + $0x250] ss:$8 sps:$4 sm:$0xff]   ;;  %v8031_v32 = vld [vmem:[%s5703_s18 + $0x1c0] sm:$0xff] }
 0x231   : > { %v2516_v37 = vmax.f32 %v2515_v61, %v10591_v63  ;;  %v1742_v62 = vrot.slane %v1741_v57, 1  ;;  %v1898_v12 = vrot.slane %v1897_v39, 1  ;;  %v10595_v7 = vunpack.c.l.bf16 %v10594_v5  ;;  %v8011_v61 = vld [vmem:[%s5703_s18 + $0x100] sm:$0xff]  ;;  %v8016_v2 = vld [vmem:[%s5703_s18 + $0x130] sm:$0xff]  ;;  %10607 = vst [vmem:[#allocation53_spill] sm:$0xff] %v8031_v32 }
 0x232   : > { %v2672_v41 = vmax.f32 %v2671_v19, %v10593_v21  ;;  %v2363_v26 = vmax.f32 %v2361_v18, %v2362_v3  ;;  %v1587_v8 = vmax.f32 %v1585_v35, %v1586_v34  ;;  %v2054_v58 = vrot.slane %v2053_v28, 1  ;;  %10603 = vst [vmem:[#allocation84_spill] sm:$0xff] %v8011_v61  ;;  %10604 = vst [vmem:[#allocation29_spill] sm:$0xff] %v8016_v2  ;;  %v8019_v19 = vld [vmem:[%s5703_s18 + $0x160] sm:$0xff]  ;;  %v8025_v63 = vld [vmem:[%s5703_s18 + $0x190] sm:$0xff] }
 0x233   : > { %v2517_v6 = vmax.f32 %v2516_v37, %v10595_v7  ;;  %v2208_v27 = vrot.slane %v2207_v16, 2  ;;  %v10598_v9 = vunpack.c.l.bf16 %v10597_v48  ;;  %v1743_v55 = vmax.f32 %v1741_v57, %v1742_v62  ;;  %10605 = vst [vmem:[#allocation30_spill] sm:$0xff] %v8019_v19  ;;  %10606 = vst [vmem:[#allocation23_spill] sm:$0xff] %v8025_v63  ;;  %4238 = vmatpush1.bf16.msra.mxu1 %v5233_v47  ;;  %v8034_v21 = vld [vmem:[%s5703_s18 + $0x1f0] sm:$0xff]  ;;  %v8061_v33 = vld [vmem:[%s5703_s18 + $0x2e0] sm:$0xff] }
 0x234   : > { %v1899_v59 = vmax.f32 %v1897_v39, %v1898_v12  ;;  %v2364_v53 = vrot.slane %v2363_v26, 2  ;;  %v2055_v22 = vmax.f32 %v2053_v28, %v2054_v58  ;;  %10608 = vst [vmem:[#allocation40_spill] sm:$0xff] %v8034_v21  ;;  %4239 = vmatprep.subr.bf16.mxu1 %v5241_v25  ;;  %v5247_v12 = vld [vmem:[#allocation5 + $0x274] ss:$8 sps:$4 sm:$0xff]   ;;  %10613 = vst [vmem:[#allocation69_spill] sm:$0xff] %v8061_v33  ;;  %v8129_v57 = vld [vmem:[%s5703_s18 + $0x580] sm:$0xff] }
 0x235   : > { %v2673_v31 = vmax.f32 %v2672_v41, %v10598_v9  ;;  %v2518_v51 = vrot.slane %v2517_v6, 4  ;;  %v2209_v43 = vmax.f32 %v2207_v16, %v2208_v27  ;;  %v2890_v1 = vsel %vm2827_vm0, %v1743_v55, %v1587_v8  ;;  %v5239_v16 = vld [vmem:[#allocation5 + $0x260] ss:$8 sps:$4 sm:$0xff]   ;;  %v8045_v58 = vld [vmem:[%s5703_s18 + $0x250] sm:$0xff]  ;;  %10627 = vst [vmem:[#allocation15_spill] sm:$0xff] %v8129_v57 }
 0x236   : > { %v2365_v45 = vmax.f32 %v2363_v26, %v2364_v53  ;;  %v2891_v36 = vsel %vm2829_vm1, %v1899_v59, %v2890_v1  ;;  %v8039_v26 = vld [vmem:[%s5703_s18 + $0x220] sm:$0xff]  ;;  %10610 = vst [vmem:[#allocation79_spill] sm:$0xff] %v8045_v58  ;;  %v8054_v53 = vld [vmem:[%s5703_s18 + $0x2b0] sm:$0xff] }
 0x237   : > { %v2674_v49 = vrot.slane %v2673_v31, 4  ;;  %v2519_v17 = vmax.f32 %v2517_v6, %v2518_v51  ;;  %v2210_v50 = vrot.slane %v2209_v43, 1  ;;  %v2892_v46 = vsel %vm2831_vm2, %v2055_v22, %v2891_v36  ;;  %10609 = vst [vmem:[#allocation32_spill] sm:$0xff] %v8039_v26  ;;  %v8048_v27 = vld [vmem:[%s5703_s18 + $0x280] sm:$0xff]  ;;  %10612 = vst [vmem:[#allocation18_spill] sm:$0xff] %v8054_v53  ;;  %4240 = vmatpush1.bf16.msra.mxu1 %v5239_v16  ;;  %v8132_v51 = vld [vmem:[%s5703_s18 + $0x5b0] sm:$0xff] }
 0x238   : > { %v2366_v38 = vrot.slane %v2365_v45, 1  ;;  %10611 = vst [vmem:[#allocation49_spill] sm:$0xff] %v8048_v27  ;;  %v5206_v55 = vld [vmem:[#allocation5 + $0x500] ss:$8 sps:$4 sm:$0xff]   ;;  %4241 = vmatprep.subr.bf16.mxu1 %v5247_v12  ;;  %v5253_v36 = vld [vmem:[#allocation5 + $0x284] ss:$8 sps:$4 sm:$0xff]  }
 0x239   : > { %v2675_v13 = vmax.f32 %v2673_v31, %v2674_v49  ;;  %v2520_v56 = vrot.slane %v2519_v17, 2  ;;  %v2211_v18 = vmax.f32 %v2209_v43, %v2210_v50  ;;  %v5245_v49 = vld [vmem:[#allocation5 + $0x270] ss:$8 sps:$4 sm:$0xff]   ;;  %v5214_v25 = vld [vmem:[#allocation5 + $0x514] ss:$8 sps:$4 sm:$0xff]   ;;  %v8089_v16 = vld [vmem:[%s5703_s18 + $0x400] sm:$0xff] }
 0x23a   : > { %v2367_v30 = vmax.f32 %v2365_v45, %v2366_v38  ;;  %v8064_v45 = vld [vmem:[%s5703_s18 + $0x310] sm:$0xff]  ;;  %v8071_v38 = vld [vmem:[%s5703_s18 + $0x340] sm:$0xff]  ;;  %10619 = vst [vmem:[#allocation57_spill] sm:$0xff] %v8089_v16  ;;  %10628 = vst [vmem:[#allocation16_spill] sm:$0xff] %v8132_v51 }
 0x23b   : > { %v2676_v23 = vrot.slane %v2675_v13, 2  ;;  %v2521_v40 = vmax.f32 %v2519_v17, %v2520_v56  ;;  %v2893_v24 = vsel %vm2833_vm3, %v2211_v18, %v2892_v46  ;;  %10614 = vst [vmem:[#allocation70_spill] sm:$0xff] %v8064_v45  ;;  %10615 = vst [vmem:[#allocation38_spill] sm:$0xff] %v8071_v38  ;;  %v8074_v56 = vld [vmem:[%s5703_s18 + $0x370] sm:$0xff]  ;;  %4242 = vmatpush1.bf16.msra.mxu1 %v5245_v49  ;;  %v8099_v6 = vld [vmem:[%s5703_s18 + $0x460] sm:$0xff] }
 0x23c   : > { %v2894_v28 = vsel %vm2835_vm4, %v2367_v30, %v2893_v24  ;;  %10616 = vst [vmem:[#allocation31_spill] sm:$0xff] %v8074_v56  ;;  %v8080_v30 = vld [vmem:[%s5703_s18 + $0x3a0] sm:$0xff]  ;;  %10621 = vst [vmem:[#allocation37_spill] sm:$0xff] %v8099_v6  ;;  %v8102_v24 = vld [vmem:[%s5703_s18 + $0x490] sm:$0xff]  ;;  %4243 = vmatprep.subr.bf16.mxu1 %v5253_v36 }
 0x23d   : > { %v2677_v3 = vmax.f32 %v2675_v13, %v2676_v23  ;;  %v2522_v34 = vrot.slane %v2521_v40, 1  ;;  %10617 = vst [vmem:[#allocation17_spill] sm:$0xff] %v8080_v30  ;;  %10622 = vst [vmem:[#allocation39_spill] sm:$0xff] %v8102_v24  ;;  %v5259_v46 = vld [vmem:[#allocation5 + $0x294] ss:$8 sps:$4 sm:$0xff]   ;;  %v8109_v49 = vld [vmem:[%s5703_s18 + $0x4c0] sm:$0xff] }
 0x23e   : > { %10623 = vst [vmem:[#allocation48_spill] sm:$0xff] %v8109_v49  ;;  %v5220_v18 = vld [vmem:[#allocation5 + $0x524] ss:$8 sps:$4 sm:$0xff]   ;;  %v8122_v36 = vld [vmem:[%s5703_s18 + $0x550] sm:$0xff]  ;;  %v5218_v9 = vld [vmem:[#allocation5 + $0x520] ss:$8 sps:$4 sm:$0xff]  }
 0x23f   : > { %v2678_v62 = vrot.slane %v2677_v3, 1  ;;  %v2523_v8 = vmax.f32 %v2521_v40, %v2522_v34  ;;  %v8083_v40 = vld [vmem:[%s5703_s18 + $0x3d0] sm:$0xff]  ;;  %10626 = vst [vmem:[#allocation50_spill] sm:$0xff] %v8122_v36  ;;  %v8139_v37 = vld [vmem:[%s5703_s18 + $0x5e0] sm:$0xff] }
 0x240   : > { %10618 = vst [vmem:[#allocation81_spill] sm:$0xff] %v8083_v40  ;;  %10629 = vst [vmem:[#allocation56_spill] sm:$0xff] %v8139_v37  ;;  %v8142_v48 = vld [vmem:[%s5703_s18 + $0x610] sm:$0xff]  ;;  %v5265_v14 = vld [vmem:[#allocation5 + $0x2a4] ss:$8 sps:$4 sm:$0xff]  }
 0x241   : > { %v2679_v59 = vmax.f32 %v2677_v3, %v2678_v62  ;;  %v2895_v43 = vsel %vm2837_vm5, %v2523_v8, %v2894_v28  ;;  %v5212_v28 = vld [vmem:[#allocation5 + $0x510] ss:$8 sps:$4 sm:$0xff]   ;;  %10630 = vst [vmem:[#allocation13_spill] sm:$0xff] %v8142_v48  ;;  %v8169_v3 = vld [vmem:[%s5703_s18 + $0x700] sm:$0xff]  ;;  %v5271_v50 = vld [vmem:[#allocation5 + $0x2b4] ss:$8 sps:$4 sm:$0xff]  }
 0x242   : > { %v8092_v62 = vld [vmem:[%s5703_s18 + $0x430] sm:$0xff]  ;;  %10635 = vst [vmem:[#allocation46_spill] sm:$0xff] %v8169_v3  ;;  %v5263_v47 = vld [vmem:[#allocation5 + $0x2a0] ss:$8 sps:$4 sm:$0xff]   ;;  %v5289_v19 = vld [vmem:[#allocation5 + $0x2e4] ss:$8 sps:$4 sm:$0xff]  }
 0x243   : > { %v2896_v13 = vsel %vm2839_vm6, %v2679_v59, %v2895_v43  ;;  %10620 = vst [vmem:[#allocation19_spill] sm:$0xff] %v8092_v62  ;;  %v5257_v8 = vld [vmem:[#allocation5 + $0x290] ss:$8 sps:$4 sm:$0xff]   ;;  %v8179_v59 = vld [vmem:[%s5703_s18 + $0x760] sm:$0xff]  ;;  %v5283_v6 = vld [vmem:[#allocation5 + $0x2d4] ss:$8 sps:$4 sm:$0xff]   ;;  %v10669_v62 = vunpack.c.h.bf16 %v8109_v49 }
 0x244   : > { %v2977_v23 = vpack.c.bf16 %v2896_v13, %v2896_v13  ;;  %v5251_v13 = vld [vmem:[#allocation5 + $0x280] ss:$8 sps:$4 sm:$0xff]   ;;  %v8152_v7 = vld [vmem:[%s5703_s18 + $0x670] sm:$0xff]  ;;  %10637 = vst [vmem:[#allocation25_spill] sm:$0xff] %v8179_v59  ;;  %v5277_v43 = vld [vmem:[#allocation5 + $0x2c4] ss:$8 sps:$4 sm:$0xff]  }
 0x245   : > { %4244 = vmatpush1.bf16.msra.mxu1 %v5251_v13  ;;  %v8149_v13 = vld [vmem:[%s5703_s18 + $0x640] sm:$0xff]  ;;  %10632 = vst [vmem:[#allocation58_spill] sm:$0xff] %v8152_v7  ;;  %v5224_v5 = vld [vmem:[#allocation5 + $0x530] ss:$8 sps:$4 sm:$0xff]   ;;  %v5250_v51 = vld [vmem:[#allocation5 + $0x574] ss:$8 sps:$4 sm:$0xff]  }
 0x246   : > { %4342 = vmatmul.mubr.bf16.vlgmr.msra.gmra.mrb[0].mxu0 %v2977_v23  ;;  %v8112_v23 = vld [vmem:[%s5703_s18 + $0x4f0] sm:$0xff]  ;;  %4245 = vmatprep.subr.bf16.mxu1 %v5259_v46  ;;  %10631 = vst [vmem:[#allocation61_spill] sm:$0xff] %v8149_v13  ;;  %v5230_v35 = vld [vmem:[#allocation5 + $0x540] ss:$8 sps:$4 sm:$0xff]  }
 0x247   : > { %4351 = vmatpush1.bf16.msra.mxu0 %v5206_v55  ;;  %10624 = vst [vmem:[#allocation14_spill] sm:$0xff] %v8112_v23  ;;  %v8119_v55 = vld [vmem:[%s5703_s18 + $0x520] sm:$0xff]  ;;  %v8162_v46 = vld [vmem:[%s5703_s18 + $0x6d0] sm:$0xff] }
 0x248   : > { %4352 = vmatprep.subr.bf16.mxu0 %v5214_v25  ;;  %10625 = vst [vmem:[#allocation62_spill] sm:$0xff] %v8119_v55  ;;  %v5226_v25 = vld [vmem:[#allocation5 + $0x534] ss:$8 sps:$4 sm:$0xff]   ;;  %10634 = vst [vmem:[#allocation43_spill] sm:$0xff] %v8162_v46  ;;  %v8209_v20 = vld [vmem:[%s5703_s18 + $0x880] sm:$0xff] }
 0x249   : > { %v8172_v11 = vld [vmem:[%s5703_s18 + $0x730] sm:$0xff]  ;;  %4246 = vmatpush1.bf16.msra.mxu1 %v5257_v8  ;;  %v8189_v8 = vld [vmem:[%s5703_s18 + $0x7c0] sm:$0xff]  ;;  %10643 = vst [vmem:[#allocation20_spill] sm:$0xff] %v8209_v20 }
 0x24a   : > { %10636 = vst [vmem:[#allocation47_spill] sm:$0xff] %v8172_v11  ;;  %4247 = vmatprep.subr.bf16.mxu1 %v5265_v14  ;;  %10639 = vst [vmem:[#allocation44_spill] sm:$0xff] %v8189_v8  ;;  %v8192_v41 = vld [vmem:[%s5703_s18 + $0x7f0] sm:$0xff]  ;;  %v8219_v17 = vld [vmem:[%s5703_s18 + $0x8e0] sm:$0xff] }
 0x24b   : > { %4353 = vmatpush1.bf16.msra.mxu0 %v5212_v28  ;;  %v8159_v28 = vld [vmem:[%s5703_s18 + $0x6a0] sm:$0xff]  ;;  %10640 = vst [vmem:[#allocation22_spill] sm:$0xff] %v8192_v41  ;;  %v8202_v14 = vld [vmem:[%s5703_s18 + $0x850] sm:$0xff]  ;;  %10645 = vst [vmem:[#allocation55_spill] sm:$0xff] %v8219_v17 }
 0x24c   : > { %4354 = vmatprep.subr.bf16.mxu0 %v5220_v18  ;;  %10633 = vst [vmem:[#allocation71_spill] sm:$0xff] %v8159_v28  ;;  %v5232_v18 = vld [vmem:[#allocation5 + $0x544] ss:$8 sps:$4 sm:$0xff]   ;;  %10642 = vst [vmem:[#allocation63_spill] sm:$0xff] %v8202_v14  ;;  %v8212_v22 = vld [vmem:[%s5703_s18 + $0x8b0] sm:$0xff] }
 0x24d   : > { %10644 = vst [vmem:[#allocation45_spill] sm:$0xff] %v8212_v22  ;;  %4248 = vmatpush1.bf16.msra.mxu1 %v5263_v47  ;;  %v8222_v39 = vld [vmem:[%s5703_s18 + $0x910] sm:$0xff]  ;;  %v8229_v47 = vld [vmem:[%s5703_s18 + $0x940] sm:$0xff] }
 0x24e   : > { %10646 = vst [vmem:[#allocation33_spill] sm:$0xff] %v8222_v39  ;;  %4249 = vmatprep.subr.bf16.mxu1 %v5271_v50  ;;  %10647 = vst [vmem:[#allocation52_spill] sm:$0xff] %v8229_v47  ;;  %v8232_v1 = vld [vmem:[%s5703_s18 + $0x970] sm:$0xff]  ;;  %v8249_v44 = vld [vmem:[%s5703_s18 + $0xa00] sm:$0xff] }
 0x24f   : > { %4355 = vmatpush1.bf16.msra.mxu0 %v5218_v9  ;;  %v8199_v9 = vld [vmem:[%s5703_s18 + $0x820] sm:$0xff]  ;;  %10648 = vst [vmem:[#allocation21_spill] sm:$0xff] %v8232_v1  ;;  %v8242_v50 = vld [vmem:[%s5703_s18 + $0x9d0] sm:$0xff]  ;;  %10651 = vst [vmem:[#allocation51_spill] sm:$0xff] %v8249_v44 }
 0x250   : > { %4356 = vmatprep.subr.bf16.mxu0 %v5226_v25  ;;  %10641 = vst [vmem:[#allocation26_spill] sm:$0xff] %v8199_v9  ;;  %v5238_v25 = vld [vmem:[#allocation5 + $0x554] ss:$8 sps:$4 sm:$0xff]   ;;  %10650 = vst [vmem:[#allocation27_spill] sm:$0xff] %v8242_v50  ;;  %v5236_v59 = vld [vmem:[#allocation5 + $0x550] ss:$8 sps:$4 sm:$0xff]  }
 0x251   : > { %v8252_v31 = vld [vmem:[%s5703_s18 + $0xa30] sm:$0xff]  ;;  %4250 = vmatpush1.bf16.msra.mxu1 %v5269_v29  ;;  %v5275_v54 = vld [vmem:[#allocation5 + $0x2c0] ss:$8 sps:$4 sm:$0xff]  }
 0x252   : > { %10652 = vst [vmem:[#allocation54_spill] sm:$0xff] %v8252_v31  ;;  %v8259_v15 = vld [vmem:[%s5703_s18 + $0xa60] sm:$0xff]  ;;  %v8262_v12 = vld [vmem:[%s5703_s18 + $0xa90] sm:$0xff]  ;;  %4251 = vmatprep.subr.bf16.mxu1 %v5277_v43 }
 0x253   : > { %4357 = vmatpush1.bf16.msra.mxu0 %v5224_v5  ;;  %v8239_v5 = vld [vmem:[%s5703_s18 + $0x9a0] sm:$0xff]  ;;  %10653 = vst [vmem:[#allocation24_spill] sm:$0xff] %v8259_v15  ;;  %10654 = vst [vmem:[#allocation41_spill] sm:$0xff] %v8262_v12  ;;  %v8272_v34 = vld [vmem:[%s5703_s18 + $0xaf0] sm:$0xff]  ;;  %v1380_v53 = vunpack.c.h.bf16 %v8262_v12  ;;  %v10663_v12 = vunpack.c.h.bf16 %v7992_v0  ;;  %v10664_v15 = vunpack.c.h.bf16 %v7987_v60  ;;  %v10671_v60 = vunpack.c.h.bf16 %v8149_v13 }
 0x254   : > { %4358 = vmatprep.subr.bf16.mxu0 %v5232_v18  ;;  %10649 = vst [vmem:[#allocation34_spill] sm:$0xff] %v8239_v5  ;;  %v8269_v29 = vld [vmem:[%s5703_s18 + $0xac0] sm:$0xff]  ;;  %10656 = vst [vmem:[#allocation42_spill] sm:$0xff] %v8272_v34  ;;  %v8282_v43 = vld [vmem:[%s5703_s18 + $0xb50] sm:$0xff] }
 0x255   : > { %10655 = vst [vmem:[#allocation60_spill] sm:$0xff] %v8269_v29  ;;  %v5244_v18 = vld [vmem:[#allocation5 + $0x564] ss:$8 sps:$4 sm:$0xff]   ;;  %10658 = vst [vmem:[#allocation59_spill] sm:$0xff] %v8282_v43  ;;  %v8292_v22 = vld [vmem:[%s5703_s18 + $0xbb0] sm:$0xff]  ;;  %4252 = vmatpush1.bf16.msra.mxu1 %v5275_v54  ;;  %v1392_v17 = vunpack.c.h.bf16 %v8269_v29  ;;  %v10665_v43 = vunpack.c.h.bf16 %v8031_v32  ;;  %v10666_v29 = vunpack.c.h.bf16 %v8025_v63  ;;  %v10670_v54 = vunpack.c.h.bf16 %v8102_v24 }
 0x256   : > { %v8289_v33 = vld [vmem:[%s5703_s18 + $0xb80] sm:$0xff]  ;;  %10660 = vst [vmem:[#allocation64_spill] sm:$0xff] %v8292_v22  ;;  %v5281_v37 = vld [vmem:[#allocation5 + $0x2d0] ss:$8 sps:$4 sm:$0xff]   ;;  %4253 = vmatprep.subr.bf16.mxu1 %v5283_v6  ;;  %v8314_v6 = vld [vmem:[%s5703_s18 + $0x28] sm:$0xff]  ;;  %v10668_v22 = vunpack.c.h.bf16 %v8064_v45  ;;  %v10673_v63 = vunpack.c.h.bf16 %v8189_v8  ;;  %v10676_v24 = vunpack.c.h.bf16 %v8034_v21 }
 0x257   : > { %4359 = vmatpush1.bf16.msra.mxu0 %v5230_v35  ;;  %v8279_v35 = vld [vmem:[%s5703_s18 + $0xb20] sm:$0xff]  ;;  %10659 = vst [vmem:[#allocation65_spill] sm:$0xff] %v8289_v33  ;;  %10662 = vst [vmem:[#allocation28_spill] sm:$0xff] %v8314_v6  ;;  %v1692_v11 = vmax.f32 %v10666_v29, %v10665_v43  ;;  %v2004_v0 = vmax.f32 %v10670_v54, %v10669_v62  ;;  %v5248_v43 = vld [vmem:[#allocation5 + $0x570] ss:$8 sps:$4 sm:$0xff]   ;;  %v10677_v54 = vunpack.c.h.bf16 %v8229_v47  ;;  %v10683_v47 = vunpack.c.h.bf16 %v8002_v10 }
 0x258   : > { %4360 = vmatprep.subr.bf16.mxu0 %v5238_v25  ;;  %10657 = vst [vmem:[#allocation35_spill] sm:$0xff] %v8279_v35  ;;  %v8299_v2 = vld [vmem:[%s5703_s18 + $0xbe0] sm:$0xff]  ;;  %v5295_v45 = vld [vmem:[#allocation5 + $0x2f4] ss:$8 sps:$4 sm:$0xff]   ;;  %v8693_v8 = vld [vmem:[%s5703_s18 + $0x9e8] sm:$0xff] }
 0x259   : > { %10661 = vst [vmem:[#allocation73_spill] sm:$0xff] %v8299_v2  ;;  %v5242_v25 = vld [vmem:[#allocation5 + $0x560] ss:$8 sps:$4 sm:$0xff]   ;;  %4254 = vmatpush1.bf16.msra.mxu1 %v5281_v37  ;;  %v10674_v37 = vunpack.c.h.bf16 %v8182_v52  ;;  %v1693_v62 = vmax.f32 %v1692_v11, %v10676_v24  ;;  %v5256_v52 = vld [vmem:[#allocation5 + $0x584] ss:$8 sps:$4 sm:$0xff]   ;;  %v10682_v11 = vunpack.c.h.bf16 %v8192_v41  ;;  %10767 = vst [vmem:[#allocation112_spill] sm:$0xff] %v8693_v8 }
 0x25a   : > { %v5287_v31 = vld [vmem:[#allocation5 + $0x2e0] ss:$8 sps:$4 sm:$0xff]   ;;  %4255 = vmatprep.subr.bf16.mxu1 %v5289_v19  ;;  %v10680_v19 = vunpack.c.h.bf16 %v8112_v23  ;;  %v8700_v41 = vld [vmem:[%s5703_s18 + $0xa18] sm:$0xff] }
 0x25b   : > { %4361 = vmatpush1.bf16.msra.mxu0 %v5236_v59  ;;  %v10667_v59 = vunpack.c.h.bf16 %v8071_v38  ;;  %v2316_v29 = vmax.f32 %v10674_v37, %v10673_v63  ;;  %v10679_v63 = vunpack.c.h.bf16 %v8074_v56  ;;  %v2628_v56 = vmax.f32 %v1380_v53, %v1392_v17  ;;  %v8683_v23 = vld [vmem:[%s5703_s18 + $0x988] sm:$0xff]  ;;  %10768 = vst [vmem:[#allocation88_spill] sm:$0xff] %v8700_v41  ;;  %v8710_v10 = vld [vmem:[%s5703_s18 + $0xa78] sm:$0xff] }
 0x25c   : > { %4362 = vmatprep.subr.bf16.mxu0 %v5244_v18  ;;  %v1536_v18 = vmax.f32 %v10664_v15, %v10663_v12  ;;  %v10672_v15 = vunpack.c.h.bf16 %v8142_v48  ;;  %v10678_v48 = vunpack.c.h.bf16 %v8222_v39  ;;  %v2005_v37 = vmax.f32 %v2004_v0, %v10680_v19  ;;  %10765 = vst [vmem:[#allocation92_spill] sm:$0xff] %v8683_v23  ;;  %10770 = vst [vmem:[#allocation107_spill] sm:$0xff] %v8710_v10  ;;  %v8713_v38 = vld [vmem:[%s5703_s18 + $0xaa8] sm:$0xff]  ;;  %v8720_v21 = vld [vmem:[%s5703_s18 + $0xad8] sm:$0xff] }
 0x25d   : > { %v1848_v33 = vmax.f32 %v10668_v22, %v10667_v59  ;;  %v10675_v22 = vunpack.c.h.bf16 %v7997_v4  ;;  %v2317_v24 = vmax.f32 %v2316_v29, %v10682_v11  ;;  %4256 = vmatpush1.bf16.msra.mxu1 %v5287_v31  ;;  %v10686_v0 = vunpack.c.h.bf16 %v8080_v30  ;;  %v8690_v30 = vld [vmem:[%s5703_s18 + $0x9b8] sm:$0xff]  ;;  %v8703_v4 = vld [vmem:[%s5703_s18 + $0xa48] sm:$0xff]  ;;  %10771 = vst [vmem:[#allocation105_spill] sm:$0xff] %v8713_v38  ;;  %10772 = vst [vmem:[#allocation91_spill] sm:$0xff] %v8720_v21 }
 0x25e   : > { %v2160_v12 = vmax.f32 %v10672_v15, %v10671_v60  ;;  %v2472_v60 = vmax.f32 %v10678_v48, %v10677_v54  ;;  %v10684_v48 = vunpack.c.h.bf16 %v8039_v26  ;;  %v10688_v29 = vunpack.c.h.bf16 %v8159_v28  ;;  %4257 = vmatprep.subr.bf16.mxu1 %v5295_v45  ;;  %v8643_v28 = vld [vmem:[%s5703_s18 + $0x808] sm:$0xff]  ;;  %10766 = vst [vmem:[#allocation108_spill] sm:$0xff] %v8690_v30  ;;  %10769 = vst [vmem:[#allocation110_spill] sm:$0xff] %v8703_v4 }
 0x25f   : > { %4363 = vmatpush1.bf16.msra.mxu0 %v5242_v25  ;;  %v1537_v59 = vmax.f32 %v1536_v18, %v10675_v22  ;;  %v1849_v25 = vmax.f32 %v1848_v33, %v10679_v63  ;;  %v10681_v18 = vunpack.c.h.bf16 %v8152_v7  ;;  %v5293_v33 = vld [vmem:[#allocation5 + $0x2f0] ss:$8 sps:$4 sm:$0xff]   ;;  %v10691_v31 = vunpack.c.h.bf16 %v8045_v58  ;;  %v8633_v58 = vld [vmem:[%s5703_s18 + $0x7a8] sm:$0xff] }
 0x260   : > { %4364 = vmatprep.subr.bf16.mxu0 %v5250_v51  ;;  %v1694_v54 = vmax.f32 %v1693_v62, %v10684_v48  ;;  %v10685_v51 = vunpack.c.h.bf16 %v8232_v1  ;;  %v5254_v62 = vld [vmem:[#allocation5 + $0x580] ss:$8 sps:$4 sm:$0xff]   ;;  %v5262_v48 = vld [vmem:[#allocation5 + $0x594] ss:$8 sps:$4 sm:$0xff]   ;;  %v10695_v45 = vunpack.c.h.bf16 %v8162_v46  ;;  %v5280_v1 = vld [vmem:[#allocation5 + $0x5c4] ss:$8 sps:$4 sm:$0xff]   ;;  %v1314_v32 = vunpack.c.h.bf16 %v8683_v23 }
 0x261   : > { %v2161_v22 = vmax.f32 %v2160_v12, %v10681_v18  ;;  %v1538_v39 = vmax.f32 %v1537_v59, %v10683_v47  ;;  %v1850_v63 = vmax.f32 %v1849_v25, %v10686_v0  ;;  %v10687_v12 = vunpack.c.h.bf16 %v8119_v55  ;;  %4258 = vmatpush1.bf16.msra.mxu1 %v5293_v33  ;;  %v8613_v46 = vld [vmem:[%s5703_s18 + $0x6e8] sm:$0xff]  ;;  %10758 = vst [vmem:[#allocation82_spill] sm:$0xff] %v8633_v58 }
 0x262   : > { %v2473_v15 = vmax.f32 %v2472_v60, %v10685_v51  ;;  %v10689_v47 = vunpack.c.h.bf16 %v8199_v9  ;;  %v10690_v60 = vunpack.c.h.bf16 %v8007_v42  ;;  %v1695_v17 = vmax.f32 %v1694_v54, %v10691_v31  ;;  %v8653_v55 = vld [vmem:[%s5703_s18 + $0x868] sm:$0xff]  ;;  %v8670_v9 = vld [vmem:[%s5703_s18 + $0x8f8] sm:$0xff] }
 0x263   : > { %v2006_v19 = vmax.f32 %v2005_v37, %v10687_v12  ;;  %v2162_v18 = vmax.f32 %v2161_v22, %v10688_v29  ;;  %4365 = vmatpush1.bf16.msra.mxu0 %v5248_v43  ;;  %v10692_v25 = vunpack.c.h.bf16 %v8239_v5  ;;  %v10693_v22 = vunpack.c.h.bf16 %v8083_v40  ;;  %v10715_v37 = vld [vmem:[#allocation47_spill] sm:$0xff]  ;;  %10759 = vst [vmem:[#allocation95_spill] sm:$0xff] %v8653_v55  ;;  %v8663_v26 = vld [vmem:[%s5703_s18 + $0x8c8] sm:$0xff]  ;;  %10762 = vst [vmem:[#allocation99_spill] sm:$0xff] %v8670_v9 }
 0x264   : > { %v2318_v59 = vmax.f32 %v2317_v24, %v10689_v47  ;;  %v1539_v53 = vmax.f32 %v1538_v39, %v10690_v60  ;;  %4366 = vmatprep.subr.bf16.mxu0 %v5256_v52  ;;  %v10694_v43 = vunpack.c.h.bf16 %v8122_v36  ;;  %v10696_v39 = vunpack.c.h.bf16 %v8202_v14  ;;  %v8623_v36 = vld [vmem:[%s5703_s18 + $0x748] sm:$0xff]  ;;  %v8640_v14 = vld [vmem:[%s5703_s18 + $0x7d8] sm:$0xff]  ;;  %10761 = vst [vmem:[#allocation89_spill] sm:$0xff] %v8663_v26 }
 0x265   : > { %v2474_v11 = vmax.f32 %v2473_v15, %v10692_v25  ;;  %v1851_v51 = vmax.f32 %v1850_v63, %v10693_v22  ;;  %v2163_v0 = vmax.f32 %v2162_v18, %v10695_v45  ;;  %v10697_v54 = vunpack.c.h.bf16 %v8011_v61  ;;  %10756 = vst [vmem:[#allocation98_spill] sm:$0xff] %v8623_v36  ;;  %v8650_v61 = vld [vmem:[%s5703_s18 + $0x838] sm:$0xff]  ;;  %v8673_v7 = vld [vmem:[%s5703_s18 + $0x928] sm:$0xff] }
 0x266   : > { %v2007_v24 = vmax.f32 %v2006_v19, %v10694_v43  ;;  %v2319_v12 = vmax.f32 %v2318_v59, %v10696_v39  ;;  %v10698_v15 = vunpack.c.h.bf16 %v8048_v27  ;;  %v10699_v52 = vunpack.c.h.bf16 %v8242_v50  ;;  %v10705_v39 = vld [vmem:[#allocation29_spill] sm:$0xff]  ;;  %v8660_v40 = vld [vmem:[%s5703_s18 + $0x898] sm:$0xff]  ;;  %10763 = vst [vmem:[#allocation104_spill] sm:$0xff] %v8673_v7 }
 0x267   : > { %v1540_v29 = vmax.f32 %v1539_v53, %v10697_v54  ;;  %v10700_v63 = vunpack.c.h.bf16 %v8272_v34  ;;  %v10701_v19 = vunpack.c.h.bf16 %v8089_v16  ;;  %v10702_v18 = vunpack.c.h.bf16 %v8129_v57  ;;  %4367 = vmatpush1.bf16.msra.mxu0 %v5254_v62  ;;  %v8593_v57 = vld [vmem:[%s5703_s18 + $0x628] sm:$0xff]  ;;  %v8630_v16 = vld [vmem:[%s5703_s18 + $0x778] sm:$0xff]  ;;  %10760 = vst [vmem:[#allocation102_spill] sm:$0xff] %v8660_v40 }
 0x268   : > { %v1696_v47 = vmax.f32 %v1695_v17, %v10698_v15  ;;  %v2475_v60 = vmax.f32 %v2474_v11, %v10699_v52  ;;  %v10703_v59 = vunpack.c.h.bf16 %v8169_v3  ;;  %v10704_v53 = vunpack.c.h.bf16 %v8209_v20  ;;  %v5260_v17 = vld [vmem:[#allocation5 + $0x590] ss:$8 sps:$4 sm:$0xff]   ;;  %4368 = vmatprep.subr.bf16.mxu0 %v5262_v48  ;;  %v8583_v3 = vld [vmem:[%s5703_s18 + $0x5c8] sm:$0xff]  ;;  %10753 = vst [vmem:[#allocation85_spill] sm:$0xff] %v8593_v57  ;;  %10757 = vst [vmem:[#allocation111_spill] sm:$0xff] %v8630_v16 }
 0x269   : > { %v2629_v31 = vmax.f32 %v2628_v56, %v10700_v63  ;;  %v1852_v25 = vmax.f32 %v1851_v51, %v10701_v19  ;;  %v2008_v22 = vmax.f32 %v2007_v24, %v10702_v18  ;;  %v10706_v11 = vunpack.c.h.bf16 %v10705_v39  ;;  %v10707_v15 = vld [vmem:[#allocation18_spill] sm:$0xff]  ;;  %10751 = vst [vmem:[#allocation100_spill] sm:$0xff] %v8583_v3  ;;  %v8610_v20 = vld [vmem:[%s5703_s18 + $0x6b8] sm:$0xff] }
 0x26a   : > { %v2164_v43 = vmax.f32 %v2163_v0, %v10703_v59  ;;  %v2320_v45 = vmax.f32 %v2319_v12, %v10704_v53  ;;  %v10708_v56 = vunpack.c.h.bf16 %v10707_v15  ;;  %v10709_v52 = vunpack.c.h.bf16 %v8249_v44  ;;  %v5268_v19 = vld [vmem:[#allocation5 + $0x5a4] ss:$8 sps:$4 sm:$0xff]   ;;  %v10711_v0 = vld [vmem:[#allocation19_spill] sm:$0xff]  ;;  %v10713_v12 = vld [vmem:[#allocation16_spill] sm:$0xff] }
 0x26b   : > { %v1541_v54 = vmax.f32 %v1540_v29, %v10706_v11  ;;  %v10710_v63 = vunpack.c.h.bf16 %v8279_v35  ;;  %v10712_v18 = vunpack.c.h.bf16 %v10711_v0  ;;  %v10714_v62 = vunpack.c.h.bf16 %v10713_v12  ;;  %v10717_v11 = vld [vmem:[#allocation45_spill] sm:$0xff]  ;;  %v10723_v48 = vld [vmem:[#allocation54_spill] sm:$0xff]  ;;  %v10725_v0 = vld [vmem:[#allocation59_spill] sm:$0xff]  ;;  %4369 = vmatpush1.bf16.msra.mxu0 %v5260_v17 }
 0x26c   : > { %v1697_v33 = vmax.f32 %v1696_v47, %v10708_v56  ;;  %v2476_v51 = vmax.f32 %v2475_v60, %v10709_v52  ;;  %v10716_v50 = vunpack.c.h.bf16 %v10715_v37  ;;  %v10718_v5 = vunpack.c.h.bf16 %v10717_v11  ;;  %v10719_v56 = vld [vmem:[#allocation30_spill] sm:$0xff]  ;;  %v10721_v52 = vld [vmem:[#allocation69_spill] sm:$0xff]  ;;  %v10729_v37 = vld [vmem:[#allocation56_spill] sm:$0xff]  ;;  %4370 = vmatprep.subr.bf16.mxu0 %v5268_v19 }
 0x26d   : > { %v2630_v24 = vmax.f32 %v2629_v31, %v10710_v63  ;;  %v1853_v59 = vmax.f32 %v1852_v25, %v10712_v18  ;;  %v2009_v53 = vmax.f32 %v2008_v22, %v10714_v62  ;;  %v10720_v44 = vunpack.c.h.bf16 %v10719_v56  ;;  %v10727_v12 = vld [vmem:[#allocation37_spill] sm:$0xff]  ;;  %v10733_v56 = vld [vmem:[#allocation55_spill] sm:$0xff] }
 0x26e   : > { %v2165_v29 = vmax.f32 %v2164_v43, %v10716_v50  ;;  %v2321_v47 = vmax.f32 %v2320_v45, %v10718_v5  ;;  %v10722_v35 = vunpack.c.h.bf16 %v10721_v52  ;;  %v10724_v63 = vunpack.c.h.bf16 %v10723_v48  ;;  %v10731_v11 = vld [vmem:[#allocation25_spill] sm:$0xff]  ;;  %v8620_v39 = vld [vmem:[%s5703_s18 + $0x718] sm:$0xff] }
 0x26f   : > { %v1542_v60 = vmax.f32 %v1541_v54, %v10720_v44  ;;  %v10726_v25 = vunpack.c.h.bf16 %v10725_v0  ;;  %v10728_v22 = vunpack.c.h.bf16 %v10727_v12  ;;  %v10730_v50 = vunpack.c.h.bf16 %v10729_v37  ;;  %v8603_v27 = vld [vmem:[%s5703_s18 + $0x688] sm:$0xff]  ;;  %10755 = vst [vmem:[#allocation109_spill] sm:$0xff] %v8620_v39  ;;  %v8680_v42 = vld [vmem:[%s5703_s18 + $0x958] sm:$0xff] }
 0x270   : > { %v1698_v31 = vmax.f32 %v1697_v33, %v10722_v35  ;;  %v2477_v34 = vmax.f32 %v2476_v51, %v10724_v63  ;;  %v10732_v5 = vunpack.c.h.bf16 %v10731_v11  ;;  %v10734_v44 = vunpack.c.h.bf16 %v10733_v56  ;;  %v5266_v35 = vld [vmem:[#allocation5 + $0x5a0] ss:$8 sps:$4 sm:$0xff]   ;;  %10764 = vst [vmem:[#allocation101_spill] sm:$0xff] %v8680_v42  ;;  %v8750_v36 = vld [vmem:[%s5703_s18 + $0xbf8] sm:$0xff] }
 0x271   : > { %v2631_v18 = vmax.f32 %v2630_v24, %v10726_v25  ;;  %v1854_v62 = vmax.f32 %v1853_v59, %v10728_v22  ;;  %v2010_v43 = vmax.f32 %v2009_v53, %v10730_v50  ;;  %v1543_v33 = vrot.slane %v1542_v60, 4  ;;  %v10735_v51 = vld [vmem:[#allocation24_spill] sm:$0xff]  ;;  %v10737_v24 = vld [vmem:[#allocation65_spill] sm:$0xff]  ;;  %4371 = vmatpush1.bf16.msra.mxu0 %v5266_v35  ;;  %10778 = vst [vmem:[#allocation114_spill] sm:$0xff] %v8750_v36 }
 0x272   : > { %v2166_v45 = vmax.f32 %v2165_v29, %v10732_v5  ;;  %v2322_v54 = vmax.f32 %v2321_v47, %v10734_v44  ;;  %v1699_v48 = vrot.slane %v1698_v31, 4  ;;  %v10736_v63 = vunpack.c.h.bf16 %v10735_v51  ;;  %v5274_v59 = vld [vmem:[#allocation5 + $0x5b4] ss:$8 sps:$4 sm:$0xff]   ;;  %v8723_v9 = vld [vmem:[%s5703_s18 + $0xb08] sm:$0xff] }
 0x273   : > { %v10738_v25 = vunpack.c.h.bf16 %v10737_v24  ;;  %v1855_v22 = vrot.slane %v1854_v62, 4  ;;  %v2011_v53 = vrot.slane %v2010_v43, 4  ;;  %v1544_v29 = vmax.f32 %v1542_v60, %v1543_v33  ;;  %v10739_v47 = vld [vmem:[#allocation64_spill] sm:$0xff]  ;;  %4372 = vmatprep.subr.bf16.mxu0 %v5274_v59  ;;  %10773 = vst [vmem:[#allocation97_spill] sm:$0xff] %v8723_v9 }
 0x274   : > { %v2478_v0 = vmax.f32 %v2477_v34, %v10736_v63  ;;  %v2167_v50 = vrot.slane %v2166_v45, 4  ;;  %v2323_v11 = vrot.slane %v2322_v54, 4  ;;  %v1700_v5 = vmax.f32 %v1698_v31, %v1699_v48  ;;  %v5272_v34 = vld [vmem:[#allocation5 + $0x5b0] ss:$8 sps:$4 sm:$0xff]  }
 0x275   : > { %v2632_v12 = vmax.f32 %v2631_v18, %v10738_v25  ;;  %v10740_v17 = vunpack.c.h.bf16 %v10739_v47  ;;  %v1856_v37 = vmax.f32 %v1854_v62, %v1855_v22  ;;  %v2012_v52 = vmax.f32 %v2010_v43, %v2011_v53  ;;  %4373 = vmatpush1.bf16.msra.mxu0 %v5272_v34  ;;  %v8448_v34 = vld [vmem:[%s5703_s18 + $0x88] sm:$0xff] }
 0x276   : > { %v2479_v56 = vrot.slane %v2478_v0, 4  ;;  %v2168_v15 = vmax.f32 %v2166_v45, %v2167_v50  ;;  %v2324_v51 = vmax.f32 %v2322_v54, %v2323_v11  ;;  %v1545_v63 = vrot.slane %v1544_v29, 2  ;;  %4374 = vmatprep.subr.bf16.mxu0 %v5280_v1  ;;  %v8451_v1 = vld [vmem:[%s5703_s18 + $0xb8] sm:$0xff] }
 0x277   : > { %v2633_v44 = vmax.f32 %v2632_v12, %v10740_v17  ;;  %v1701_v18 = vrot.slane %v1700_v5, 2  ;;  %v10741_v25 = vunpack.c.h.bf16 %v8299_v2  ;;  %v1857_v60 = vrot.slane %v1856_v37, 2  ;;  %v8570_v2 = vld [vmem:[%s5703_s18 + $0x538] sm:$0xff] }
 0x278   : > { %v2480_v19 = vmax.f32 %v2478_v0, %v2479_v56  ;;  %v2013_v31 = vrot.slane %v2012_v52, 2  ;;  %v2169_v48 = vrot.slane %v2168_v15, 2  ;;  %v2325_v33 = vrot.slane %v2324_v51, 2  ;;  %v5278_v0 = vld [vmem:[#allocation5 + $0x5c0] ss:$8 sps:$4 sm:$0xff]  }
 0x279   : > { %v2634_v24 = vmax.f32 %v2633_v44, %v10741_v25  ;;  %v1546_v47 = vmax.f32 %v1544_v29, %v1545_v63  ;;  %v1702_v12 = vmax.f32 %v1700_v5, %v1701_v18  ;;  %v1858_v45 = vmax.f32 %v1856_v37, %v1857_v60  ;;  %v5286_v56 = vld [vmem:[#allocation5 + $0x5d4] ss:$8 sps:$4 sm:$0xff]   ;;  %4375 = vmatpush1.bf16.msra.mxu0 %v5278_v0  ;;  %v5284_v60 = vld [vmem:[#allocation5 + $0x5d0] ss:$8 sps:$4 sm:$0xff]   ;;  %v8563_v0 = vld [vmem:[%s5703_s18 + $0x508] sm:$0xff] }
 0x27a   : > { %v2481_v62 = vrot.slane %v2480_v19, 2  ;;  %v2014_v11 = vmax.f32 %v2012_v52, %v2013_v31  ;;  %v2170_v54 = vmax.f32 %v2168_v15, %v2169_v48  ;;  %v2326_v35 = vmax.f32 %v2324_v51, %v2325_v33  ;;  %v8445_v63 = vld [vmem:[%s5703_s18 + $0x58] sm:$0xff]  ;;  %v8455_v33 = vld [vmem:[%s5703_s18 + $0xe8] sm:$0xff]  ;;  %4376 = vmatprep.subr.bf16.mxu0 %v5286_v56 }
 0x27b   : > { %v2635_v43 = vrot.slane %v2634_v24, 4  ;;  %v1547_v22 = vrot.slane %v1546_v47, 1  ;;  %v1703_v59 = vrot.slane %v1702_v12, 1  ;;  %v1859_v17 = vrot.slane %v1858_v45, 1  ;;  %10742 = vst [vmem:[#allocation66_spill] sm:$0xff] %v8445_v63 }
 0x27c   : > { %v2482_v53 = vmax.f32 %v2480_v19, %v2481_v62  ;;  %v2015_v29 = vrot.slane %v2014_v11, 1  ;;  %v2171_v5 = vrot.slane %v2170_v54, 1  ;;  %v2327_v44 = vrot.slane %v2326_v35, 1  ;;  %v8573_v62 = vld [vmem:[%s5703_s18 + $0x568] sm:$0xff] }
 0x27d   : > { %v2636_v50 = vmax.f32 %v2634_v24, %v2635_v43  ;;  %v1548_v37 = vmax.f32 %v1546_v47, %v1547_v22  ;;  %v1704_v15 = vmax.f32 %v1702_v12, %v1703_v59  ;;  %v1860_v18 = vmax.f32 %v1858_v45, %v1859_v17  ;;  %v8458_v12 = vld [vmem:[%s5703_s18 + $0x118] sm:$0xff]  ;;  %v5292_v43 = vld [vmem:[#allocation5 + $0x5e4] ss:$8 sps:$4 sm:$0xff]   ;;  %4377 = vmatpush1.bf16.msra.mxu0 %v5284_v60 }
 0x27e   : > { %v2483_v52 = vrot.slane %v2482_v53, 1  ;;  %v2016_v19 = vmax.f32 %v2014_v11, %v2015_v29  ;;  %v2172_v24 = vmax.f32 %v2170_v54, %v2171_v5  ;;  %v2328_v25 = vmax.f32 %v2326_v35, %v2327_v44  ;;  %v8463_v11 = vld [vmem:[%s5703_s18 + $0x148] sm:$0xff]  ;;  %v8479_v5 = vld [vmem:[%s5703_s18 + $0x1d8] sm:$0xff]  ;;  %4378 = vmatprep.subr.bf16.mxu0 %v5292_v43 }
 0x27f   : > { %v2637_v51 = vrot.slane %v2636_v50, 2  ;;  %v2869_v47 = vsel %vm2827_vm0, %v1704_v15, %v1548_v37  ;;  %v8476_v29 = vld [vmem:[%s5703_s18 + $0x1a8] sm:$0xff]  ;;  %v8492_v15 = vld [vmem:[%s5703_s18 + $0x238] sm:$0xff]  ;;  %v1290_v49 = vunpack.c.h.bf16 %v8673_v7  ;;  %v1302_v13 = vunpack.c.h.bf16 %v8680_v42 }
 0x280   : > { %v2484_v31 = vmax.f32 %v2482_v53, %v2483_v52  ;;  %v2870_v45 = vsel %vm2829_vm1, %v1860_v18, %v2869_v47  ;;  %v8470_v53 = vld [vmem:[%s5703_s18 + $0x178] sm:$0xff]  ;;  %10744 = vst [vmem:[#allocation74_spill] sm:$0xff] %v8476_v29  ;;  %v5290_v52 = vld [vmem:[#allocation5 + $0x5e0] ss:$8 sps:$4 sm:$0xff]   ;;  %v1326_v7 = vunpack.c.h.bf16 %v8690_v30  ;;  %v1338_v56 = vunpack.c.h.bf16 %v8693_v8 }
 0x281   : > { %v2638_v48 = vmax.f32 %v2636_v50, %v2637_v51  ;;  %v2871_v59 = vsel %vm2831_vm2, %v2016_v19, %v2870_v45  ;;  %10743 = vst [vmem:[#allocation36_spill] sm:$0xff] %v8470_v53  ;;  %v8486_v19 = vld [vmem:[%s5703_s18 + $0x208] sm:$0xff]  ;;  %v5298_v45 = vld [vmem:[#allocation5 + $0x5f4] ss:$8 sps:$4 sm:$0xff]   ;;  %4379 = vmatpush1.bf16.msra.mxu0 %v5290_v52  ;;  %v1386_v26 = vunpack.c.h.bf16 %v8713_v38  ;;  %v1410_v23 = vunpack.c.h.bf16 %v8723_v9 }
 0x282   : > { %v2872_v17 = vsel %vm2833_vm3, %v2172_v24, %v2871_v59  ;;  %v8495_v60 = vld [vmem:[%s5703_s18 + $0x268] sm:$0xff]  ;;  %v8502_v47 = vld [vmem:[%s5703_s18 + $0x298] sm:$0xff]  ;;  %4380 = vmatprep.subr.bf16.mxu0 %v5298_v45  ;;  %v1470_v9 = vunpack.c.h.bf16 %v8750_v36  ;;  %v10779_v4 = vunpack.c.h.bf16 %v8445_v63  ;;  %v10781_v8 = vunpack.c.h.bf16 %v8479_v5 }
 0x283   : > { %v2639_v22 = vrot.slane %v2638_v48, 1  ;;  %v2873_v18 = vsel %vm2835_vm4, %v2328_v25, %v2872_v17  ;;  %v8505_v43 = vld [vmem:[%s5703_s18 + $0x2c8] sm:$0xff]  ;;  %v8511_v35 = vld [vmem:[%s5703_s18 + $0x2f8] sm:$0xff] }
 0x284   : > { %v2874_v59 = vsel %vm2837_vm5, %v2484_v31, %v2873_v18  ;;  %10745 = vst [vmem:[#allocation75_spill] sm:$0xff] %v8511_v35  ;;  %v8514_v25 = vld [vmem:[%s5703_s18 + $0x328] sm:$0xff]  ;;  %v5296_v31 = vld [vmem:[#allocation5 + $0x5f0] ss:$8 sps:$4 sm:$0xff]  }
 0x285   : > { %v2640_v51 = vmax.f32 %v2638_v48, %v2639_v22  ;;  %10746 = vst [vmem:[#allocation67_spill] sm:$0xff] %v8514_v25  ;;  %v8520_v22 = vld [vmem:[%s5703_s18 + $0x358] sm:$0xff]  ;;  %v8523_v44 = vld [vmem:[%s5703_s18 + $0x388] sm:$0xff]  ;;  %4381 = vmatpush1.bf16.msra.mxu0 %v5296_v31  ;;  %v10784_v24 = vunpack.c.h.bf16 %v8514_v25 }
 0x286   : > { %10747 = vst [vmem:[#allocation76_spill] sm:$0xff] %v8520_v22  ;;  %v8530_v52 = vld [vmem:[%s5703_s18 + $0x3b8] sm:$0xff]  ;;  %v8543_v37 = vld [vmem:[%s5703_s18 + $0x448] sm:$0xff] }
 0x287   : > { %v2875_v17 = vsel %vm2839_vm6, %v2640_v51, %v2874_v59  ;;  %v8533_v51 = vld [vmem:[%s5703_s18 + $0x3e8] sm:$0xff]  ;;  %v8540_v48 = vld [vmem:[%s5703_s18 + $0x418] sm:$0xff]  ;;  %10748 = vst [vmem:[#allocation80_spill] sm:$0xff] %v8543_v37 }
 0x288   : > { %v2974_v50 = vpack.c.bf16 %v2875_v17, %v2875_v17  ;;  %v8550_v59 = vld [vmem:[%s5703_s18 + $0x478] sm:$0xff]  ;;  %v8553_v17 = vld [vmem:[%s5703_s18 + $0x4a8] sm:$0xff] }
 0x289   : > { %10749 = vst [vmem:[#allocation77_spill] sm:$0xff] %v8550_v59  ;;  %v8560_v45 = vld [vmem:[%s5703_s18 + $0x4d8] sm:$0xff]  ;;  %v8733_v42 = vld [vmem:[%s5703_s18 + $0xb68] sm:$0xff]  ;;  %v1398_v59 = vunpack.c.h.bf16 %v8720_v21  ;;  %v10786_v35 = vunpack.c.h.bf16 %v8553_v17 }
 0x28a   : > { %4259 = vmatprep.mubr.bf16.mxu1 %v2974_v50  ;;  %10750 = vst [vmem:[#allocation86_spill] sm:$0xff] %v8560_v45  ;;  %v8580_v54 = vld [vmem:[%s5703_s18 + $0x598] sm:$0xff]  ;;  %10775 = vst [vmem:[#allocation103_spill] sm:$0xff] %v8733_v42  ;;  %v8743_v53 = vld [vmem:[%s5703_s18 + $0xbc8] sm:$0xff]  ;;  %v1434_v30 = vunpack.c.h.bf16 %v8733_v42  ;;  %v10782_v42 = vunpack.c.h.bf16 %v8476_v29  ;;  %v10790_v29 = vunpack.c.h.bf16 %v8633_v58  ;;  %v10796_v58 = vunpack.c.h.bf16 %v8643_v28 }
 0x28b   : > { %v8590_v50 = vld [vmem:[%s5703_s18 + $0x5f8] sm:$0xff]  ;;  %10777 = vst [vmem:[#allocation93_spill] sm:$0xff] %v8743_v53  ;;  %v1458_v21 = vunpack.c.h.bf16 %v8743_v53  ;;  %v10785_v53 = vunpack.c.h.bf16 %v8560_v45  ;;  %v2550_v45 = vmax.f32 %v1290_v49, %v1302_v13  ;;  %v2706_v25 = vmax.f32 %v1386_v26, %v1398_v59 }
 0x28c   : > { %10752 = vst [vmem:[#allocation94_spill] sm:$0xff] %v8590_v50  ;;  %v8600_v18 = vld [vmem:[%s5703_s18 + $0x658] sm:$0xff]  ;;  %v1770_v38 = vmax.f32 %v10782_v42, %v10781_v8  ;;  %v10791_v8 = vunpack.c.h.bf16 %v8448_v34  ;;  %v10799_v13 = vunpack.c.h.bf16 %v8530_v52  ;;  %v10800_v59 = vunpack.c.h.bf16 %v8570_v2 }
 0x28d   : > { %10754 = vst [vmem:[#allocation96_spill] sm:$0xff] %v8600_v18  ;;  %v8730_v50 = vld [vmem:[%s5703_s18 + $0xb38] sm:$0xff]  ;;  %v2082_v36 = vmax.f32 %v10786_v35, %v10785_v53  ;;  %v10787_v63 = vunpack.c.h.bf16 %v8600_v18  ;;  %v10793_v35 = vunpack.c.h.bf16 %v8523_v44  ;;  %v10794_v18 = vunpack.c.h.bf16 %v8563_v0 }
 0x28e   : > { %10774 = vst [vmem:[#allocation113_spill] sm:$0xff] %v8730_v50  ;;  %v8740_v31 = vld [vmem:[%s5703_s18 + $0xb98] sm:$0xff]  ;;  %v1422_v16 = vunpack.c.h.bf16 %v8730_v50  ;;  %v10780_v50 = vunpack.c.h.bf16 %v8314_v6  ;;  %v10788_v6 = vunpack.c.h.bf16 %v8593_v57  ;;  %v2551_v49 = vmax.f32 %v2550_v45, %v1314_v32 }
 0x28f   : > { %10776 = vst [vmem:[#allocation106_spill] sm:$0xff] %v8740_v31  ;;  %v1446_v10 = vunpack.c.h.bf16 %v8740_v31  ;;  %v10783_v31 = vunpack.c.h.bf16 %v8520_v22  ;;  %v2083_v57 = vmax.f32 %v2082_v36, %v10794_v18  ;;  %v2707_v26 = vmax.f32 %v2706_v25, %v1410_v23 }
 0x290   : > { %v1614_v3 = vmax.f32 %v10780_v50, %v10779_v4  ;;  %v2238_v4 = vmax.f32 %v10788_v6, %v10787_v63  ;;  %v10789_v50 = vunpack.c.h.bf16 %v8640_v14  ;;  %v10795_v6 = vunpack.c.h.bf16 %v8603_v27 }
 0x291   : > { %v1926_v37 = vmax.f32 %v10784_v24, %v10783_v31  ;;  %v10792_v24 = vunpack.c.h.bf16 %v8486_v19  ;;  %v2084_v36 = vmax.f32 %v2083_v57, %v10800_v59  ;;  %v10801_v18 = vunpack.c.h.bf16 %v8610_v20 }
 0x292   : > { %v2394_v42 = vmax.f32 %v10790_v29, %v10789_v50  ;;  %v1615_v22 = vmax.f32 %v1614_v3, %v10791_v8  ;;  %v2239_v63 = vmax.f32 %v2238_v4, %v10795_v6  ;;  %v10797_v50 = vunpack.c.h.bf16 %v8451_v1 }
 0x293   : > { %v1771_v31 = vmax.f32 %v1770_v38, %v10792_v24  ;;  %v1927_v53 = vmax.f32 %v1926_v37, %v10793_v35  ;;  %v10798_v8 = vunpack.c.h.bf16 %v8492_v15  ;;  %v10802_v24 = vunpack.c.h.bf16 %v8650_v61 }
 0x294   : > { %v2395_v29 = vmax.f32 %v2394_v42, %v10796_v58  ;;  %v1616_v3 = vmax.f32 %v1615_v22, %v10797_v50  ;;  %v2240_v4 = vmax.f32 %v2239_v63, %v10801_v18  ;;  %v10803_v42 = vunpack.c.h.bf16 %v8455_v33 }
 0x295   : > { %v1772_v38 = vmax.f32 %v1771_v31, %v10798_v8  ;;  %v1928_v37 = vmax.f32 %v1927_v53, %v10799_v13  ;;  %v10804_v35 = vunpack.c.h.bf16 %v8495_v60  ;;  %v2552_v32 = vmax.f32 %v2551_v49, %v1326_v7 }
 0x296   : > { %v2396_v58 = vmax.f32 %v2395_v29, %v10802_v24  ;;  %v1617_v22 = vmax.f32 %v1616_v3, %v10803_v42  ;;  %v2708_v23 = vmax.f32 %v2707_v26, %v1422_v16  ;;  %v10805_v25 = vunpack.c.h.bf16 %v8533_v51 }
 0x297   : > { %v1773_v31 = vmax.f32 %v1772_v38, %v10804_v35  ;;  %v10806_v53 = vunpack.c.h.bf16 %v8573_v62  ;;  %v10807_v6 = vunpack.c.h.bf16 %v8613_v46  ;;  %v10808_v50 = vunpack.c.h.bf16 %v8653_v55 }
 0x298   : > { %v1929_v45 = vmax.f32 %v1928_v37, %v10805_v25  ;;  %v10809_v8 = vunpack.c.h.bf16 %v8458_v12  ;;  %v10810_v13 = vunpack.c.h.bf16 %v8502_v47  ;;  %v2553_v7 = vmax.f32 %v2552_v32, %v1338_v56  ;;  %v10818_v32 = vld [vmem:[#allocation80_spill] sm:$0xff] }
 0x299   : > { %v2085_v57 = vmax.f32 %v2084_v36, %v10806_v53  ;;  %v2241_v63 = vmax.f32 %v2240_v4, %v10807_v6  ;;  %v2397_v29 = vmax.f32 %v2396_v58, %v10808_v50  ;;  %v2709_v16 = vmax.f32 %v2708_v23, %v1434_v30  ;;  %v10822_v6 = vld [vmem:[#allocation98_spill] sm:$0xff] }
 0x29a   : > { %v1618_v3 = vmax.f32 %v1617_v22, %v10809_v8  ;;  %v1774_v38 = vmax.f32 %v1773_v31, %v10810_v13  ;;  %v10811_v49 = vunpack.c.h.bf16 %v8540_v48  ;;  %v10812_v37 = vunpack.c.h.bf16 %v8580_v54 }
 0x29b   : > { %v10813_v36 = vunpack.c.h.bf16 %v8620_v39  ;;  %v10814_v4 = vunpack.c.h.bf16 %v8660_v40  ;;  %v10815_v58 = vunpack.c.h.bf16 %v8463_v11  ;;  %v10816_v22 = vunpack.c.h.bf16 %v8505_v43 }
 0x29c   : > { %v1930_v26 = vmax.f32 %v1929_v45, %v10811_v49  ;;  %v2086_v59 = vmax.f32 %v2085_v57, %v10812_v37  ;;  %v10817_v30 = vunpack.c.h.bf16 %v8700_v41  ;;  %v2710_v31 = vmax.f32 %v2709_v16, %v1446_v10  ;;  %v10820_v45 = vld [vmem:[#allocation100_spill] sm:$0xff] }
 0x29d   : > { %v2242_v18 = vmax.f32 %v2241_v63, %v10813_v36  ;;  %v2398_v24 = vmax.f32 %v2397_v29, %v10814_v4  ;;  %v1619_v42 = vmax.f32 %v1618_v3, %v10815_v58  ;;  %v1775_v35 = vmax.f32 %v1774_v38, %v10816_v22  ;;  %v10824_v29 = vld [vmem:[#allocation89_spill] sm:$0xff]  ;;  %v10826_v3 = vld [vmem:[#allocation36_spill] sm:$0xff]  ;;  %v10828_v38 = vld [vmem:[#allocation75_spill] sm:$0xff] }
 0x29e   : > { %v2554_v56 = vmax.f32 %v2553_v7, %v10817_v30  ;;  %v10819_v23 = vunpack.c.h.bf16 %v10818_v32  ;;  %v10821_v53 = vunpack.c.h.bf16 %v10820_v45  ;;  %v10823_v63 = vunpack.c.h.bf16 %v10822_v6  ;;  %v10830_v7 = vld [vmem:[#allocation110_spill] sm:$0xff]  ;;  %v10840_v6 = vld [vmem:[#allocation107_spill] sm:$0xff] }
 0x29f   : > { %v10825_v8 = vunpack.c.h.bf16 %v10824_v29  ;;  %v10827_v49 = vunpack.c.h.bf16 %v10826_v3  ;;  %v10829_v36 = vunpack.c.h.bf16 %v10828_v38  ;;  %v10831_v10 = vunpack.c.h.bf16 %v10830_v7 }
 0x2a0   : > { %v1931_v25 = vmax.f32 %v1930_v26, %v10819_v23  ;;  %v2087_v57 = vmax.f32 %v2086_v59, %v10821_v53  ;;  %v2243_v50 = vmax.f32 %v2242_v18, %v10823_v63  ;;  %v2711_v58 = vmax.f32 %v2710_v31, %v1458_v21  ;;  %v10832_v26 = vld [vmem:[#allocation77_spill] sm:$0xff]  ;;  %v10834_v59 = vld [vmem:[#allocation94_spill] sm:$0xff]  ;;  %v10836_v18 = vld [vmem:[#allocation111_spill] sm:$0xff] }
 0x2a1   : > { %v2399_v13 = vmax.f32 %v2398_v24, %v10825_v8  ;;  %v1620_v37 = vmax.f32 %v1619_v42, %v10827_v49  ;;  %v1776_v4 = vmax.f32 %v1775_v35, %v10829_v36  ;;  %v2555_v16 = vmax.f32 %v2554_v56, %v10831_v10  ;;  %v10838_v24 = vld [vmem:[#allocation99_spill] sm:$0xff] }
 0x2a2   : > { %v10833_v22 = vunpack.c.h.bf16 %v10832_v26  ;;  %v10835_v23 = vunpack.c.h.bf16 %v10834_v59  ;;  %v10837_v63 = vunpack.c.h.bf16 %v10836_v18  ;;  %v10839_v8 = vunpack.c.h.bf16 %v10838_v24 }
 0x2a3   : > { %v1621_v42 = vrot.slane %v1620_v37, 4  ;;  %v1777_v49 = vrot.slane %v1776_v4, 4  ;;  %v10841_v35 = vunpack.c.h.bf16 %v10840_v6  ;;  %v2712_v7 = vmax.f32 %v2711_v58, %v1470_v9 }
 0x2a4   : > { %v1932_v30 = vmax.f32 %v1931_v25, %v10833_v22  ;;  %v2088_v53 = vmax.f32 %v2087_v57, %v10835_v23  ;;  %v2244_v41 = vmax.f32 %v2243_v50, %v10837_v63  ;;  %v2400_v29 = vmax.f32 %v2399_v13, %v10839_v8 }
 0x2a5   : > { %v2556_v36 = vmax.f32 %v2555_v16, %v10841_v35  ;;  %v1622_v25 = vmax.f32 %v1620_v37, %v1621_v42  ;;  %v1778_v22 = vmax.f32 %v1776_v4, %v1777_v49  ;;  %v2713_v57 = vrot.slane %v2712_v7, 4 }
 0x2a6   : > { %v1933_v56 = vrot.slane %v1932_v30, 4  ;;  %v2089_v21 = vrot.slane %v2088_v53, 4  ;;  %v2245_v31 = vrot.slane %v2244_v41, 4  ;;  %v2401_v10 = vrot.slane %v2400_v29, 4 }
 0x2a7   : > { %v2557_v40 = vrot.slane %v2556_v36, 4  ;;  %v1623_v24 = vrot.slane %v1622_v25, 2  ;;  %v1779_v13 = vrot.slane %v1778_v22, 2  ;;  %v2714_v39 = vmax.f32 %v2712_v7, %v2713_v57 }
 0x2a8   : > { %v1934_v23 = vmax.f32 %v1932_v30, %v1933_v56  ;;  %v2090_v18 = vmax.f32 %v2088_v53, %v2089_v21  ;;  %v2246_v50 = vmax.f32 %v2244_v41, %v2245_v31  ;;  %v2402_v63 = vmax.f32 %v2400_v29, %v2401_v10 }
 0x2a9   : > { %v2558_v8 = vmax.f32 %v2556_v36, %v2557_v40  ;;  %v1624_v58 = vmax.f32 %v1622_v25, %v1623_v24  ;;  %v1780_v35 = vmax.f32 %v1778_v22, %v1779_v13  ;;  %v2715_v26 = vrot.slane %v2714_v39, 2 }
 0x2aa   : > { %v1935_v59 = vrot.slane %v1934_v23, 2  ;;  %v2091_v6 = vrot.slane %v2090_v18, 2  ;;  %v2247_v16 = vrot.slane %v2246_v50, 2  ;;  %v2403_v9 = vrot.slane %v2402_v63, 2 }
 0x2ab   : > { %v2559_v55 = vrot.slane %v2558_v8, 2  ;;  %v1625_v30 = vrot.slane %v1624_v58, 1  ;;  %v1781_v53 = vrot.slane %v1780_v35, 1  ;;  %v2716_v29 = vmax.f32 %v2714_v39, %v2715_v26 }
 0x2ac   : > { %v1936_v37 = vmax.f32 %v1934_v23, %v1935_v59  ;;  %v2092_v4 = vmax.f32 %v2090_v18, %v2091_v6  ;;  %v2248_v42 = vmax.f32 %v2246_v50, %v2247_v16  ;;  %v2404_v49 = vmax.f32 %v2402_v63, %v2403_v9  ;;  %v10842_v23 = vld [vmem:[#allocation90_spill] sm:$0xff]  ;;  %v10848_v9 = vld [vmem:[#allocation23_spill] sm:$0xff] }
 0x2ad   : > { %v2560_v41 = vmax.f32 %v2558_v8, %v2559_v55  ;;  %v1626_v36 = vmax.f32 %v1624_v58, %v1625_v30  ;;  %v1782_v31 = vmax.f32 %v1780_v35, %v1781_v53  ;;  %v2717_v57 = vrot.slane %v2716_v29, 1  ;;  %v10844_v55 = vld [vmem:[#allocation83_spill] sm:$0xff]  ;;  %v10846_v8 = vld [vmem:[#allocation53_spill] sm:$0xff]  ;;  %v10854_v53 = vld [vmem:[#allocation48_spill] sm:$0xff] }
 0x2ae   : > { %v1937_v56 = vrot.slane %v1936_v37, 1  ;;  %v2093_v21 = vrot.slane %v2092_v4, 1  ;;  %v2249_v40 = vrot.slane %v2248_v42, 1  ;;  %v2405_v7 = vrot.slane %v2404_v49, 1 }
 0x2af   : > { %v2561_v10 = vrot.slane %v2560_v41, 1  ;;  %v2718_v6 = vmax.f32 %v2716_v29, %v2717_v57  ;;  %v2911_v18 = vsel %vm2827_vm0, %v1782_v31, %v1626_v36  ;;  %v10843_v50 = vunpack.c.l.bf16 %v10842_v23  ;;  %v10856_v29 = vld [vmem:[#allocation39_spill] sm:$0xff] }
 0x2b0   : > { %v1938_v24 = vmax.f32 %v1936_v37, %v1937_v56  ;;  %v2094_v25 = vmax.f32 %v2092_v4, %v2093_v21  ;;  %v2250_v22 = vmax.f32 %v2248_v42, %v2249_v40  ;;  %v2406_v13 = vmax.f32 %v2404_v49, %v2405_v7  ;;  %v10850_v37 = vld [vmem:[#allocation38_spill] sm:$0xff]  ;;  %v10858_v7 = vld [vmem:[#allocation68_spill] sm:$0xff] }
 0x2b1   : > { %v2562_v59 = vmax.f32 %v2560_v41, %v2561_v10  ;;  %v10845_v39 = vunpack.c.l.bf16 %v10844_v55  ;;  %v10847_v16 = vunpack.c.l.bf16 %v10846_v8  ;;  %v10849_v58 = vunpack.c.l.bf16 %v10848_v9  ;;  %v10852_v42 = vld [vmem:[#allocation70_spill] sm:$0xff]  ;;  %v10860_v10 = vld [vmem:[#allocation61_spill] sm:$0xff] }
 0x2b2   : > { %v2912_v63 = vsel %vm2829_vm1, %v1938_v24, %v2911_v18  ;;  %v10851_v4 = vunpack.c.l.bf16 %v10850_v37  ;;  %v10853_v49 = vunpack.c.l.bf16 %v10852_v42  ;;  %v10855_v41 = vunpack.c.l.bf16 %v10854_v53  ;;  %v10862_v24 = vld [vmem:[#allocation13_spill] sm:$0xff]  ;;  %v10870_v42 = vld [vmem:[#allocation31_spill] sm:$0xff] }
 0x2b3   : > { %v1523_v26 = vmax.f32 %v10845_v39, %v10843_v50  ;;  %v1679_v35 = vmax.f32 %v10849_v58, %v10847_v16  ;;  %v10857_v56 = vunpack.c.l.bf16 %v10856_v29  ;;  %v2913_v40 = vsel %vm2831_vm2, %v2094_v25, %v2912_v63  ;;  %v10864_v50 = vld [vmem:[#allocation44_spill] sm:$0xff]  ;;  %v10874_v29 = vld [vmem:[#allocation78_spill] sm:$0xff] }
 0x2b4   : > { %v1835_v30 = vmax.f32 %v10853_v49, %v10851_v4  ;;  %v10859_v36 = vunpack.c.l.bf16 %v10858_v7  ;;  %v10861_v57 = vunpack.c.l.bf16 %v10860_v10  ;;  %v10863_v18 = vunpack.c.l.bf16 %v10862_v24  ;;  %v10866_v39 = vld [vmem:[#allocation72_spill] sm:$0xff]  ;;  %v10872_v49 = vld [vmem:[#allocation14_spill] sm:$0xff] }
 0x2b5   : > { %v1991_v21 = vmax.f32 %v10857_v56, %v10855_v41  ;;  %v10865_v55 = vunpack.c.l.bf16 %v10864_v50  ;;  %v10867_v8 = vunpack.c.l.bf16 %v10866_v39  ;;  %v2914_v9 = vsel %vm2833_vm3, %v2250_v22, %v2913_v40  ;;  %v10868_v58 = vld [vmem:[#allocation40_spill] sm:$0xff]  ;;  %v10878_v24 = vld [vmem:[#allocation22_spill] sm:$0xff] }
 0x2b6   : > { %v1524_v31 = vmax.f32 %v1523_v26, %v10859_v36  ;;  %v2147_v23 = vmax.f32 %v10863_v18, %v10861_v57  ;;  %v10869_v37 = vunpack.c.l.bf16 %v10868_v58  ;;  %v10871_v25 = vunpack.c.l.bf16 %v10870_v42  ;;  %v10876_v36 = vld [vmem:[#allocation58_spill] sm:$0xff] }
 0x2b7   : > { %v2303_v16 = vmax.f32 %v10867_v8, %v10865_v55  ;;  %v10873_v26 = vunpack.c.l.bf16 %v10872_v49  ;;  %v2915_v41 = vsel %vm2835_vm4, %v2406_v13, %v2914_v9  ;;  %v10875_v56 = vunpack.c.l.bf16 %v10874_v29  ;;  %v10892_v29 = vld [vmem:[#allocation79_spill] sm:$0xff] }
 0x2b8   : > { %v1680_v4 = vmax.f32 %v1679_v35, %v10869_v37  ;;  %v1836_v63 = vmax.f32 %v1835_v30, %v10871_v25  ;;  %v10877_v10 = vunpack.c.l.bf16 %v10876_v36  ;;  %v10879_v18 = vunpack.c.l.bf16 %v10878_v24  ;;  %v10880_v35 = vld [vmem:[#allocation32_spill] sm:$0xff]  ;;  %v10882_v30 = vld [vmem:[#allocation17_spill] sm:$0xff]  ;;  %v10896_v24 = vld [vmem:[#allocation50_spill] sm:$0xff] }
 0x2b9   : > { %v1992_v53 = vmax.f32 %v1991_v21, %v10873_v26  ;;  %v1525_v7 = vmax.f32 %v1524_v31, %v10875_v56  ;;  %v2916_v40 = vsel %vm2837_vm5, %v2562_v59, %v2915_v41  ;;  %v10881_v50 = vunpack.c.l.bf16 %v10880_v35  ;;  %v10884_v21 = vld [vmem:[#allocation62_spill] sm:$0xff]  ;;  %v10886_v31 = vld [vmem:[#allocation87_spill] sm:$0xff]  ;;  %v10894_v36 = vld [vmem:[#allocation81_spill] sm:$0xff] }
 0x2ba   : > { %v2148_v57 = vmax.f32 %v2147_v23, %v10877_v10  ;;  %v2304_v22 = vmax.f32 %v2303_v16, %v10879_v18  ;;  %v10883_v39 = vunpack.c.l.bf16 %v10882_v30  ;;  %v10885_v58 = vunpack.c.l.bf16 %v10884_v21  ;;  %v10888_v23 = vld [vmem:[#allocation71_spill] sm:$0xff]  ;;  %v10890_v16 = vld [vmem:[#allocation26_spill] sm:$0xff] }
 0x2bb   : > { %v1681_v55 = vmax.f32 %v1680_v4, %v10881_v50  ;;  %v2917_v9 = vsel %vm2839_vm6, %v2718_v6, %v2916_v40  ;;  %v10887_v37 = vunpack.c.l.bf16 %v10886_v31  ;;  %v10889_v25 = vunpack.c.l.bf16 %v10888_v23  ;;  %v10898_v6 = vld [vmem:[#allocation84_spill] sm:$0xff] }
 0x2bc   : > { %v1837_v8 = vmax.f32 %v1836_v63, %v10883_v39  ;;  %v1993_v13 = vmax.f32 %v1992_v53, %v10885_v58  ;;  %v10891_v26 = vunpack.c.l.bf16 %v10890_v16  ;;  %v2980_v41 = vpack.c.bf16 %v2917_v9, %v2917_v9  ;;  %v10906_v9 = vld [vmem:[#allocation33_spill] sm:$0xff] }
 0x2bd   : > { %v1526_v42 = vmax.f32 %v1525_v7, %v10887_v37  ;;  %v2149_v49 = vmax.f32 %v2148_v57, %v10889_v25  ;;  %v10893_v4 = vunpack.c.l.bf16 %v10892_v29  ;;  %v10895_v63 = vunpack.c.l.bf16 %v10894_v36  ;;  %v10900_v7 = vld [vmem:[#allocation43_spill] sm:$0xff]  ;;  %v10908_v37 = vld [vmem:[#allocation49_spill] sm:$0xff] }
 0x2be   : > { %v2305_v59 = vmax.f32 %v2304_v22, %v10891_v26  ;;  %v10897_v53 = vunpack.c.l.bf16 %v10896_v24  ;;  %v10899_v40 = vunpack.c.l.bf16 %v10898_v6  ;;  %v10901_v50 = vunpack.c.l.bf16 %v10900_v7  ;;  %v10902_v57 = vld [vmem:[#allocation63_spill] sm:$0xff]  ;;  %v10904_v22 = vld [vmem:[#allocation52_spill] sm:$0xff]  ;;  %4382 = vmatprep.mubr.bf16.mxu0 %v2980_v41  ;;  %v10910_v25 = vld [vmem:[#allocation57_spill] sm:$0xff] }
 0x2bf   : > { %v1682_v56 = vmax.f32 %v1681_v55, %v10893_v4  ;;  %v1838_v10 = vmax.f32 %v1837_v8, %v10895_v63  ;;  %v10903_v39 = vunpack.c.l.bf16 %v10902_v57  ;;  %v10905_v58 = vunpack.c.l.bf16 %v10904_v22  ;;  %v10912_v26 = vld [vmem:[#allocation15_spill] sm:$0xff]  ;;  %v10914_v4 = vld [vmem:[#allocation60_spill] sm:$0xff]  ;;  %v10916_v36 = vld [vmem:[#allocation41_spill] sm:$0xff] }
 0x2c0   : > { %v1994_v18 = vmax.f32 %v1993_v13, %v10897_v53  ;;  %v1527_v35 = vmax.f32 %v1526_v42, %v10899_v40  ;;  %v2150_v30 = vmax.f32 %v2149_v49, %v10901_v50  ;;  %v10907_v31 = vunpack.c.l.bf16 %v10906_v9  ;;  %v10918_v24 = vld [vmem:[#allocation29_spill] sm:$0xff]  ;;  %v10920_v40 = vld [vmem:[#allocation46_spill] sm:$0xff]  ;;  %v10922_v50 = vld [vmem:[#allocation20_spill] sm:$0xff] }
 0x2c1   : > { %v2306_v21 = vmax.f32 %v2305_v59, %v10903_v39  ;;  %v10909_v8 = vunpack.c.l.bf16 %v10908_v37  ;;  %v10911_v13 = vunpack.c.l.bf16 %v10910_v25  ;;  %v10913_v42 = vunpack.c.l.bf16 %v10912_v26  ;;  %v10924_v39 = vld [vmem:[#allocation21_spill] sm:$0xff]  ;;  %v10930_v25 = vld [vmem:[#allocation16_spill] sm:$0xff] }
 0x2c2   : > { %v2459_v55 = vmax.f32 %v10907_v31, %v10905_v58  ;;  %v10915_v49 = vunpack.c.l.bf16 %v10914_v4  ;;  %v10917_v63 = vunpack.c.l.bf16 %v10916_v36  ;;  %v10919_v53 = vunpack.c.l.bf16 %v10918_v24  ;;  %v10926_v58 = vld [vmem:[#allocation18_spill] sm:$0xff]  ;;  %v10928_v31 = vld [vmem:[#allocation19_spill] sm:$0xff] }
 0x2c3   : > { %v1683_v23 = vmax.f32 %v1682_v56, %v10909_v8  ;;  %v1839_v16 = vmax.f32 %v1838_v10, %v10911_v13  ;;  %v1995_v29 = vmax.f32 %v1994_v18, %v10913_v42  ;;  %v10921_v7 = vunpack.c.l.bf16 %v10920_v40  ;;  %v10932_v42 = vld [vmem:[#allocation42_spill] sm:$0xff] }
 0x2c4   : > { %v2615_v59 = vmax.f32 %v10917_v63, %v10915_v49  ;;  %v1528_v6 = vmax.f32 %v1527_v35, %v10919_v53  ;;  %v10923_v57 = vunpack.c.l.bf16 %v10922_v50  ;;  %v10925_v22 = vunpack.c.l.bf16 %v10924_v39  ;;  %v10934_v49 = vld [vmem:[#allocation30_spill] sm:$0xff]  ;;  %v10936_v63 = vld [vmem:[#allocation47_spill] sm:$0xff]  ;;  %v10938_v53 = vld [vmem:[#allocation45_spill] sm:$0xff] }
 0x2c5   : > { %v2151_v41 = vmax.f32 %v2150_v30, %v10921_v7  ;;  %v10927_v9 = vunpack.c.l.bf16 %v10926_v58  ;;  %v10929_v37 = vunpack.c.l.bf16 %v10928_v31  ;;  %v10931_v13 = vunpack.c.l.bf16 %v10930_v25  ;;  %v10940_v7 = vld [vmem:[#allocation34_spill] sm:$0xff] }
 0x2c6   : > { %v2307_v56 = vmax.f32 %v2306_v21, %v10923_v57  ;;  %v2460_v10 = vmax.f32 %v2459_v55, %v10925_v22  ;;  %v10933_v35 = vunpack.c.l.bf16 %v10932_v42  ;;  %v10935_v30 = vunpack.c.l.bf16 %v10934_v49  ;;  %v10942_v57 = vld [vmem:[#allocation69_spill] sm:$0xff] }
 0x2c7   : > { %v1684_v18 = vmax.f32 %v1683_v23, %v10927_v9  ;;  %v1840_v8 = vmax.f32 %v1839_v16, %v10929_v37  ;;  %v1996_v26 = vmax.f32 %v1995_v29, %v10931_v13  ;;  %v10937_v21 = vunpack.c.l.bf16 %v10936_v63  ;;  %v10944_v22 = vld [vmem:[#allocation37_spill] sm:$0xff]  ;;  %v10946_v9 = vld [vmem:[#allocation56_spill] sm:$0xff]  ;;  %v10948_v37 = vld [vmem:[#allocation35_spill] sm:$0xff] }
 0x2c8   : > { %v2616_v4 = vmax.f32 %v2615_v59, %v10933_v35  ;;  %v1529_v36 = vmax.f32 %v1528_v6, %v10935_v30  ;;  %v10939_v55 = vunpack.c.l.bf16 %v10938_v53  ;;  %v10941_v23 = vunpack.c.l.bf16 %v10940_v7 }
 0x2c9   : > { %v2152_v24 = vmax.f32 %v2151_v41, %v10937_v21  ;;  %v10943_v16 = vunpack.c.l.bf16 %v10942_v57  ;;  %v10945_v29 = vunpack.c.l.bf16 %v10944_v22  ;;  %v10947_v59 = vunpack.c.l.bf16 %v10946_v9  ;;  %v10950_v41 = vld [vmem:[#allocation25_spill] sm:$0xff] }
 0x2ca   : > { %v2308_v40 = vmax.f32 %v2307_v56, %v10939_v55  ;;  %v2461_v50 = vmax.f32 %v2460_v10, %v10941_v23  ;;  %v10949_v6 = vunpack.c.l.bf16 %v10948_v37  ;;  %v1530_v13 = vrot.slane %v1529_v36, 4  ;;  %v10952_v56 = vld [vmem:[#allocation55_spill] sm:$0xff]  ;;  %v10960_v37 = vld [vmem:[#allocation65_spill] sm:$0xff] }
 0x2cb   : > { %v1685_v39 = vmax.f32 %v1684_v18, %v10943_v16  ;;  %v1841_v58 = vmax.f32 %v1840_v8, %v10945_v29  ;;  %v1997_v31 = vmax.f32 %v1996_v26, %v10947_v59  ;;  %v10951_v42 = vunpack.c.l.bf16 %v10950_v41  ;;  %v10954_v10 = vld [vmem:[#allocation27_spill] sm:$0xff] }
 0x2cc   : > { %v2617_v25 = vmax.f32 %v2616_v4, %v10949_v6  ;;  %v10953_v49 = vunpack.c.l.bf16 %v10952_v56  ;;  %v10955_v63 = vunpack.c.l.bf16 %v10954_v10  ;;  %v10956_v8 = vld [vmem:[#allocation59_spill] sm:$0xff]  ;;  %v1531_v26 = vmax.f32 %v1529_v36, %v1530_v13  ;;  %v10962_v56 = vld [vmem:[#allocation54_spill] sm:$0xff]  ;;  %v10964_v13 = vld [vmem:[#allocation64_spill] sm:$0xff] }
 0x2cd   : > { %v2153_v35 = vmax.f32 %v2152_v24, %v10951_v42  ;;  %v1686_v18 = vrot.slane %v1685_v39, 4  ;;  %v1842_v53 = vrot.slane %v1841_v58, 4  ;;  %v1998_v55 = vrot.slane %v1997_v31, 4  ;;  %v10958_v4 = vld [vmem:[#allocation51_spill] sm:$0xff] }
 0x2ce   : > { %v2309_v30 = vmax.f32 %v2308_v40, %v10953_v49  ;;  %v2462_v21 = vmax.f32 %v2461_v50, %v10955_v63  ;;  %v10957_v7 = vunpack.c.l.bf16 %v10956_v8  ;;  %v10959_v22 = vunpack.c.l.bf16 %v10958_v4 }
 0x2cf   : > { %v2154_v57 = vrot.slane %v2153_v35, 4  ;;  %v1687_v9 = vmax.f32 %v1685_v39, %v1686_v18  ;;  %v1843_v24 = vmax.f32 %v1841_v58, %v1842_v53  ;;  %v1999_v59 = vmax.f32 %v1997_v31, %v1998_v55  ;;  %v10966_v58 = vld [vmem:[#allocation24_spill] sm:$0xff] }
 0x2d0   : > { %v2618_v23 = vmax.f32 %v2617_v25, %v10957_v7  ;;  %v2310_v16 = vrot.slane %v2309_v30, 4  ;;  %v2463_v29 = vmax.f32 %v2462_v21, %v10959_v22  ;;  %v10961_v40 = vunpack.c.l.bf16 %v10960_v37 }
 0x2d1   : > { %v1532_v41 = vrot.slane %v1531_v26, 2  ;;  %v2155_v50 = vmax.f32 %v2153_v35, %v2154_v57  ;;  %v10963_v49 = vunpack.c.l.bf16 %v10962_v56  ;;  %v1688_v63 = vrot.slane %v1687_v9, 2  ;;  %v10968_v35 = vld [vmem:[#allocation73_spill] sm:$0xff] }
 0x2d2   : > { %v2619_v6 = vmax.f32 %v2618_v23, %v10961_v40  ;;  %v2311_v42 = vmax.f32 %v2309_v30, %v2310_v16  ;;  %v1844_v25 = vrot.slane %v1843_v24, 2  ;;  %v2000_v36 = vrot.slane %v1999_v59, 2 }
 0x2d3   : > { %v2464_v10 = vmax.f32 %v2463_v29, %v10963_v49  ;;  %v10965_v8 = vunpack.c.l.bf16 %v10964_v13  ;;  %v1533_v4 = vmax.f32 %v1531_v26, %v1532_v41  ;;  %v2156_v21 = vrot.slane %v2155_v50, 2 }
 0x2d4   : > { %v2312_v39 = vrot.slane %v2311_v42, 2  ;;  %v10967_v31 = vunpack.c.l.bf16 %v10966_v58  ;;  %v1689_v53 = vmax.f32 %v1687_v9, %v1688_v63  ;;  %v1845_v55 = vmax.f32 %v1843_v24, %v1844_v25 }
 0x2d5   : > { %v2620_v7 = vmax.f32 %v2619_v6, %v10965_v8  ;;  %v2001_v23 = vmax.f32 %v1999_v59, %v2000_v36  ;;  %v10969_v30 = vunpack.c.l.bf16 %v10968_v35  ;;  %v1534_v16 = vrot.slane %v1533_v4, 1  ;;  %v10970_v36 = vld [vmem:[#allocation66_spill] sm:$0xff] }
 0x2d6   : > { %v2465_v18 = vmax.f32 %v2464_v10, %v10967_v31  ;;  %v2157_v22 = vmax.f32 %v2155_v50, %v2156_v21  ;;  %v2313_v29 = vmax.f32 %v2311_v42, %v2312_v39  ;;  %v1690_v40 = vrot.slane %v1689_v53, 1  ;;  %v10972_v50 = vld [vmem:[#allocation28_spill] sm:$0xff]  ;;  %v10975_v35 = vld [vmem:[#allocation74_spill] sm:$0xff] }
 0x2d7   : > { %v2621_v57 = vmax.f32 %v2620_v7, %v10969_v30  ;;  %v1846_v56 = vrot.slane %v1845_v55, 1  ;;  %v2002_v49 = vrot.slane %v2001_v23, 1  ;;  %v1535_v26 = vmax.f32 %v1533_v4, %v1534_v16 }
 0x2d8   : > { %v2466_v37 = vrot.slane %v2465_v18, 4  ;;  %v2158_v41 = vrot.slane %v2157_v22, 1  ;;  %v2314_v13 = vrot.slane %v2313_v29, 1  ;;  %v1691_v58 = vmax.f32 %v1689_v53, %v1690_v40  ;;  %v10977_v53 = vld [vmem:[#allocation76_spill] sm:$0xff] }
 0x2d9   : > { %v2622_v6 = vrot.slane %v2621_v57, 4  ;;  %v1847_v10 = vmax.f32 %v1845_v55, %v1846_v56  ;;  %v2003_v9 = vmax.f32 %v2001_v23, %v2002_v49  ;;  %v10971_v7 = vunpack.c.l.bf16 %v10970_v36  ;;  %v10979_v23 = vld [vmem:[#allocation67_spill] sm:$0xff]  ;;  %v10982_v56 = vld [vmem:[#allocation86_spill] sm:$0xff] }
 0x2da   : > { %v2467_v8 = vmax.f32 %v2465_v18, %v2466_v37  ;;  %v2159_v59 = vmax.f32 %v2157_v22, %v2158_v41  ;;  %v2315_v63 = vmax.f32 %v2313_v29, %v2314_v13  ;;  %v10973_v42 = vunpack.c.l.bf16 %v10972_v50 }
 0x2db   : > { %v2623_v24 = vmax.f32 %v2621_v57, %v2622_v6  ;;  %v2862_v31 = vsel %vm2827_vm0, %v1691_v58, %v1535_v26  ;;  %v10974_v4 = vunpack.c.l.bf16 %v8479_v5  ;;  %v10976_v30 = vunpack.c.l.bf16 %v10975_v35  ;;  %v10993_v35 = vld [vmem:[#allocation96_spill] sm:$0xff] }
 0x2dc   : > { %v2468_v25 = vrot.slane %v2467_v8, 2  ;;  %v1601_v21 = vmax.f32 %v10973_v42, %v10971_v7  ;;  %v10978_v55 = vunpack.c.l.bf16 %v10977_v53  ;;  %v10980_v57 = vunpack.c.l.bf16 %v10979_v23 }
 0x2dd   : > { %v2624_v39 = vrot.slane %v2623_v24, 2  ;;  %v1757_v18 = vmax.f32 %v10976_v30, %v10974_v4  ;;  %v2863_v29 = vsel %vm2829_vm1, %v1847_v10, %v2862_v31  ;;  %v10981_v37 = vunpack.c.l.bf16 %v8448_v34 }
 0x2de   : > { %v1913_v16 = vmax.f32 %v10980_v57, %v10978_v55  ;;  %v2469_v22 = vmax.f32 %v2467_v8, %v2468_v25  ;;  %v10983_v49 = vunpack.c.l.bf16 %v10982_v56  ;;  %v10984_v6 = vunpack.c.l.bf16 %v8553_v17 }
 0x2df   : > { %v1602_v40 = vmax.f32 %v1601_v21, %v10981_v37  ;;  %v2625_v5 = vmax.f32 %v2623_v24, %v2624_v39  ;;  %v2864_v41 = vsel %vm2831_vm2, %v2003_v9, %v2863_v29  ;;  %v10985_v13 = vunpack.c.l.bf16 %v8486_v19 }
 0x2e0   : > { %v2069_v26 = vmax.f32 %v10984_v6, %v10983_v49  ;;  %v10986_v36 = vunpack.c.l.bf16 %v8523_v44  ;;  %v2470_v8 = vrot.slane %v2469_v22, 1  ;;  %v2865_v10 = vsel %vm2833_vm3, %v2159_v59, %v2864_v41 }
 0x2e1   : > { %v1758_v58 = vmax.f32 %v1757_v18, %v10985_v13  ;;  %v10987_v34 = vunpack.c.l.bf16 %v8451_v1  ;;  %v10988_v50 = vunpack.c.l.bf16 %v8563_v0  ;;  %v2626_v17 = vrot.slane %v2625_v5, 1  ;;  %v10995_v0 = vld [vmem:[#allocation85_spill] sm:$0xff] }
 0x2e2   : > { %v1914_v7 = vmax.f32 %v1913_v16, %v10986_v36  ;;  %v2866_v24 = vsel %vm2835_vm4, %v2315_v63, %v2865_v10  ;;  %v10989_v9 = vunpack.c.l.bf16 %v8492_v15  ;;  %v10990_v19 = vunpack.c.l.bf16 %v8530_v52  ;;  %v11000_v16 = vld [vmem:[#allocation82_spill] sm:$0xff] }
 0x2e3   : > { %v1603_v25 = vmax.f32 %v1602_v40, %v10987_v34  ;;  %v2070_v42 = vmax.f32 %v2069_v26, %v10988_v50  ;;  %v2471_v44 = vmax.f32 %v2469_v22, %v2470_v8  ;;  %v10991_v31 = vunpack.c.l.bf16 %v8455_v33  ;;  %v11014_v50 = vld [vmem:[#allocation101_spill] sm:$0xff] }
 0x2e4   : > { %v1759_v21 = vmax.f32 %v1758_v58, %v10989_v9  ;;  %v1915_v39 = vmax.f32 %v1914_v7, %v10990_v19  ;;  %v10992_v59 = vunpack.c.l.bf16 %v8570_v2  ;;  %v10994_v30 = vunpack.c.l.bf16 %v10993_v35 }
 0x2e5   : > { %v1604_v4 = vmax.f32 %v1603_v25, %v10991_v31  ;;  %v10996_v18 = vunpack.c.l.bf16 %v10995_v0  ;;  %v2627_v55 = vmax.f32 %v2625_v5, %v2626_v17  ;;  %v10997_v63 = vunpack.c.l.bf16 %v8495_v60  ;;  %v11016_v17 = vld [vmem:[#allocation104_spill] sm:$0xff]  ;;  %v11028_v0 = vld [vmem:[#allocation95_spill] sm:$0xff] }
 0x2e6   : > { %v2071_v1 = vmax.f32 %v2070_v42, %v10992_v59  ;;  %v10998_v23 = vunpack.c.l.bf16 %v8533_v51  ;;  %v10999_v57 = vunpack.c.l.bf16 %v8640_v14  ;;  %v11001_v33 = vunpack.c.l.bf16 %v11000_v16 }
 0x2e7   : > { %v2225_v53 = vmax.f32 %v10996_v18, %v10994_v30  ;;  %v1760_v15 = vmax.f32 %v1759_v21, %v10997_v63  ;;  %v2867_v2 = vsel %vm2837_vm5, %v2471_v44, %v2866_v24  ;;  %v11002_v29 = vunpack.c.l.bf16 %v8458_v12  ;;  %v11023_v44 = vld [vmem:[#allocation105_spill] sm:$0xff] }
 0x2e8   : > { %v1916_v52 = vmax.f32 %v1915_v39, %v10998_v23  ;;  %v2381_v22 = vmax.f32 %v11001_v33, %v10999_v57  ;;  %v11003_v40 = vunpack.c.l.bf16 %v8573_v62  ;;  %v11004_v49 = vunpack.c.l.bf16 %v8603_v27  ;;  %v11036_v33 = vld [vmem:[#allocation97_spill] sm:$0xff] }
 0x2e9   : > { %v1605_v37 = vmax.f32 %v1604_v4, %v11002_v29  ;;  %v2868_v6 = vsel %vm2839_vm6, %v2627_v55, %v2867_v2  ;;  %v11005_v51 = vunpack.c.l.bf16 %v8502_v47  ;;  %v11006_v14 = vunpack.c.l.bf16 %v8540_v48 }
 0x2ea   : > { %v2072_v56 = vmax.f32 %v2071_v1, %v11003_v40  ;;  %v2226_v60 = vmax.f32 %v2225_v53, %v11004_v49  ;;  %v11007_v41 = vunpack.c.l.bf16 %v8643_v28  ;;  %v2973_v58 = vpack.c.bf16 %v2868_v6, %v2868_v6  ;;  %v11026_v1 = vld [vmem:[#allocation77_spill] sm:$0xff]  ;;  %v11030_v53 = vld [vmem:[#allocation92_spill] sm:$0xff] }
 0x2eb   : > { %v1761_v26 = vmax.f32 %v1760_v15, %v11005_v51  ;;  %v1917_v5 = vmax.f32 %v1916_v52, %v11006_v14  ;;  %v11008_v12 = vunpack.c.l.bf16 %v8463_v11  ;;  %v11009_v62 = vunpack.c.l.bf16 %v8580_v54  ;;  %v11034_v52 = vld [vmem:[#allocation109_spill] sm:$0xff]  ;;  %v11040_v49 = vld [vmem:[#allocation108_spill] sm:$0xff]  ;;  %v11042_v14 = vld [vmem:[#allocation98_spill] sm:$0xff] }
 0x2ec   : > { %v2382_v13 = vmax.f32 %v2381_v22, %v11007_v41  ;;  %v11010_v27 = vunpack.c.l.bf16 %v8610_v20  ;;  %v11011_v10 = vunpack.c.l.bf16 %v8505_v43  ;;  %v11012_v34 = vunpack.c.l.bf16 %v10818_v32  ;;  %4260 = vmatmul.mubr.bf16.vlgmr.msra.gmra.mrb[0].mxu1 %v2973_v58  ;;  %v11021_v32 = vld [vmem:[#allocation91_spill] sm:$0xff] }
 0x2ed   : > { %v1606_v36 = vmax.f32 %v1605_v37, %v11008_v12  ;;  %v2073_v7 = vmax.f32 %v2072_v56, %v11009_v62  ;;  %v11013_v25 = vunpack.c.l.bf16 %v8650_v61  ;;  %v11015_v42 = vunpack.c.l.bf16 %v11014_v50  ;;  %v11038_v37 = vld [vmem:[#allocation102_spill] sm:$0xff] }
 0x2ee   : > { %v2227_v8 = vmax.f32 %v2226_v60, %v11010_v27  ;;  %v1762_v47 = vmax.f32 %v1761_v26, %v11011_v10  ;;  %v1918_v48 = vmax.f32 %v1917_v5, %v11012_v34  ;;  %v11017_v11 = vunpack.c.l.bf16 %v11016_v17  ;;  %v11048_v10 = vld [vmem:[#allocation112_spill] sm:$0xff]  ;;  %v11052_v17 = vld [vmem:[#allocation103_spill] sm:$0xff] }
 0x2ef   : > { %v2383_v28 = vmax.f32 %v2382_v13, %v11013_v25  ;;  %v11018_v54 = vunpack.c.l.bf16 %v10826_v3  ;;  %v11019_v20 = vunpack.c.l.bf16 %v10820_v45  ;;  %v11020_v43 = vunpack.c.l.bf16 %v8613_v46  ;;  %v11032_v46 = vld [vmem:[#allocation94_spill] sm:$0xff]  ;;  %v11044_v13 = vld [vmem:[#allocation113_spill] sm:$0xff] }
 0x2f0   : > { %v2537_v24 = vmax.f32 %v11017_v11, %v11015_v42  ;;  %v11022_v39 = vunpack.c.l.bf16 %v11021_v32  ;;  %v11024_v61 = vunpack.c.l.bf16 %v11023_v44  ;;  %v11025_v4 = vunpack.c.l.bf16 %v10828_v38 }
 0x2f1   : > { %v1607_v9 = vmax.f32 %v1606_v36, %v11018_v54  ;;  %v2074_v21 = vmax.f32 %v2073_v7, %v11019_v20  ;;  %v2228_v19 = vmax.f32 %v2227_v8, %v11020_v43  ;;  %v11027_v35 = vunpack.c.l.bf16 %v11026_v1  ;;  %v11046_v7 = vld [vmem:[#allocation89_spill] sm:$0xff]  ;;  %v11054_v20 = vld [vmem:[#allocation99_spill] sm:$0xff] }
 0x2f2   : > { %v2693_v31 = vmax.f32 %v11024_v61, %v11022_v39  ;;  %v1763_v59 = vmax.f32 %v1762_v47, %v11025_v4  ;;  %v11029_v3 = vunpack.c.l.bf16 %v11028_v0  ;;  %v11031_v45 = vunpack.c.l.bf16 %v11030_v53  ;;  %v11058_v4 = vld [vmem:[#allocation106_spill] sm:$0xff] }
 0x2f3   : > { %v1919_v30 = vmax.f32 %v1918_v48, %v11027_v35  ;;  %v1608_v63 = vrot.slane %v1607_v9, 4  ;;  %v11033_v15 = vunpack.c.l.bf16 %v11032_v46  ;;  %v11035_v57 = vunpack.c.l.bf16 %v11034_v52  ;;  %v11062_v46 = vld [vmem:[#allocation93_spill] sm:$0xff] }
 0x2f4   : > { %v2384_v18 = vmax.f32 %v2383_v28, %v11029_v3  ;;  %v2538_v55 = vmax.f32 %v2537_v24, %v11031_v45  ;;  %v11037_v22 = vunpack.c.l.bf16 %v11036_v33  ;;  %v1764_v2 = vrot.slane %v1763_v59, 4  ;;  %v11050_v28 = vld [vmem:[#allocation111_spill] sm:$0xff]  ;;  %v11060_v3 = vld [vmem:[#allocation110_spill] sm:$0xff] }
 0x2f5   : > { %v2075_v23 = vmax.f32 %v2074_v21, %v11033_v15  ;;  %v2229_v16 = vmax.f32 %v2228_v19, %v11035_v57  ;;  %v1920_v29 = vrot.slane %v1919_v30, 4  ;;  %v11039_v40 = vunpack.c.l.bf16 %v11038_v37  ;;  %v11056_v19 = vld [vmem:[#allocation88_spill] sm:$0xff]  ;;  %v11064_v33 = vld [vmem:[#allocation107_spill] sm:$0xff] }
 0x2f6   : > { %v2694_v38 = vmax.f32 %v2693_v31, %v11037_v22  ;;  %v11041_v60 = vunpack.c.l.bf16 %v11040_v49  ;;  %v1609_v51 = vmax.f32 %v1607_v9, %v1608_v63  ;;  %v11043_v5 = vunpack.c.l.bf16 %v11042_v14  ;;  %v11066_v49 = vld [vmem:[#allocation114_spill] sm:$0xff] }
 0x2f7   : > { %v2385_v56 = vmax.f32 %v2384_v18, %v11039_v40  ;;  %v2076_v26 = vrot.slane %v2075_v23, 4  ;;  %v11045_v58 = vunpack.c.l.bf16 %v11044_v13  ;;  %v1765_v36 = vmax.f32 %v1763_v59, %v1764_v2  ;;  %v4409_v2 = vld [vmem:[%s9270_s3 + $0x80] sm:$0xff] }
 0x2f8   : > { %v2539_v6 = vmax.f32 %v2538_v55, %v11041_v60  ;;  %v2230_v41 = vmax.f32 %v2229_v16, %v11043_v5  ;;  %v1921_v62 = vmax.f32 %v1919_v30, %v1920_v29  ;;  %v11047_v27 = vunpack.c.l.bf16 %v11046_v7  ;;  %v4410_v29 = vld [vmem:[%s9270_s3 + $0x88] sm:$0xff] }
 0x2f9   : > { %v2695_v12 = vmax.f32 %v2694_v38, %v11045_v58  ;;  %v11049_v47 = vunpack.c.l.bf16 %v11048_v10  ;;  %v1610_v48 = vrot.slane %v1609_v51, 2  ;;  %v2077_v25 = vmax.f32 %v2075_v23, %v2076_v26  ;;  %v4394_v26 = vld [vmem:[%s9270_s3 + $0x8] sm:$0xff]  ;;  %v4411_v58 = vld [vmem:[%s9270_s3 + $0x90] sm:$0xff]  ;;  %v4396_v10 = vld [vmem:[%s9270_s3 + $0x18] sm:$0xff] }
 0x2fa   : > { %v2386_v8 = vmax.f32 %v2385_v56, %v11047_v27  ;;  %v11051_v50 = vunpack.c.l.bf16 %v11050_v28  ;;  %v11053_v11 = vunpack.c.l.bf16 %v11052_v17  ;;  %v1766_v54 = vrot.slane %v1765_v36, 2  ;;  %v4413_v28 = vld [vmem:[%s9270_s3 + $0xa0] sm:$0xff] }
 0x2fb   : > { %v2540_v34 = vmax.f32 %v2539_v6, %v11049_v47  ;;  %v1922_v9 = vrot.slane %v1921_v62, 2  ;;  %v11055_v21 = vunpack.c.l.bf16 %v11054_v20  ;;  %v11057_v32 = vunpack.c.l.bf16 %v11056_v19 }
 0x2fc   : > { %v2231_v42 = vmax.f32 %v2230_v41, %v11051_v50  ;;  %v2696_v24 = vmax.f32 %v2695_v12, %v11053_v11  ;;  %v1611_v44 = vmax.f32 %v1609_v51, %v1610_v48  ;;  %v2078_v61 = vrot.slane %v2077_v25, 2  ;;  %v4393_v51 = vld [vmem:[%s9270_s3] sm:$0xff]  ;;  %v4412_v12 = vld [vmem:[%s9270_s3 + $0x98] sm:$0xff]  ;;  %v4414_v50 = vld [vmem:[%s9270_s3 + $0xa8] sm:$0xff] }
 0x2fd   : > { %v2387_v43 = vmax.f32 %v2386_v8, %v11055_v21  ;;  %v2541_v39 = vmax.f32 %v2540_v34, %v11057_v32  ;;  %v11059_v59 = vunpack.c.l.bf16 %v11058_v4  ;;  %v1767_v35 = vmax.f32 %v1765_v36, %v1766_v54  ;;  %v4395_v8 = vld [vmem:[%s9270_s3 + $0x10] sm:$0xff] }
 0x2fe   : > { %v2232_v31 = vrot.slane %v2231_v42, 4  ;;  %v1923_v30 = vmax.f32 %v1921_v62, %v1922_v9  ;;  %v11061_v18 = vunpack.c.l.bf16 %v11060_v3  ;;  %v1612_v45 = vrot.slane %v1611_v44, 1  ;;  %v4415_v4 = vld [vmem:[%s9270_s3 + $0xb0] sm:$0xff] }
 0x2ff   : > { %v2697_v1 = vmax.f32 %v2696_v24, %v11059_v59  ;;  %v2388_v0 = vrot.slane %v2387_v43, 4  ;;  %v2079_v55 = vmax.f32 %v2077_v25, %v2078_v61  ;;  %v11063_v15 = vunpack.c.l.bf16 %v11062_v46  ;;  %v4416_v59 = vld [vmem:[%s9270_s3 + $0xb8] sm:$0xff]  ;;  %v4417_v46 = vld [vmem:[%s9270_s3 + $0xc0] sm:$0xff] }
 0x300   : > { %v2542_v53 = vmax.f32 %v2541_v39, %v11061_v18  ;;  %v2233_v63 = vmax.f32 %v2231_v42, %v2232_v31  ;;  %v1768_v52 = vrot.slane %v1767_v35, 1  ;;  %v1924_v57 = vrot.slane %v1923_v30, 1  ;;  %v4397_v39 = vld [vmem:[%s9270_s3 + $0x20] sm:$0xff] }
 0x301   : > { %v2698_v23 = vmax.f32 %v2697_v1, %v11063_v15  ;;  %v2389_v16 = vmax.f32 %v2387_v43, %v2388_v0  ;;  %v11065_v22 = vunpack.c.l.bf16 %v11064_v33  ;;  %v1613_v37 = vmax.f32 %v1611_v44, %v1612_v45  ;;  %v4398_v44 = vld [vmem:[%s9270_s3 + $0x28] sm:$0xff]  ;;  %v4399_v45 = vld [vmem:[%s9270_s3 + $0x30] sm:$0xff] }
 0x302   : > { %v2080_v40 = vrot.slane %v2079_v55, 1  ;;  %v2234_v56 = vrot.slane %v2233_v63, 2  ;;  %v11067_v60 = vunpack.c.l.bf16 %v11066_v49  ;;  %v1769_v14 = vmax.f32 %v1767_v35, %v1768_v52  ;;  %v4418_v15 = vld [vmem:[%s9270_s3 + $0xc8] sm:$0xff]  ;;  %v4403_v49 = vld [vmem:[%s9270_s3 + $0x50] sm:$0xff] }
 0x303   : > { %v2543_v38 = vmax.f32 %v2542_v53, %v11065_v22  ;;  %v1925_v5 = vmax.f32 %v1923_v30, %v1924_v57  ;;  %v2390_v41 = vrot.slane %v2389_v16, 2  ;;  %v4866_v27 = vpack.c.bf16 %v4410_v29, %v4409_v2  ;;  %v4401_v22 = vld [vmem:[%s9270_s3 + $0x40] sm:$0xff]  ;;  %v4419_v29 = vld [vmem:[%s9270_s3 + $0xd0] sm:$0xff] }
 0x304   : > { %v2699_v6 = vmax.f32 %v2698_v23, %v11067_v60  ;;  %v2081_v36 = vmax.f32 %v2079_v55, %v2080_v40  ;;  %v2235_v62 = vmax.f32 %v2233_v63, %v2234_v56  ;;  %v2904_v48 = vsel %vm2827_vm0, %v1769_v14, %v1613_v37  ;;  %v4400_v55 = vld [vmem:[%s9270_s3 + $0x38] sm:$0xff] }
 0x305   : > { %v2544_v13 = vrot.slane %v2543_v38, 4  ;;  %v2391_v47 = vmax.f32 %v2389_v16, %v2390_v41  ;;  %v4868_v25 = vpack.c.bf16 %v4394_v26, %v4393_v51  ;;  %v2905_v11 = vsel %vm2829_vm1, %v1925_v5, %v2904_v48  ;;  %4867 = vmatprep.subr.bf16.mxu1 %v4866_v27  ;;  %v4420_v37 = vld [vmem:[%s9270_s3 + $0xd8] sm:$0xff]  ;;  %v4421_v51 = vld [vmem:[%s9270_s3 + $0xe0] sm:$0xff]  ;;  %v4422_v26 = vld [vmem:[%s9270_s3 + $0xe8] sm:$0xff] }
 0x306   : > { %v2700_v7 = vrot.slane %v2699_v6, 4  ;;  %v2236_v42 = vrot.slane %v2235_v62, 1  ;;  %v4870_v24 = vpack.c.bf16 %v4412_v12, %v4411_v58  ;;  %v2906_v20 = vsel %vm2831_vm2, %v2081_v36, %v2905_v11  ;;  %v4404_v60 = vld [vmem:[%s9270_s3 + $0x58] sm:$0xff]  ;;  %v4405_v5 = vld [vmem:[%s9270_s3 + $0x60] sm:$0xff]  ;;  %v4406_v41 = vld [vmem:[%s9270_s3 + $0x68] sm:$0xff] }
 0x307   : > { %v2545_v34 = vmax.f32 %v2543_v38, %v2544_v13  ;;  %v2392_v54 = vrot.slane %v2391_v47, 1  ;;  %4869 = vmatpush3.bf16.msra.mxu1 %v4868_v25  ;;  %v4872_v21 = vpack.c.bf16 %v4396_v10, %v4395_v8  ;;  %v4874_v32 = vpack.c.bf16 %v4414_v50, %v4413_v28  ;;  %v4402_v38 = vld [vmem:[%s9270_s3 + $0x48] sm:$0xff]  ;;  %v4423_v58 = vld [vmem:[%s9270_s3 + $0xf0] sm:$0xff]  ;;  %v4424_v12 = vld [vmem:[%s9270_s3 + $0xf8] sm:$0xff] }
 0x308   : > { %v2701_v17 = vmax.f32 %v2699_v6, %v2700_v7  ;;  %v2237_v43 = vmax.f32 %v2235_v62, %v2236_v42  ;;  %4871 = vmatprep.subr.bf16.mxu1 %v4870_v24  ;;  %v4876_v0 = vpack.c.bf16 %v4398_v44, %v4397_v39  ;;  %v4878_v53 = vpack.c.bf16 %v4416_v59, %v4415_v4  ;;  %v4407_v62 = vld [vmem:[%s9270_s3 + $0x70] sm:$0xff]  ;;  %v4408_v7 = vld [vmem:[%s9270_s3 + $0x78] sm:$0xff]  ;;  %v3173_v50 = vld [vmem:[#allocation7] sm:$0x3] }
 0x309   : > { %v2546_v9 = vrot.slane %v2545_v34, 2  ;;  %v2393_v61 = vmax.f32 %v2391_v47, %v2392_v54  ;;  %v4880_v57 = vpack.c.bf16 %v4400_v55, %v4399_v45  ;;  %v4882_v33 = vpack.c.bf16 %v4418_v15, %v4417_v46  ;;  %v4828_v4 = vld [vmem:[#allocation8] ss:$0 sm:$0xff] }
 0x30a   : > { %v2702_v19 = vrot.slane %v2701_v17, 2  ;;  %v2907_v35 = vsel %vm2833_vm3, %v2237_v43, %v2906_v20  ;;  %v4884_v40 = vpack.c.bf16 %v4402_v38, %v4401_v22  ;;  %v4886_v56 = vpack.c.bf16 %v4420_v37, %v4419_v29 }
 0x30b   : > { %v2547_v31 = vmax.f32 %v2545_v34, %v2546_v9  ;;  %4873 = vmatpush3.bf16.msra.mxu1 %v4872_v21  ;;  %v2908_v18 = vsel %vm2835_vm4, %v2393_v61, %v2907_v35  ;;  %v4888_v6 = vpack.c.bf16 %v4404_v60, %v4403_v49  ;;  %v4890_v14 = vpack.c.bf16 %v4422_v26, %v4421_v51 }
 0x30c   : > { %v2703_v1 = vmax.f32 %v2701_v17, %v2702_v19  ;;  %4875 = vmatprep.subr.bf16.mxu1 %v4874_v32  ;;  %v4892_v13 = vpack.c.bf16 %v4406_v41, %v4405_v5  ;;  %v4894_v36 = vpack.c.bf16 %v4424_v12, %v4423_v58  ;;  %v4896_v27 = vpack.c.bf16 %v4408_v7, %v4407_v62 }
 0x30d   : > { %v2548_v30 = vrot.slane %v2547_v31, 1  ;;  %v3175_v48 = vlaneseq }
 0x30e   : > { %v2704_v3 = vrot.slane %v2703_v1, 1 }
 0x30f   : > { %v2549_v63 = vmax.f32 %v2547_v31, %v2548_v30  ;;  %4877 = vmatpush3.bf16.msra.mxu1 %v4876_v0  ;;  %v3176_v25 = vshrl.u32 %v3175_v48, 7 }
 0x310   : > { %v2705_v23 = vmax.f32 %v2703_v1, %v2704_v3  ;;  %4879 = vmatprep.subr.bf16.mxu1 %v4878_v53 }
 0x311   : > { %v2909_v52 = vsel %vm2837_vm5, %v2549_v63, %v2908_v18  ;;  %v3177_v28 = vsub.s32 0, %v3176_v25  ;;  %v3181_v42 = vsub.s32 1, %v3176_v25 }
 0x312   : > { %v2910_v16 = vsel %vm2839_vm6, %v2705_v23, %v2909_v52 }
 0x313   : > { %v2979_v2 = vpack.c.bf16 %v2910_v16, %v2910_v16  ;;  %4881 = vmatpush3.bf16.msra.mxu1 %v4880_v57  ;;  %v3178_v17 = vrot.slane %v3173_v50, %v3177_v28  ;;  %v3182_v11 = vrot.slane %v3173_v50, %v3181_v42 }
 0x314   : > { %4883 = vmatprep.subr.bf16.mxu1 %v4882_v33 }
 0x315   : > { %4383 = vmatmul.mubr.bf16.vlgmr.msra.gmra.mrb[0].mxu0 %v2979_v2 }
 0x317   : > { %4885 = vmatpush3.bf16.msra.mxu1 %v4884_v40 }
 0x318   : > { %4887 = vmatprep.subr.bf16.mxu1 %v4886_v56 }
 0x31b   : > { %4889 = vmatpush3.bf16.msra.mxu1 %v4888_v6 }
 0x31c   : > { %4891 = vmatprep.subr.bf16.mxu1 %v4890_v14 }
 0x31f   : > { %4893 = vmatpush3.bf16.msra.mxu1 %v4892_v13 }
 0x320   : > { %4895 = vmatprep.subr.bf16.mxu1 %v4894_v36 }
 0x323   : > { %4897 = vmatpush3.bf16.msra.mxu1 %v4896_v27 }
 0x3bf   : > { %v4261_v8 = vpop.f32.mrb[0].mxu1 }
 0x3c0   : > { %v4263_v10 = vpop.f32.mrb[1].mxu1  ;;  %v4898_v24 = vadd.f32 %v4261_v8, %v3178_v17 }
 0x3c1   : > { %v4265_v47 = vpop.f32.mrb[2].mxu1  ;;  %v4900_v54 = vadd.f32 %v4263_v10, %v3182_v11 }
 0x3c2   : > { %v4266_v34 = vpop.f32.mrb[3].mxu1 }
 0x3e8   : > { %v4384_v9 = vpop.f32.mrb[0].mxu0 }
 0x3e9   : > { %v4899_v20 = vadd.f32 %v4898_v24, %v4384_v9  ;;  %v4386_v21 = vpop.f32.mrb[1].mxu0 }
 0x3ea   : > { %v4901_v43 = vadd.f32 %v4900_v54, %v4386_v21  ;;  %v4388_v19 = vpop.f32.mrb[2].mxu0 }
 0x3eb   : > { %v4389_v32 = vpop.f32.mrb[3].mxu0  ;;  %v4391_v44 = vmax.f32 %v4899_v20, 0.0 }
 0x3ec   : > { %v4392_v39 = vmax.f32 %v4901_v43, 0.0 }
 0x3ee   : > { %4496 = vmatprep.mubr.f32.mxu1 %v4392_v39 }
 0x3ef   : > { %4497 = vmatmul.mubr.f32.vlgmr.msra.gmra.mrb[4].mxu1 %v4391_v44 }
 0x4c2   : > { %v4863_v61 = vpop.f32.mrb[4].mxu1 }
 0x4c3   : > { %v4864_v31 = vpop.f32.mrb[5].mxu1 }
 0x4c4   : > { %v4865_v59 = vadd.f32 %v4864_v31, %v4863_v61 }
 0x4c6   : > { %v4499_v1 = vadd.f32 %v4865_v59, %v4828_v4 }
 0x4c8   : > { %v4503_v35 = vsel %vm4502_vm7, %v4499_v1, -inf }
 0x4c9   : > { %4504 = vmax.xlane.f32.xlu0 %v4503_v35 }
 0x556   : > { %v4505_v30 = vpop.xlane.xlu0 %4504 }
 0x557   : > { %v4506_v0 = vsub.f32 %v4499_v1, %v4505_v30 }
 0x559   : > { %v4507_v3 = vmul.f32 1.442695, %v4506_v0 }
 0x55b   : > { %5299 = vpow2.f32 %v4507_v3 }
 0x565   : > { %v5300_v18 = vpop.eup %5299 }
 0x566   : > { %v4509_v53 = vsel %vm4502_vm7, %v5300_v18, 0.0 }
 0x567   : > { %4510 = vadd.xlane.f32.xlu0 %v4509_v53 }
 0x5f4   : > { %v4511_v45 = vpop.xlane.xlu0 %4510 }
 0x5f5   : > { %5301 = vlog2.f32 %v4511_v45 }
 0x5ff   : > { %v5302_v55 = vpop.eup %5301 }
 0x600   : > { %v4513_v63 = vmul.f32 0.6931472, %v5302_v55 }
 0x602   : > { %v4514_v46 = vsub.f32 %v4506_v0, %v4513_v63 }
 0x604   : > { %4515 = vst.msk [vmem:[%s302_s7] sm:$0xff] %vm4502_vm7, %v4514_v46 }
 0x605 PF: > { %s20_s23 = sadd.s32 1, %s5475_s23   ;;  %s11068_s18 = smov %s5459_s19 }
 0x606   : > { %p17_p4 = scmp.ge.s32.totalorder %s20_s23, 4   ;;  %s11069_s19 = smov %s5463_s20 }
 0x607   : > { %s11070_s20 = smov %s5663_s9  ;;  %s11071_s21 = smov %s5471_s22 }
 0x608   : > { %s11072_s22 = smov %s11074_s29  ;;  %19 = sbr.rel (!%p17_p4) target bundleno = 6 (0x6), region = 100 }
 0x60f   :  { %4535 = vsyncpa [#allocation4], 1 }
 0x610   :  { %4537 = vsyncpa [#allocation4 + $0x1], 1 }
 0x611   :  { %4538 = vsyncpa [#allocation6], 1 }
 0x612   :  { %4539 = vsyncpa [#allocation9], 1 }

</bundles_post_ra>
